<compile_context>
chip_gen: v6e
topology: v6e:2x2x1
jax: 0.10.0
libtpu: 0.0.40
codegen_flags: <defaults>
</compile_context>

<pallas_src>
import math

import jax
import jax.numpy as jnp
from jax.experimental import pallas as pl

# ----- small, module-consistent configuration -------------------------------
ELEMENT_NUM = 8            # sequence length (number of layout elements)
CLASS_NUM = 4
GEOPARAM_NUM = 4
FEATURE_NUM = CLASS_NUM + GEOPARAM_NUM          # 8
D_MODEL = FEATURE_NUM * 8                       # 64  (encoder output dim)
NUM_HEADS = 4
HEAD_DIM = D_MODEL // NUM_HEADS                 # 16
NUM_BLOCKS = 4                                  # relation1..relation4
BATCH = 2


def _lrelu(t):
    return jnp.where(t > 0, t, 0.2 * t)


# ----------------------------------------------------------------------------
# Kernel: entire forward pass for the whole batch in one invocation.
# ----------------------------------------------------------------------------
def disc_kernel(x_ref,
                w1, b1, w2, b2, w3, b3,          # encoder
                w_qkv, b_qkv, w_o, b_o,          # 4 stacked MHSA blocks
                wp, bp,                          # pred head (wp stored as [1, E])
                out_ref):
    BE, _ = x_ref.shape                          # BE = B * ELEMENT_NUM
    B = BE // ELEMENT_NUM
    E = ELEMENT_NUM
    scale = 1.0 / math.sqrt(HEAD_DIM)

    # ----- encoder: 3 x (Linear + LeakyReLU(0.2)) ----------------------------
    h = x_ref[...]                                                     # [B*E, F]
    h = _lrelu(jnp.dot(h, w1[...], preferred_element_type=jnp.float32) + b1[...])
    h = _lrelu(jnp.dot(h, w2[...], preferred_element_type=jnp.float32) + b2[...])
    h = _lrelu(jnp.dot(h, w3[...], preferred_element_type=jnp.float32) + b3[...])
    # h: [B*E, D_MODEL]

    # ----- 4 x multi-head self-attention, each followed by LeakyReLU(0.2) ----
    for layer in range(NUM_BLOCKS):              # static unroll (4)
        # One fused QKV matmul per layer: [B*E, D] x [D, 3D] -> [B*E, 3D]
        qkv = (jnp.dot(h, w_qkv[layer], preferred_element_type=jnp.float32)
               + b_qkv[layer])

        head_ctx = []
        for head in range(NUM_HEADS):            # static unroll (4)
            qo = head * HEAD_DIM
            ko = D_MODEL + head * HEAD_DIM
            vo = 2 * D_MODEL + head * HEAD_DIM
            # Static lane slices of the fused projection result; reshapes only
            # split the (batch*seq) major dim -> layout-safe.
            q = qkv[:, qo:qo + HEAD_DIM].reshape(B, E, HEAD_DIM)       # [B,E,Hd]
            k = qkv[:, ko:ko + HEAD_DIM].reshape(B, E, HEAD_DIM)
            v = qkv[:, vo:vo + HEAD_DIM].reshape(B, E, HEAD_DIM)

            # Scaled dot-product attention, batched over B (no explicit k.T).
            s = jnp.einsum('bqd,bkd->bqk', q, k,
                           preferred_element_type=jnp.float32) * scale  # [B,E,E]
            s = s - jnp.max(s, axis=-1, keepdims=True)
            p = jnp.exp(s)
            p = p / jnp.sum(p, axis=-1, keepdims=True)   # exact divide (EUP idle)
            ctx = jnp.einsum('bqk,bkd->bqd', p, v,
                             preferred_element_type=jnp.float32)        # [B,E,Hd]
            head_ctx.append(ctx.reshape(BE, HEAD_DIM))

        # Heads re-assembled along lanes -> one out-proj matmul per layer.
        ctx_full = jnp.concatenate(head_ctx, axis=-1)                   # [B*E, D]
        h = _lrelu(jnp.dot(ctx_full, w_o[layer],
                           preferred_element_type=jnp.float32) + b_o[layer])

    # ----- MaxPool1d(D_MODEL) over the feature axis --------------------------
    pooled = jnp.max(h.reshape(B, E, D_MODEL), axis=-1)                 # [B, E]

    # ----- pred: Linear(element_num, 1) + Sigmoid — VPU/XLU only --------------
    logit = jnp.sum(pooled * wp[...], axis=-1, keepdims=True) + bp[...]  # [B, 1]
    out_ref[...] = 1.0 / (1.0 + jnp.exp(-logit))     # single store


# ----------------------------------------------------------------------------
# Wrapper: gridless single invocation, all operands fully resident in VMEM.
# ----------------------------------------------------------------------------
def relation_discriminator(x, kernel_params):
    B, E, F = x.shape
    x2d = x.reshape(B * E, F)          # fold batch into the matmul row dim (host side)
    return pl.pallas_call(
        disc_kernel,
        out_shape=jax.ShapeDtypeStruct((B, 1), jnp.float32),
    )(x2d, *kernel_params)


# ----------------------------------------------------------------------------
# Parameter construction (logical / PyTorch-like layout) and host-side packing
# ----------------------------------------------------------------------------
def init_params(key):
    def linear(k, fan_in, fan_out):
        k1, k2 = jax.random.split(k)
        bound = 1.0 / math.sqrt(fan_in)
        w = jax.random.uniform(k1, (fan_in, fan_out), jnp.float32, -bound, bound)
        b = jax.random.uniform(k2, (1, fan_out), jnp.float32, -bound, bound)
        return w, b

    keys = jax.random.split(key, 12)
    params = []
    # encoder
    params += linear(keys[0], FEATURE_NUM, 2 * FEATURE_NUM)
    params += linear(keys[1], 2 * FEATURE_NUM, 4 * FEATURE_NUM)
    params += linear(keys[2], 4 * FEATURE_NUM, 8 * FEATURE_NUM)
    # 4 x MHSA: fused qkv projection [D, 3D] + output projection [D, D]
    ki = 3
    for _ in range(NUM_BLOCKS):
        params += linear(keys[ki], D_MODEL, 3 * D_MODEL); ki += 1
        params += linear(keys[ki], D_MODEL, D_MODEL); ki += 1
    # pred head
    params += linear(keys[ki], ELEMENT_NUM, 1)
    return params


def pack_params(flat):
    """Repack the 24 logical arrays into 13 lane-dense kernel inputs."""
    (w1, b1, w2, b2, w3, b3,
     wq1, bq1, wo1, bo1,
     wq2, bq2, wo2, bo2,
     wq3, bq3, wo3, bo3,
     wq4, bq4, wo4, bo4,
     wp, bp) = flat

    w_qkv = jnp.stack([wq1, wq2, wq3, wq4])      # [L, D, 3D]  (fused, lane-dense)
    b_qkv = jnp.stack([bq1, bq2, bq3, bq4])      # [L, 1, 3D]
    w_o = jnp.stack([wo1, wo2, wo3, wo4])        # [L, D, D]   (original layout)
    b_o = jnp.stack([bo1, bo2, bo3, bo4])        # [L, 1, D]
    wp_row = wp.reshape(1, ELEMENT_NUM)          # [1, E]  (= wp.T, for VPU reduce)

    return [w1, b1, w2, b2, w3, b3, w_qkv, b_qkv, w_o, b_o, wp_row, bp]


# ----------------------------------------------------------------------------
# Pure-JAX reference (independent formulation: fused QKV, slices, concat)
# ----------------------------------------------------------------------------
def _mhsa_ref(t, wqkv, bqkv, wo, bo):
    qkv = t @ wqkv + bqkv                                     # [E, 3D]
    scale = 1.0 / math.sqrt(HEAD_DIM)
    heads = []
    for h in range(NUM_HEADS):
        q = qkv[:, h * HEAD_DIM:(h + 1) * HEAD_DIM]
        k = qkv[:, D_MODEL + h * HEAD_DIM:D_MODEL + (h + 1) * HEAD_DIM]
        v = qkv[:, 2 * D_MODEL + h * HEAD_DIM:2 * D_MODEL + (h + 1) * HEAD_DIM]
        s = (q @ k.T) * scale
        s = s - jnp.max(s, axis=-1, keepdims=True)
        p = jnp.exp(s)
        p = p / jnp.sum(p, axis=-1, keepdims=True)
        heads.append(p @ v)
    o = jnp.concatenate(heads, axis=-1)
    return o @ wo + bo


def reference_forward(x, flat):
    (w1, b1, w2, b2, w3, b3,
     wq1, bq1, wo1, bo1,
     wq2, bq2, wo2, bo2,
     wq3, bq3, wo3, bo3,
     wq4, bq4, wo4, bo4,
     wp, bp) = flat

    def one(xe):
        h = _lrelu(xe @ w1 + b1)
        h = _lrelu(h @ w2 + b2)
        h = _lrelu(h @ w3 + b3)
        for (wq, bq, wo, bo) in ((wq1, bq1, wo1, bo1), (wq2, bq2, wo2, bo2),
                                 (wq3, bq3, wo3, bo3), (wq4, bq4, wo4, bo4)):
            h = _lrelu(_mhsa_ref(h, wq, bq, wo, bo))
        pooled = jnp.max(h, axis=-1, keepdims=True)           # [E, 1]
        logit = jnp.sum(pooled * wp, axis=0, keepdims=True) + bp
        return jax.nn.sigmoid(logit)[0]                       # [1]

    return jax.vmap(one)(x)                                   # [B, 1]


if __name__ == "__main__":
    key = jax.random.PRNGKey(0)
    kx, kp = jax.random.split(key)
    x = jax.random.normal(kx, (BATCH, ELEMENT_NUM, FEATURE_NUM), jnp.float32)

    logical_params = init_params(kp)
    kernel_params = pack_params(logical_params)

    out = jax.block_until_ready(relation_discriminator(x, kernel_params))
    ref = jax.block_until_ready(reference_forward(x, logical_params))

    assert out.shape == (BATCH, 1), out.shape
    # Exact softmax divide inside the kernel -> tight agreement with the reference.
    assert jnp.allclose(out, ref, rtol=1e-5, atol=1e-5), (out, ref)

    print("KERNEL_OK")
</pallas_src>

<mosaic_0001>
module attributes {stable_mosaic.version = 11 : i64} {
  func.func @disc_kernel(%arg0: memref<16x8xf32, #tpu.memory_space<vmem>>, %arg1: memref<8x16xf32, #tpu.memory_space<vmem>>, %arg2: memref<1x16xf32, #tpu.memory_space<vmem>>, %arg3: memref<16x32xf32, #tpu.memory_space<vmem>>, %arg4: memref<1x32xf32, #tpu.memory_space<vmem>>, %arg5: memref<32x64xf32, #tpu.memory_space<vmem>>, %arg6: memref<1x64xf32, #tpu.memory_space<vmem>>, %arg7: memref<4x64x192xf32, #tpu.memory_space<vmem>>, %arg8: memref<4x1x192xf32, #tpu.memory_space<vmem>>, %arg9: memref<4x64x64xf32, #tpu.memory_space<vmem>>, %arg10: memref<4x1x64xf32, #tpu.memory_space<vmem>>, %arg11: memref<1x8xf32, #tpu.memory_space<vmem>>, %arg12: memref<1x1xf32, #tpu.memory_space<vmem>>, %arg13: memref<2x1xf32, #tpu.memory_space<vmem>>) attributes {dimension_semantics = [], scalar_prefetch = 0 : i64, scratch_operands = 0 : i64, tpu.core_type = #tpu.core_type<tc>} {
    %c0 = arith.constant 0 : index
    %c0_0 = arith.constant 0 : index
    %0 = vector.load %arg0[%c0, %c0_0] : memref<16x8xf32, #tpu.memory_space<vmem>>, vector<16x8xf32>
    %c0_1 = arith.constant 0 : index
    %c0_2 = arith.constant 0 : index
    %1 = vector.load %arg1[%c0_1, %c0_2] : memref<8x16xf32, #tpu.memory_space<vmem>>, vector<8x16xf32>
    %cst = arith.constant dense<0.000000e+00> : vector<16x16xf32>
    %2 = tpu.matmul %0, %1, %cst {dimension_numbers = #tpu.dot_dimension_numbers<[1], [0], [0], [1], [0, 0, 1, 1], [], []>} : vector<16x8xf32>, vector<8x16xf32>, vector<16x16xf32> -> vector<16x16xf32>
    %c0_3 = arith.constant 0 : index
    %c0_4 = arith.constant 0 : index
    %3 = vector.load %arg2[%c0_3, %c0_4] : memref<1x16xf32, #tpu.memory_space<vmem>>, vector<1x16xf32>
    %4 = vector.broadcast %3 : vector<1x16xf32> to vector<16x16xf32>
    %5 = arith.addf %2, %4 : vector<16x16xf32>
    %cst_5 = arith.constant 0.000000e+00 : f32
    %6 = vector.broadcast %cst_5 : f32 to vector<16x16xf32>
    %7 = arith.cmpf ogt, %5, %6 : vector<16x16xf32>
    %cst_6 = arith.constant 2.000000e-01 : f32
    %8 = vector.broadcast %cst_6 : f32 to vector<16x16xf32>
    %9 = arith.mulf %8, %5 : vector<16x16xf32>
    %10 = arith.select %7, %5, %9 : vector<16x16xi1>, vector<16x16xf32>
    %c0_7 = arith.constant 0 : index
    %c0_8 = arith.constant 0 : index
    %11 = vector.load %arg3[%c0_7, %c0_8] : memref<16x32xf32, #tpu.memory_space<vmem>>, vector<16x32xf32>
    %cst_9 = arith.constant dense<0.000000e+00> : vector<16x32xf32>
    %12 = tpu.matmul %10, %11, %cst_9 {dimension_numbers = #tpu.dot_dimension_numbers<[1], [0], [0], [1], [0, 0, 1, 1], [], []>} : vector<16x16xf32>, vector<16x32xf32>, vector<16x32xf32> -> vector<16x32xf32>
    %c0_10 = arith.constant 0 : index
    %c0_11 = arith.constant 0 : index
    %13 = vector.load %arg4[%c0_10, %c0_11] : memref<1x32xf32, #tpu.memory_space<vmem>>, vector<1x32xf32>
    %14 = vector.broadcast %13 : vector<1x32xf32> to vector<16x32xf32>
    %15 = arith.addf %12, %14 : vector<16x32xf32>
    %cst_12 = arith.constant 0.000000e+00 : f32
    %16 = vector.broadcast %cst_12 : f32 to vector<16x32xf32>
    %17 = arith.cmpf ogt, %15, %16 : vector<16x32xf32>
    %cst_13 = arith.constant 2.000000e-01 : f32
    %18 = vector.broadcast %cst_13 : f32 to vector<16x32xf32>
    %19 = arith.mulf %18, %15 : vector<16x32xf32>
    %20 = arith.select %17, %15, %19 : vector<16x32xi1>, vector<16x32xf32>
    %c0_14 = arith.constant 0 : index
    %c0_15 = arith.constant 0 : index
    %21 = vector.load %arg5[%c0_14, %c0_15] : memref<32x64xf32, #tpu.memory_space<vmem>>, vector<32x64xf32>
    %cst_16 = arith.constant dense<0.000000e+00> : vector<16x64xf32>
    %22 = tpu.matmul %20, %21, %cst_16 {dimension_numbers = #tpu.dot_dimension_numbers<[1], [0], [0], [1], [0, 0, 1, 1], [], []>} : vector<16x32xf32>, vector<32x64xf32>, vector<16x64xf32> -> vector<16x64xf32>
    %c0_17 = arith.constant 0 : index
    %c0_18 = arith.constant 0 : index
    %23 = vector.load %arg6[%c0_17, %c0_18] : memref<1x64xf32, #tpu.memory_space<vmem>>, vector<1x64xf32>
    %24 = vector.broadcast %23 : vector<1x64xf32> to vector<16x64xf32>
    %25 = arith.addf %22, %24 : vector<16x64xf32>
    %cst_19 = arith.constant 0.000000e+00 : f32
    %26 = vector.broadcast %cst_19 : f32 to vector<16x64xf32>
    %27 = arith.cmpf ogt, %25, %26 : vector<16x64xf32>
    %cst_20 = arith.constant 2.000000e-01 : f32
    %28 = vector.broadcast %cst_20 : f32 to vector<16x64xf32>
    %29 = arith.mulf %28, %25 : vector<16x64xf32>
    %30 = arith.select %27, %25, %29 : vector<16x64xi1>, vector<16x64xf32>
    %c0_21 = arith.constant 0 : index
    %c0_22 = arith.constant 0 : index
    %c0_23 = arith.constant 0 : index
    %31 = vector.load %arg7[%c0_21, %c0_22, %c0_23] : memref<4x64x192xf32, #tpu.memory_space<vmem>>, vector<1x64x192xf32>
    %32 = vector.shape_cast %31 : vector<1x64x192xf32> to vector<64x192xf32>
    %cst_24 = arith.constant dense<0.000000e+00> : vector<16x192xf32>
    %33 = tpu.matmul %30, %32, %cst_24 {dimension_numbers = #tpu.dot_dimension_numbers<[1], [0], [0], [1], [0, 0, 1, 1], [], []>} : vector<16x64xf32>, vector<64x192xf32>, vector<16x192xf32> -> vector<16x192xf32>
    %c0_25 = arith.constant 0 : index
    %c0_26 = arith.constant 0 : index
    %c0_27 = arith.constant 0 : index
    %34 = vector.load %arg8[%c0_25, %c0_26, %c0_27] : memref<4x1x192xf32, #tpu.memory_space<vmem>>, vector<1x1x192xf32>
    %35 = vector.shape_cast %34 : vector<1x1x192xf32> to vector<1x192xf32>
    %36 = vector.broadcast %35 : vector<1x192xf32> to vector<16x192xf32>
    %37 = arith.addf %33, %36 : vector<16x192xf32>
    %38 = vector.extract_strided_slice %37 {offsets = [0, 0], sizes = [16, 16], strides = [1, 1]} : vector<16x192xf32> to vector<16x16xf32>
    %39 = vector.shape_cast %38 : vector<16x16xf32> to vector<2x8x16xf32>
    %40 = vector.extract_strided_slice %37 {offsets = [0, 64], sizes = [16, 16], strides = [1, 1]} : vector<16x192xf32> to vector<16x16xf32>
    %41 = vector.shape_cast %40 : vector<16x16xf32> to vector<2x8x16xf32>
    %42 = vector.extract_strided_slice %37 {offsets = [0, 128], sizes = [16, 16], strides = [1, 1]} : vector<16x192xf32> to vector<16x16xf32>
    %43 = vector.shape_cast %42 : vector<16x16xf32> to vector<2x8x16xf32>
    "tpu.trace_start"() <{level = 10 : i32, message = "bqd,bkd->bqk"}> : () -> ()
    %cst_28 = arith.constant dense<0.000000e+00> : vector<2x8x8xf32>
    %44 = tpu.matmul %39, %41, %cst_28 {dimension_numbers = #tpu.dot_dimension_numbers<[2], [2], [1], [1], [0, 0, 0, 1, 1, 1], [0], [0]>} : vector<2x8x16xf32>, vector<2x8x16xf32>, vector<2x8x8xf32> -> vector<2x8x8xf32>
    "tpu.trace_stop"() : () -> ()
    %cst_29 = arith.constant 2.500000e-01 : f32
    %45 = vector.broadcast %cst_29 : f32 to vector<2x8x8xf32>
    %46 = arith.mulf %44, %45 : vector<2x8x8xf32>
    %cst_30 = arith.constant dense<0xFF800000> : vector<2x8xf32>
    %47 = vector.multi_reduction <maximumf>, %46, %cst_30 [2] : vector<2x8x8xf32> to vector<2x8xf32>
    %48 = vector.shape_cast %47 : vector<2x8xf32> to vector<2x8x1xf32>
    %49 = vector.broadcast %48 : vector<2x8x1xf32> to vector<2x8x8xf32>
    %50 = arith.subf %46, %49 : vector<2x8x8xf32>
    %51 = math.exp %50 : vector<2x8x8xf32>
    %cst_31 = arith.constant dense<0.000000e+00> : vector<2x8xf32>
    %52 = vector.multi_reduction <add>, %51, %cst_31 [2] : vector<2x8x8xf32> to vector<2x8xf32>
    %53 = vector.shape_cast %52 : vector<2x8xf32> to vector<2x8x1xf32>
    %54 = vector.broadcast %53 : vector<2x8x1xf32> to vector<2x8x8xf32>
    %55 = arith.divf %51, %54 : vector<2x8x8xf32>
    "tpu.trace_start"() <{level = 10 : i32, message = "bqk,bkd->bqd"}> : () -> ()
    %cst_32 = arith.constant dense<0.000000e+00> : vector<2x8x16xf32>
    %56 = tpu.matmul %55, %43, %cst_32 {dimension_numbers = #tpu.dot_dimension_numbers<[2], [1], [1], [2], [0, 0, 0, 1, 1, 2], [0], [0]>} : vector<2x8x8xf32>, vector<2x8x16xf32>, vector<2x8x16xf32> -> vector<2x8x16xf32>
    "tpu.trace_stop"() : () -> ()
    %57 = vector.shape_cast %56 : vector<2x8x16xf32> to vector<16x16xf32>
    %58 = vector.extract_strided_slice %37 {offsets = [0, 16], sizes = [16, 16], strides = [1, 1]} : vector<16x192xf32> to vector<16x16xf32>
    %59 = vector.shape_cast %58 : vector<16x16xf32> to vector<2x8x16xf32>
    %60 = vector.extract_strided_slice %37 {offsets = [0, 80], sizes = [16, 16], strides = [1, 1]} : vector<16x192xf32> to vector<16x16xf32>
    %61 = vector.shape_cast %60 : vector<16x16xf32> to vector<2x8x16xf32>
    %62 = vector.extract_strided_slice %37 {offsets = [0, 144], sizes = [16, 16], strides = [1, 1]} : vector<16x192xf32> to vector<16x16xf32>
    %63 = vector.shape_cast %62 : vector<16x16xf32> to vector<2x8x16xf32>
    "tpu.trace_start"() <{level = 10 : i32, message = "bqd,bkd->bqk"}> : () -> ()
    %cst_33 = arith.constant dense<0.000000e+00> : vector<2x8x8xf32>
    %64 = tpu.matmul %59, %61, %cst_33 {dimension_numbers = #tpu.dot_dimension_numbers<[2], [2], [1], [1], [0, 0, 0, 1, 1, 1], [0], [0]>} : vector<2x8x16xf32>, vector<2x8x16xf32>, vector<2x8x8xf32> -> vector<2x8x8xf32>
    "tpu.trace_stop"() : () -> ()
    %cst_34 = arith.constant 2.500000e-01 : f32
    %65 = vector.broadcast %cst_34 : f32 to vector<2x8x8xf32>
    %66 = arith.mulf %64, %65 : vector<2x8x8xf32>
    %cst_35 = arith.constant dense<0xFF800000> : vector<2x8xf32>
    %67 = vector.multi_reduction <maximumf>, %66, %cst_35 [2] : vector<2x8x8xf32> to vector<2x8xf32>
    %68 = vector.shape_cast %67 : vector<2x8xf32> to vector<2x8x1xf32>
    %69 = vector.broadcast %68 : vector<2x8x1xf32> to vector<2x8x8xf32>
    %70 = arith.subf %66, %69 : vector<2x8x8xf32>
    %71 = math.exp %70 : vector<2x8x8xf32>
    %cst_36 = arith.constant dense<0.000000e+00> : vector<2x8xf32>
    %72 = vector.multi_reduction <add>, %71, %cst_36 [2] : vector<2x8x8xf32> to vector<2x8xf32>
    %73 = vector.shape_cast %72 : vector<2x8xf32> to vector<2x8x1xf32>
    %74 = vector.broadcast %73 : vector<2x8x1xf32> to vector<2x8x8xf32>
    %75 = arith.divf %71, %74 : vector<2x8x8xf32>
    "tpu.trace_start"() <{level = 10 : i32, message = "bqk,bkd->bqd"}> : () -> ()
    %cst_37 = arith.constant dense<0.000000e+00> : vector<2x8x16xf32>
    %76 = tpu.matmul %75, %63, %cst_37 {dimension_numbers = #tpu.dot_dimension_numbers<[2], [1], [1], [2], [0, 0, 0, 1, 1, 2], [0], [0]>} : vector<2x8x8xf32>, vector<2x8x16xf32>, vector<2x8x16xf32> -> vector<2x8x16xf32>
    "tpu.trace_stop"() : () -> ()
    %77 = vector.shape_cast %76 : vector<2x8x16xf32> to vector<16x16xf32>
    %78 = vector.extract_strided_slice %37 {offsets = [0, 32], sizes = [16, 16], strides = [1, 1]} : vector<16x192xf32> to vector<16x16xf32>
    %79 = vector.shape_cast %78 : vector<16x16xf32> to vector<2x8x16xf32>
    %80 = vector.extract_strided_slice %37 {offsets = [0, 96], sizes = [16, 16], strides = [1, 1]} : vector<16x192xf32> to vector<16x16xf32>
    %81 = vector.shape_cast %80 : vector<16x16xf32> to vector<2x8x16xf32>
    %82 = vector.extract_strided_slice %37 {offsets = [0, 160], sizes = [16, 16], strides = [1, 1]} : vector<16x192xf32> to vector<16x16xf32>
    %83 = vector.shape_cast %82 : vector<16x16xf32> to vector<2x8x16xf32>
    "tpu.trace_start"() <{level = 10 : i32, message = "bqd,bkd->bqk"}> : () -> ()
    %cst_38 = arith.constant dense<0.000000e+00> : vector<2x8x8xf32>
    %84 = tpu.matmul %79, %81, %cst_38 {dimension_numbers = #tpu.dot_dimension_numbers<[2], [2], [1], [1], [0, 0, 0, 1, 1, 1], [0], [0]>} : vector<2x8x16xf32>, vector<2x8x16xf32>, vector<2x8x8xf32> -> vector<2x8x8xf32>
    "tpu.trace_stop"() : () -> ()
    %cst_39 = arith.constant 2.500000e-01 : f32
    %85 = vector.broadcast %cst_39 : f32 to vector<2x8x8xf32>
    %86 = arith.mulf %84, %85 : vector<2x8x8xf32>
    %cst_40 = arith.constant dense<0xFF800000> : vector<2x8xf32>
    %87 = vector.multi_reduction <maximumf>, %86, %cst_40 [2] : vector<2x8x8xf32> to vector<2x8xf32>
    %88 = vector.shape_cast %87 : vector<2x8xf32> to vector<2x8x1xf32>
    %89 = vector.broadcast %88 : vector<2x8x1xf32> to vector<2x8x8xf32>
    %90 = arith.subf %86, %89 : vector<2x8x8xf32>
    %91 = math.exp %90 : vector<2x8x8xf32>
    %cst_41 = arith.constant dense<0.000000e+00> : vector<2x8xf32>
    %92 = vector.multi_reduction <add>, %91, %cst_41 [2] : vector<2x8x8xf32> to vector<2x8xf32>
    %93 = vector.shape_cast %92 : vector<2x8xf32> to vector<2x8x1xf32>
    %94 = vector.broadcast %93 : vector<2x8x1xf32> to vector<2x8x8xf32>
    %95 = arith.divf %91, %94 : vector<2x8x8xf32>
    "tpu.trace_start"() <{level = 10 : i32, message = "bqk,bkd->bqd"}> : () -> ()
    %cst_42 = arith.constant dense<0.000000e+00> : vector<2x8x16xf32>
    %96 = tpu.matmul %95, %83, %cst_42 {dimension_numbers = #tpu.dot_dimension_numbers<[2], [1], [1], [2], [0, 0, 0, 1, 1, 2], [0], [0]>} : vector<2x8x8xf32>, vector<2x8x16xf32>, vector<2x8x16xf32> -> vector<2x8x16xf32>
    "tpu.trace_stop"() : () -> ()
    %97 = vector.shape_cast %96 : vector<2x8x16xf32> to vector<16x16xf32>
    %98 = vector.extract_strided_slice %37 {offsets = [0, 48], sizes = [16, 16], strides = [1, 1]} : vector<16x192xf32> to vector<16x16xf32>
    %99 = vector.shape_cast %98 : vector<16x16xf32> to vector<2x8x16xf32>
    %100 = vector.extract_strided_slice %37 {offsets = [0, 112], sizes = [16, 16], strides = [1, 1]} : vector<16x192xf32> to vector<16x16xf32>
    %101 = vector.shape_cast %100 : vector<16x16xf32> to vector<2x8x16xf32>
    %102 = vector.extract_strided_slice %37 {offsets = [0, 176], sizes = [16, 16], strides = [1, 1]} : vector<16x192xf32> to vector<16x16xf32>
    %103 = vector.shape_cast %102 : vector<16x16xf32> to vector<2x8x16xf32>
    "tpu.trace_start"() <{level = 10 : i32, message = "bqd,bkd->bqk"}> : () -> ()
    %cst_43 = arith.constant dense<0.000000e+00> : vector<2x8x8xf32>
    %104 = tpu.matmul %99, %101, %cst_43 {dimension_numbers = #tpu.dot_dimension_numbers<[2], [2], [1], [1], [0, 0, 0, 1, 1, 1], [0], [0]>} : vector<2x8x16xf32>, vector<2x8x16xf32>, vector<2x8x8xf32> -> vector<2x8x8xf32>
    "tpu.trace_stop"() : () -> ()
    %cst_44 = arith.constant 2.500000e-01 : f32
    %105 = vector.broadcast %cst_44 : f32 to vector<2x8x8xf32>
    %106 = arith.mulf %104, %105 : vector<2x8x8xf32>
    %cst_45 = arith.constant dense<0xFF800000> : vector<2x8xf32>
    %107 = vector.multi_reduction <maximumf>, %106, %cst_45 [2] : vector<2x8x8xf32> to vector<2x8xf32>
    %108 = vector.shape_cast %107 : vector<2x8xf32> to vector<2x8x1xf32>
    %109 = vector.broadcast %108 : vector<2x8x1xf32> to vector<2x8x8xf32>
    %110 = arith.subf %106, %109 : vector<2x8x8xf32>
    %111 = math.exp %110 : vector<2x8x8xf32>
    %cst_46 = arith.constant dense<0.000000e+00> : vector<2x8xf32>
    %112 = vector.multi_reduction <add>, %111, %cst_46 [2] : vector<2x8x8xf32> to vector<2x8xf32>
    %113 = vector.shape_cast %112 : vector<2x8xf32> to vector<2x8x1xf32>
    %114 = vector.broadcast %113 : vector<2x8x1xf32> to vector<2x8x8xf32>
    %115 = arith.divf %111, %114 : vector<2x8x8xf32>
    "tpu.trace_start"() <{level = 10 : i32, message = "bqk,bkd->bqd"}> : () -> ()
    %cst_47 = arith.constant dense<0.000000e+00> : vector<2x8x16xf32>
    %116 = tpu.matmul %115, %103, %cst_47 {dimension_numbers = #tpu.dot_dimension_numbers<[2], [1], [1], [2], [0, 0, 0, 1, 1, 2], [0], [0]>} : vector<2x8x8xf32>, vector<2x8x16xf32>, vector<2x8x16xf32> -> vector<2x8x16xf32>
    "tpu.trace_stop"() : () -> ()
    %117 = vector.shape_cast %116 : vector<2x8x16xf32> to vector<16x16xf32>
    %118 = tpu.concatenate %57, %77, %97, %117 in 1 : vector<16x16xf32>, vector<16x16xf32>, vector<16x16xf32>, vector<16x16xf32> -> vector<16x64xf32>
    %c0_48 = arith.constant 0 : index
    %c0_49 = arith.constant 0 : index
    %c0_50 = arith.constant 0 : index
    %119 = vector.load %arg9[%c0_48, %c0_49, %c0_50] : memref<4x64x64xf32, #tpu.memory_space<vmem>>, vector<1x64x64xf32>
    %120 = vector.shape_cast %119 : vector<1x64x64xf32> to vector<64x64xf32>
    %cst_51 = arith.constant dense<0.000000e+00> : vector<16x64xf32>
    %121 = tpu.matmul %118, %120, %cst_51 {dimension_numbers = #tpu.dot_dimension_numbers<[1], [0], [0], [1], [0, 0, 1, 1], [], []>} : vector<16x64xf32>, vector<64x64xf32>, vector<16x64xf32> -> vector<16x64xf32>
    %c0_52 = arith.constant 0 : index
    %c0_53 = arith.constant 0 : index
    %c0_54 = arith.constant 0 : index
    %122 = vector.load %arg10[%c0_52, %c0_53, %c0_54] : memref<4x1x64xf32, #tpu.memory_space<vmem>>, vector<1x1x64xf32>
    %123 = vector.shape_cast %122 : vector<1x1x64xf32> to vector<1x64xf32>
    %124 = vector.broadcast %123 : vector<1x64xf32> to vector<16x64xf32>
    %125 = arith.addf %121, %124 : vector<16x64xf32>
    %cst_55 = arith.constant 0.000000e+00 : f32
    %126 = vector.broadcast %cst_55 : f32 to vector<16x64xf32>
    %127 = arith.cmpf ogt, %125, %126 : vector<16x64xf32>
    %cst_56 = arith.constant 2.000000e-01 : f32
    %128 = vector.broadcast %cst_56 : f32 to vector<16x64xf32>
    %129 = arith.mulf %128, %125 : vector<16x64xf32>
    %130 = arith.select %127, %125, %129 : vector<16x64xi1>, vector<16x64xf32>
    %c1 = arith.constant 1 : index
    %c0_57 = arith.constant 0 : index
    %c0_58 = arith.constant 0 : index
    %131 = vector.load %arg7[%c1, %c0_57, %c0_58] : memref<4x64x192xf32, #tpu.memory_space<vmem>>, vector<1x64x192xf32>
    %132 = vector.shape_cast %131 : vector<1x64x192xf32> to vector<64x192xf32>
    %cst_59 = arith.constant dense<0.000000e+00> : vector<16x192xf32>
    %133 = tpu.matmul %130, %132, %cst_59 {dimension_numbers = #tpu.dot_dimension_numbers<[1], [0], [0], [1], [0, 0, 1, 1], [], []>} : vector<16x64xf32>, vector<64x192xf32>, vector<16x192xf32> -> vector<16x192xf32>
    %c1_60 = arith.constant 1 : index
    %c0_61 = arith.constant 0 : index
    %c0_62 = arith.constant 0 : index
    %134 = vector.load %arg8[%c1_60, %c0_61, %c0_62] : memref<4x1x192xf32, #tpu.memory_space<vmem>>, vector<1x1x192xf32>
    %135 = vector.shape_cast %134 : vector<1x1x192xf32> to vector<1x192xf32>
    %136 = vector.broadcast %135 : vector<1x192xf32> to vector<16x192xf32>
    %137 = arith.addf %133, %136 : vector<16x192xf32>
    %138 = vector.extract_strided_slice %137 {offsets = [0, 0], sizes = [16, 16], strides = [1, 1]} : vector<16x192xf32> to vector<16x16xf32>
    %139 = vector.shape_cast %138 : vector<16x16xf32> to vector<2x8x16xf32>
    %140 = vector.extract_strided_slice %137 {offsets = [0, 64], sizes = [16, 16], strides = [1, 1]} : vector<16x192xf32> to vector<16x16xf32>
    %141 = vector.shape_cast %140 : vector<16x16xf32> to vector<2x8x16xf32>
    %142 = vector.extract_strided_slice %137 {offsets = [0, 128], sizes = [16, 16], strides = [1, 1]} : vector<16x192xf32> to vector<16x16xf32>
    %143 = vector.shape_cast %142 : vector<16x16xf32> to vector<2x8x16xf32>
    "tpu.trace_start"() <{level = 10 : i32, message = "bqd,bkd->bqk"}> : () -> ()
    %cst_63 = arith.constant dense<0.000000e+00> : vector<2x8x8xf32>
    %144 = tpu.matmul %139, %141, %cst_63 {dimension_numbers = #tpu.dot_dimension_numbers<[2], [2], [1], [1], [0, 0, 0, 1, 1, 1], [0], [0]>} : vector<2x8x16xf32>, vector<2x8x16xf32>, vector<2x8x8xf32> -> vector<2x8x8xf32>
    "tpu.trace_stop"() : () -> ()
    %cst_64 = arith.constant 2.500000e-01 : f32
    %145 = vector.broadcast %cst_64 : f32 to vector<2x8x8xf32>
    %146 = arith.mulf %144, %145 : vector<2x8x8xf32>
    %cst_65 = arith.constant dense<0xFF800000> : vector<2x8xf32>
    %147 = vector.multi_reduction <maximumf>, %146, %cst_65 [2] : vector<2x8x8xf32> to vector<2x8xf32>
    %148 = vector.shape_cast %147 : vector<2x8xf32> to vector<2x8x1xf32>
    %149 = vector.broadcast %148 : vector<2x8x1xf32> to vector<2x8x8xf32>
    %150 = arith.subf %146, %149 : vector<2x8x8xf32>
    %151 = math.exp %150 : vector<2x8x8xf32>
    %cst_66 = arith.constant dense<0.000000e+00> : vector<2x8xf32>
    %152 = vector.multi_reduction <add>, %151, %cst_66 [2] : vector<2x8x8xf32> to vector<2x8xf32>
    %153 = vector.shape_cast %152 : vector<2x8xf32> to vector<2x8x1xf32>
    %154 = vector.broadcast %153 : vector<2x8x1xf32> to vector<2x8x8xf32>
    %155 = arith.divf %151, %154 : vector<2x8x8xf32>
    "tpu.trace_start"() <{level = 10 : i32, message = "bqk,bkd->bqd"}> : () -> ()
    %cst_67 = arith.constant dense<0.000000e+00> : vector<2x8x16xf32>
    %156 = tpu.matmul %155, %143, %cst_67 {dimension_numbers = #tpu.dot_dimension_numbers<[2], [1], [1], [2], [0, 0, 0, 1, 1, 2], [0], [0]>} : vector<2x8x8xf32>, vector<2x8x16xf32>, vector<2x8x16xf32> -> vector<2x8x16xf32>
    "tpu.trace_stop"() : () -> ()
    %157 = vector.shape_cast %156 : vector<2x8x16xf32> to vector<16x16xf32>
    %158 = vector.extract_strided_slice %137 {offsets = [0, 16], sizes = [16, 16], strides = [1, 1]} : vector<16x192xf32> to vector<16x16xf32>
    %159 = vector.shape_cast %158 : vector<16x16xf32> to vector<2x8x16xf32>
    %160 = vector.extract_strided_slice %137 {offsets = [0, 80], sizes = [16, 16], strides = [1, 1]} : vector<16x192xf32> to vector<16x16xf32>
    %161 = vector.shape_cast %160 : vector<16x16xf32> to vector<2x8x16xf32>
    %162 = vector.extract_strided_slice %137 {offsets = [0, 144], sizes = [16, 16], strides = [1, 1]} : vector<16x192xf32> to vector<16x16xf32>
    %163 = vector.shape_cast %162 : vector<16x16xf32> to vector<2x8x16xf32>
    "tpu.trace_start"() <{level = 10 : i32, message = "bqd,bkd->bqk"}> : () -> ()
    %cst_68 = arith.constant dense<0.000000e+00> : vector<2x8x8xf32>
    %164 = tpu.matmul %159, %161, %cst_68 {dimension_numbers = #tpu.dot_dimension_numbers<[2], [2], [1], [1], [0, 0, 0, 1, 1, 1], [0], [0]>} : vector<2x8x16xf32>, vector<2x8x16xf32>, vector<2x8x8xf32> -> vector<2x8x8xf32>
    "tpu.trace_stop"() : () -> ()
    %cst_69 = arith.constant 2.500000e-01 : f32
    %165 = vector.broadcast %cst_69 : f32 to vector<2x8x8xf32>
    %166 = arith.mulf %164, %165 : vector<2x8x8xf32>
    %cst_70 = arith.constant dense<0xFF800000> : vector<2x8xf32>
    %167 = vector.multi_reduction <maximumf>, %166, %cst_70 [2] : vector<2x8x8xf32> to vector<2x8xf32>
    %168 = vector.shape_cast %167 : vector<2x8xf32> to vector<2x8x1xf32>
    %169 = vector.broadcast %168 : vector<2x8x1xf32> to vector<2x8x8xf32>
    %170 = arith.subf %166, %169 : vector<2x8x8xf32>
    %171 = math.exp %170 : vector<2x8x8xf32>
    %cst_71 = arith.constant dense<0.000000e+00> : vector<2x8xf32>
    %172 = vector.multi_reduction <add>, %171, %cst_71 [2] : vector<2x8x8xf32> to vector<2x8xf32>
    %173 = vector.shape_cast %172 : vector<2x8xf32> to vector<2x8x1xf32>
    %174 = vector.broadcast %173 : vector<2x8x1xf32> to vector<2x8x8xf32>
    %175 = arith.divf %171, %174 : vector<2x8x8xf32>
    "tpu.trace_start"() <{level = 10 : i32, message = "bqk,bkd->bqd"}> : () -> ()
    %cst_72 = arith.constant dense<0.000000e+00> : vector<2x8x16xf32>
    %176 = tpu.matmul %175, %163, %cst_72 {dimension_numbers = #tpu.dot_dimension_numbers<[2], [1], [1], [2], [0, 0, 0, 1, 1, 2], [0], [0]>} : vector<2x8x8xf32>, vector<2x8x16xf32>, vector<2x8x16xf32> -> vector<2x8x16xf32>
    "tpu.trace_stop"() : () -> ()
    %177 = vector.shape_cast %176 : vector<2x8x16xf32> to vector<16x16xf32>
    %178 = vector.extract_strided_slice %137 {offsets = [0, 32], sizes = [16, 16], strides = [1, 1]} : vector<16x192xf32> to vector<16x16xf32>
    %179 = vector.shape_cast %178 : vector<16x16xf32> to vector<2x8x16xf32>
    %180 = vector.extract_strided_slice %137 {offsets = [0, 96], sizes = [16, 16], strides = [1, 1]} : vector<16x192xf32> to vector<16x16xf32>
    %181 = vector.shape_cast %180 : vector<16x16xf32> to vector<2x8x16xf32>
    %182 = vector.extract_strided_slice %137 {offsets = [0, 160], sizes = [16, 16], strides = [1, 1]} : vector<16x192xf32> to vector<16x16xf32>
    %183 = vector.shape_cast %182 : vector<16x16xf32> to vector<2x8x16xf32>
    "tpu.trace_start"() <{level = 10 : i32, message = "bqd,bkd->bqk"}> : () -> ()
    %cst_73 = arith.constant dense<0.000000e+00> : vector<2x8x8xf32>
    %184 = tpu.matmul %179, %181, %cst_73 {dimension_numbers = #tpu.dot_dimension_numbers<[2], [2], [1], [1], [0, 0, 0, 1, 1, 1], [0], [0]>} : vector<2x8x16xf32>, vector<2x8x16xf32>, vector<2x8x8xf32> -> vector<2x8x8xf32>
    "tpu.trace_stop"() : () -> ()
    %cst_74 = arith.constant 2.500000e-01 : f32
    %185 = vector.broadcast %cst_74 : f32 to vector<2x8x8xf32>
    %186 = arith.mulf %184, %185 : vector<2x8x8xf32>
    %cst_75 = arith.constant dense<0xFF800000> : vector<2x8xf32>
    %187 = vector.multi_reduction <maximumf>, %186, %cst_75 [2] : vector<2x8x8xf32> to vector<2x8xf32>
    %188 = vector.shape_cast %187 : vector<2x8xf32> to vector<2x8x1xf32>
    %189 = vector.broadcast %188 : vector<2x8x1xf32> to vector<2x8x8xf32>
    %190 = arith.subf %186, %189 : vector<2x8x8xf32>
    %191 = math.exp %190 : vector<2x8x8xf32>
    %cst_76 = arith.constant dense<0.000000e+00> : vector<2x8xf32>
    %192 = vector.multi_reduction <add>, %191, %cst_76 [2] : vector<2x8x8xf32> to vector<2x8xf32>
    %193 = vector.shape_cast %192 : vector<2x8xf32> to vector<2x8x1xf32>
    %194 = vector.broadcast %193 : vector<2x8x1xf32> to vector<2x8x8xf32>
    %195 = arith.divf %191, %194 : vector<2x8x8xf32>
    "tpu.trace_start"() <{level = 10 : i32, message = "bqk,bkd->bqd"}> : () -> ()
    %cst_77 = arith.constant dense<0.000000e+00> : vector<2x8x16xf32>
    %196 = tpu.matmul %195, %183, %cst_77 {dimension_numbers = #tpu.dot_dimension_numbers<[2], [1], [1], [2], [0, 0, 0, 1, 1, 2], [0], [0]>} : vector<2x8x8xf32>, vector<2x8x16xf32>, vector<2x8x16xf32> -> vector<2x8x16xf32>
    "tpu.trace_stop"() : () -> ()
    %197 = vector.shape_cast %196 : vector<2x8x16xf32> to vector<16x16xf32>
    %198 = vector.extract_strided_slice %137 {offsets = [0, 48], sizes = [16, 16], strides = [1, 1]} : vector<16x192xf32> to vector<16x16xf32>
    %199 = vector.shape_cast %198 : vector<16x16xf32> to vector<2x8x16xf32>
    %200 = vector.extract_strided_slice %137 {offsets = [0, 112], sizes = [16, 16], strides = [1, 1]} : vector<16x192xf32> to vector<16x16xf32>
    %201 = vector.shape_cast %200 : vector<16x16xf32> to vector<2x8x16xf32>
    %202 = vector.extract_strided_slice %137 {offsets = [0, 176], sizes = [16, 16], strides = [1, 1]} : vector<16x192xf32> to vector<16x16xf32>
    %203 = vector.shape_cast %202 : vector<16x16xf32> to vector<2x8x16xf32>
    "tpu.trace_start"() <{level = 10 : i32, message = "bqd,bkd->bqk"}> : () -> ()
    %cst_78 = arith.constant dense<0.000000e+00> : vector<2x8x8xf32>
    %204 = tpu.matmul %199, %201, %cst_78 {dimension_numbers = #tpu.dot_dimension_numbers<[2], [2], [1], [1], [0, 0, 0, 1, 1, 1], [0], [0]>} : vector<2x8x16xf32>, vector<2x8x16xf32>, vector<2x8x8xf32> -> vector<2x8x8xf32>
    "tpu.trace_stop"() : () -> ()
    %cst_79 = arith.constant 2.500000e-01 : f32
    %205 = vector.broadcast %cst_79 : f32 to vector<2x8x8xf32>
    %206 = arith.mulf %204, %205 : vector<2x8x8xf32>
    %cst_80 = arith.constant dense<0xFF800000> : vector<2x8xf32>
    %207 = vector.multi_reduction <maximumf>, %206, %cst_80 [2] : vector<2x8x8xf32> to vector<2x8xf32>
    %208 = vector.shape_cast %207 : vector<2x8xf32> to vector<2x8x1xf32>
    %209 = vector.broadcast %208 : vector<2x8x1xf32> to vector<2x8x8xf32>
    %210 = arith.subf %206, %209 : vector<2x8x8xf32>
    %211 = math.exp %210 : vector<2x8x8xf32>
    %cst_81 = arith.constant dense<0.000000e+00> : vector<2x8xf32>
    %212 = vector.multi_reduction <add>, %211, %cst_81 [2] : vector<2x8x8xf32> to vector<2x8xf32>
    %213 = vector.shape_cast %212 : vector<2x8xf32> to vector<2x8x1xf32>
    %214 = vector.broadcast %213 : vector<2x8x1xf32> to vector<2x8x8xf32>
    %215 = arith.divf %211, %214 : vector<2x8x8xf32>
    "tpu.trace_start"() <{level = 10 : i32, message = "bqk,bkd->bqd"}> : () -> ()
    %cst_82 = arith.constant dense<0.000000e+00> : vector<2x8x16xf32>
    %216 = tpu.matmul %215, %203, %cst_82 {dimension_numbers = #tpu.dot_dimension_numbers<[2], [1], [1], [2], [0, 0, 0, 1, 1, 2], [0], [0]>} : vector<2x8x8xf32>, vector<2x8x16xf32>, vector<2x8x16xf32> -> vector<2x8x16xf32>
    "tpu.trace_stop"() : () -> ()
    %217 = vector.shape_cast %216 : vector<2x8x16xf32> to vector<16x16xf32>
    %218 = tpu.concatenate %157, %177, %197, %217 in 1 : vector<16x16xf32>, vector<16x16xf32>, vector<16x16xf32>, vector<16x16xf32> -> vector<16x64xf32>
    %c1_83 = arith.constant 1 : index
    %c0_84 = arith.constant 0 : index
    %c0_85 = arith.constant 0 : index
    %219 = vector.load %arg9[%c1_83, %c0_84, %c0_85] : memref<4x64x64xf32, #tpu.memory_space<vmem>>, vector<1x64x64xf32>
    %220 = vector.shape_cast %219 : vector<1x64x64xf32> to vector<64x64xf32>
    %cst_86 = arith.constant dense<0.000000e+00> : vector<16x64xf32>
    %221 = tpu.matmul %218, %220, %cst_86 {dimension_numbers = #tpu.dot_dimension_numbers<[1], [0], [0], [1], [0, 0, 1, 1], [], []>} : vector<16x64xf32>, vector<64x64xf32>, vector<16x64xf32> -> vector<16x64xf32>
    %c1_87 = arith.constant 1 : index
    %c0_88 = arith.constant 0 : index
    %c0_89 = arith.constant 0 : index
    %222 = vector.load %arg10[%c1_87, %c0_88, %c0_89] : memref<4x1x64xf32, #tpu.memory_space<vmem>>, vector<1x1x64xf32>
    %223 = vector.shape_cast %222 : vector<1x1x64xf32> to vector<1x64xf32>
    %224 = vector.broadcast %223 : vector<1x64xf32> to vector<16x64xf32>
    %225 = arith.addf %221, %224 : vector<16x64xf32>
    %cst_90 = arith.constant 0.000000e+00 : f32
    %226 = vector.broadcast %cst_90 : f32 to vector<16x64xf32>
    %227 = arith.cmpf ogt, %225, %226 : vector<16x64xf32>
    %cst_91 = arith.constant 2.000000e-01 : f32
    %228 = vector.broadcast %cst_91 : f32 to vector<16x64xf32>
    %229 = arith.mulf %228, %225 : vector<16x64xf32>
    %230 = arith.select %227, %225, %229 : vector<16x64xi1>, vector<16x64xf32>
    %c2 = arith.constant 2 : index
    %c0_92 = arith.constant 0 : index
    %c0_93 = arith.constant 0 : index
    %231 = vector.load %arg7[%c2, %c0_92, %c0_93] : memref<4x64x192xf32, #tpu.memory_space<vmem>>, vector<1x64x192xf32>
    %232 = vector.shape_cast %231 : vector<1x64x192xf32> to vector<64x192xf32>
    %cst_94 = arith.constant dense<0.000000e+00> : vector<16x192xf32>
    %233 = tpu.matmul %230, %232, %cst_94 {dimension_numbers = #tpu.dot_dimension_numbers<[1], [0], [0], [1], [0, 0, 1, 1], [], []>} : vector<16x64xf32>, vector<64x192xf32>, vector<16x192xf32> -> vector<16x192xf32>
    %c2_95 = arith.constant 2 : index
    %c0_96 = arith.constant 0 : index
    %c0_97 = arith.constant 0 : index
    %234 = vector.load %arg8[%c2_95, %c0_96, %c0_97] : memref<4x1x192xf32, #tpu.memory_space<vmem>>, vector<1x1x192xf32>
    %235 = vector.shape_cast %234 : vector<1x1x192xf32> to vector<1x192xf32>
    %236 = vector.broadcast %235 : vector<1x192xf32> to vector<16x192xf32>
    %237 = arith.addf %233, %236 : vector<16x192xf32>
    %238 = vector.extract_strided_slice %237 {offsets = [0, 0], sizes = [16, 16], strides = [1, 1]} : vector<16x192xf32> to vector<16x16xf32>
    %239 = vector.shape_cast %238 : vector<16x16xf32> to vector<2x8x16xf32>
    %240 = vector.extract_strided_slice %237 {offsets = [0, 64], sizes = [16, 16], strides = [1, 1]} : vector<16x192xf32> to vector<16x16xf32>
    %241 = vector.shape_cast %240 : vector<16x16xf32> to vector<2x8x16xf32>
    %242 = vector.extract_strided_slice %237 {offsets = [0, 128], sizes = [16, 16], strides = [1, 1]} : vector<16x192xf32> to vector<16x16xf32>
    %243 = vector.shape_cast %242 : vector<16x16xf32> to vector<2x8x16xf32>
    "tpu.trace_start"() <{level = 10 : i32, message = "bqd,bkd->bqk"}> : () -> ()
    %cst_98 = arith.constant dense<0.000000e+00> : vector<2x8x8xf32>
    %244 = tpu.matmul %239, %241, %cst_98 {dimension_numbers = #tpu.dot_dimension_numbers<[2], [2], [1], [1], [0, 0, 0, 1, 1, 1], [0], [0]>} : vector<2x8x16xf32>, vector<2x8x16xf32>, vector<2x8x8xf32> -> vector<2x8x8xf32>
    "tpu.trace_stop"() : () -> ()
    %cst_99 = arith.constant 2.500000e-01 : f32
    %245 = vector.broadcast %cst_99 : f32 to vector<2x8x8xf32>
    %246 = arith.mulf %244, %245 : vector<2x8x8xf32>
    %cst_100 = arith.constant dense<0xFF800000> : vector<2x8xf32>
    %247 = vector.multi_reduction <maximumf>, %246, %cst_100 [2] : vector<2x8x8xf32> to vector<2x8xf32>
    %248 = vector.shape_cast %247 : vector<2x8xf32> to vector<2x8x1xf32>
    %249 = vector.broadcast %248 : vector<2x8x1xf32> to vector<2x8x8xf32>
    %250 = arith.subf %246, %249 : vector<2x8x8xf32>
    %251 = math.exp %250 : vector<2x8x8xf32>
    %cst_101 = arith.constant dense<0.000000e+00> : vector<2x8xf32>
    %252 = vector.multi_reduction <add>, %251, %cst_101 [2] : vector<2x8x8xf32> to vector<2x8xf32>
    %253 = vector.shape_cast %252 : vector<2x8xf32> to vector<2x8x1xf32>
    %254 = vector.broadcast %253 : vector<2x8x1xf32> to vector<2x8x8xf32>
    %255 = arith.divf %251, %254 : vector<2x8x8xf32>
    "tpu.trace_start"() <{level = 10 : i32, message = "bqk,bkd->bqd"}> : () -> ()
    %cst_102 = arith.constant dense<0.000000e+00> : vector<2x8x16xf32>
    %256 = tpu.matmul %255, %243, %cst_102 {dimension_numbers = #tpu.dot_dimension_numbers<[2], [1], [1], [2], [0, 0, 0, 1, 1, 2], [0], [0]>} : vector<2x8x8xf32>, vector<2x8x16xf32>, vector<2x8x16xf32> -> vector<2x8x16xf32>
    "tpu.trace_stop"() : () -> ()
    %257 = vector.shape_cast %256 : vector<2x8x16xf32> to vector<16x16xf32>
    %258 = vector.extract_strided_slice %237 {offsets = [0, 16], sizes = [16, 16], strides = [1, 1]} : vector<16x192xf32> to vector<16x16xf32>
    %259 = vector.shape_cast %258 : vector<16x16xf32> to vector<2x8x16xf32>
    %260 = vector.extract_strided_slice %237 {offsets = [0, 80], sizes = [16, 16], strides = [1, 1]} : vector<16x192xf32> to vector<16x16xf32>
    %261 = vector.shape_cast %260 : vector<16x16xf32> to vector<2x8x16xf32>
    %262 = vector.extract_strided_slice %237 {offsets = [0, 144], sizes = [16, 16], strides = [1, 1]} : vector<16x192xf32> to vector<16x16xf32>
    %263 = vector.shape_cast %262 : vector<16x16xf32> to vector<2x8x16xf32>
    "tpu.trace_start"() <{level = 10 : i32, message = "bqd,bkd->bqk"}> : () -> ()
    %cst_103 = arith.constant dense<0.000000e+00> : vector<2x8x8xf32>
    %264 = tpu.matmul %259, %261, %cst_103 {dimension_numbers = #tpu.dot_dimension_numbers<[2], [2], [1], [1], [0, 0, 0, 1, 1, 1], [0], [0]>} : vector<2x8x16xf32>, vector<2x8x16xf32>, vector<2x8x8xf32> -> vector<2x8x8xf32>
    "tpu.trace_stop"() : () -> ()
    %cst_104 = arith.constant 2.500000e-01 : f32
    %265 = vector.broadcast %cst_104 : f32 to vector<2x8x8xf32>
    %266 = arith.mulf %264, %265 : vector<2x8x8xf32>
    %cst_105 = arith.constant dense<0xFF800000> : vector<2x8xf32>
    %267 = vector.multi_reduction <maximumf>, %266, %cst_105 [2] : vector<2x8x8xf32> to vector<2x8xf32>
    %268 = vector.shape_cast %267 : vector<2x8xf32> to vector<2x8x1xf32>
    %269 = vector.broadcast %268 : vector<2x8x1xf32> to vector<2x8x8xf32>
    %270 = arith.subf %266, %269 : vector<2x8x8xf32>
    %271 = math.exp %270 : vector<2x8x8xf32>
    %cst_106 = arith.constant dense<0.000000e+00> : vector<2x8xf32>
    %272 = vector.multi_reduction <add>, %271, %cst_106 [2] : vector<2x8x8xf32> to vector<2x8xf32>
    %273 = vector.shape_cast %272 : vector<2x8xf32> to vector<2x8x1xf32>
    %274 = vector.broadcast %273 : vector<2x8x1xf32> to vector<2x8x8xf32>
    %275 = arith.divf %271, %274 : vector<2x8x8xf32>
    "tpu.trace_start"() <{level = 10 : i32, message = "bqk,bkd->bqd"}> : () -> ()
    %cst_107 = arith.constant dense<0.000000e+00> : vector<2x8x16xf32>
    %276 = tpu.matmul %275, %263, %cst_107 {dimension_numbers = #tpu.dot_dimension_numbers<[2], [1], [1], [2], [0, 0, 0, 1, 1, 2], [0], [0]>} : vector<2x8x8xf32>, vector<2x8x16xf32>, vector<2x8x16xf32> -> vector<2x8x16xf32>
    "tpu.trace_stop"() : () -> ()
    %277 = vector.shape_cast %276 : vector<2x8x16xf32> to vector<16x16xf32>
    %278 = vector.extract_strided_slice %237 {offsets = [0, 32], sizes = [16, 16], strides = [1, 1]} : vector<16x192xf32> to vector<16x16xf32>
    %279 = vector.shape_cast %278 : vector<16x16xf32> to vector<2x8x16xf32>
    %280 = vector.extract_strided_slice %237 {offsets = [0, 96], sizes = [16, 16], strides = [1, 1]} : vector<16x192xf32> to vector<16x16xf32>
    %281 = vector.shape_cast %280 : vector<16x16xf32> to vector<2x8x16xf32>
    %282 = vector.extract_strided_slice %237 {offsets = [0, 160], sizes = [16, 16], strides = [1, 1]} : vector<16x192xf32> to vector<16x16xf32>
    %283 = vector.shape_cast %282 : vector<16x16xf32> to vector<2x8x16xf32>
    "tpu.trace_start"() <{level = 10 : i32, message = "bqd,bkd->bqk"}> : () -> ()
    %cst_108 = arith.constant dense<0.000000e+00> : vector<2x8x8xf32>
    %284 = tpu.matmul %279, %281, %cst_108 {dimension_numbers = #tpu.dot_dimension_numbers<[2], [2], [1], [1], [0, 0, 0, 1, 1, 1], [0], [0]>} : vector<2x8x16xf32>, vector<2x8x16xf32>, vector<2x8x8xf32> -> vector<2x8x8xf32>
    "tpu.trace_stop"() : () -> ()
    %cst_109 = arith.constant 2.500000e-01 : f32
    %285 = vector.broadcast %cst_109 : f32 to vector<2x8x8xf32>
    %286 = arith.mulf %284, %285 : vector<2x8x8xf32>
    %cst_110 = arith.constant dense<0xFF800000> : vector<2x8xf32>
    %287 = vector.multi_reduction <maximumf>, %286, %cst_110 [2] : vector<2x8x8xf32> to vector<2x8xf32>
    %288 = vector.shape_cast %287 : vector<2x8xf32> to vector<2x8x1xf32>
    %289 = vector.broadcast %288 : vector<2x8x1xf32> to vector<2x8x8xf32>
    %290 = arith.subf %286, %289 : vector<2x8x8xf32>
    %291 = math.exp %290 : vector<2x8x8xf32>
    %cst_111 = arith.constant dense<0.000000e+00> : vector<2x8xf32>
    %292 = vector.multi_reduction <add>, %291, %cst_111 [2] : vector<2x8x8xf32> to vector<2x8xf32>
    %293 = vector.shape_cast %292 : vector<2x8xf32> to vector<2x8x1xf32>
    %294 = vector.broadcast %293 : vector<2x8x1xf32> to vector<2x8x8xf32>
    %295 = arith.divf %291, %294 : vector<2x8x8xf32>
    "tpu.trace_start"() <{level = 10 : i32, message = "bqk,bkd->bqd"}> : () -> ()
    %cst_112 = arith.constant dense<0.000000e+00> : vector<2x8x16xf32>
    %296 = tpu.matmul %295, %283, %cst_112 {dimension_numbers = #tpu.dot_dimension_numbers<[2], [1], [1], [2], [0, 0, 0, 1, 1, 2], [0], [0]>} : vector<2x8x8xf32>, vector<2x8x16xf32>, vector<2x8x16xf32> -> vector<2x8x16xf32>
    "tpu.trace_stop"() : () -> ()
    %297 = vector.shape_cast %296 : vector<2x8x16xf32> to vector<16x16xf32>
    %298 = vector.extract_strided_slice %237 {offsets = [0, 48], sizes = [16, 16], strides = [1, 1]} : vector<16x192xf32> to vector<16x16xf32>
    %299 = vector.shape_cast %298 : vector<16x16xf32> to vector<2x8x16xf32>
    %300 = vector.extract_strided_slice %237 {offsets = [0, 112], sizes = [16, 16], strides = [1, 1]} : vector<16x192xf32> to vector<16x16xf32>
    %301 = vector.shape_cast %300 : vector<16x16xf32> to vector<2x8x16xf32>
    %302 = vector.extract_strided_slice %237 {offsets = [0, 176], sizes = [16, 16], strides = [1, 1]} : vector<16x192xf32> to vector<16x16xf32>
    %303 = vector.shape_cast %302 : vector<16x16xf32> to vector<2x8x16xf32>
    "tpu.trace_start"() <{level = 10 : i32, message = "bqd,bkd->bqk"}> : () -> ()
    %cst_113 = arith.constant dense<0.000000e+00> : vector<2x8x8xf32>
    %304 = tpu.matmul %299, %301, %cst_113 {dimension_numbers = #tpu.dot_dimension_numbers<[2], [2], [1], [1], [0, 0, 0, 1, 1, 1], [0], [0]>} : vector<2x8x16xf32>, vector<2x8x16xf32>, vector<2x8x8xf32> -> vector<2x8x8xf32>
    "tpu.trace_stop"() : () -> ()
    %cst_114 = arith.constant 2.500000e-01 : f32
    %305 = vector.broadcast %cst_114 : f32 to vector<2x8x8xf32>
    %306 = arith.mulf %304, %305 : vector<2x8x8xf32>
    %cst_115 = arith.constant dense<0xFF800000> : vector<2x8xf32>
    %307 = vector.multi_reduction <maximumf>, %306, %cst_115 [2] : vector<2x8x8xf32> to vector<2x8xf32>
    %308 = vector.shape_cast %307 : vector<2x8xf32> to vector<2x8x1xf32>
    %309 = vector.broadcast %308 : vector<2x8x1xf32> to vector<2x8x8xf32>
    %310 = arith.subf %306, %309 : vector<2x8x8xf32>
    %311 = math.exp %310 : vector<2x8x8xf32>
    %cst_116 = arith.constant dense<0.000000e+00> : vector<2x8xf32>
    %312 = vector.multi_reduction <add>, %311, %cst_116 [2] : vector<2x8x8xf32> to vector<2x8xf32>
    %313 = vector.shape_cast %312 : vector<2x8xf32> to vector<2x8x1xf32>
    %314 = vector.broadcast %313 : vector<2x8x1xf32> to vector<2x8x8xf32>
    %315 = arith.divf %311, %314 : vector<2x8x8xf32>
    "tpu.trace_start"() <{level = 10 : i32, message = "bqk,bkd->bqd"}> : () -> ()
    %cst_117 = arith.constant dense<0.000000e+00> : vector<2x8x16xf32>
    %316 = tpu.matmul %315, %303, %cst_117 {dimension_numbers = #tpu.dot_dimension_numbers<[2], [1], [1], [2], [0, 0, 0, 1, 1, 2], [0], [0]>} : vector<2x8x8xf32>, vector<2x8x16xf32>, vector<2x8x16xf32> -> vector<2x8x16xf32>
    "tpu.trace_stop"() : () -> ()
    %317 = vector.shape_cast %316 : vector<2x8x16xf32> to vector<16x16xf32>
    %318 = tpu.concatenate %257, %277, %297, %317 in 1 : vector<16x16xf32>, vector<16x16xf32>, vector<16x16xf32>, vector<16x16xf32> -> vector<16x64xf32>
    %c2_118 = arith.constant 2 : index
    %c0_119 = arith.constant 0 : index
    %c0_120 = arith.constant 0 : index
    %319 = vector.load %arg9[%c2_118, %c0_119, %c0_120] : memref<4x64x64xf32, #tpu.memory_space<vmem>>, vector<1x64x64xf32>
    %320 = vector.shape_cast %319 : vector<1x64x64xf32> to vector<64x64xf32>
    %cst_121 = arith.constant dense<0.000000e+00> : vector<16x64xf32>
    %321 = tpu.matmul %318, %320, %cst_121 {dimension_numbers = #tpu.dot_dimension_numbers<[1], [0], [0], [1], [0, 0, 1, 1], [], []>} : vector<16x64xf32>, vector<64x64xf32>, vector<16x64xf32> -> vector<16x64xf32>
    %c2_122 = arith.constant 2 : index
    %c0_123 = arith.constant 0 : index
    %c0_124 = arith.constant 0 : index
    %322 = vector.load %arg10[%c2_122, %c0_123, %c0_124] : memref<4x1x64xf32, #tpu.memory_space<vmem>>, vector<1x1x64xf32>
    %323 = vector.shape_cast %322 : vector<1x1x64xf32> to vector<1x64xf32>
    %324 = vector.broadcast %323 : vector<1x64xf32> to vector<16x64xf32>
    %325 = arith.addf %321, %324 : vector<16x64xf32>
    %cst_125 = arith.constant 0.000000e+00 : f32
    %326 = vector.broadcast %cst_125 : f32 to vector<16x64xf32>
    %327 = arith.cmpf ogt, %325, %326 : vector<16x64xf32>
    %cst_126 = arith.constant 2.000000e-01 : f32
    %328 = vector.broadcast %cst_126 : f32 to vector<16x64xf32>
    %329 = arith.mulf %328, %325 : vector<16x64xf32>
    %330 = arith.select %327, %325, %329 : vector<16x64xi1>, vector<16x64xf32>
    %c3 = arith.constant 3 : index
    %c0_127 = arith.constant 0 : index
    %c0_128 = arith.constant 0 : index
    %331 = vector.load %arg7[%c3, %c0_127, %c0_128] : memref<4x64x192xf32, #tpu.memory_space<vmem>>, vector<1x64x192xf32>
    %332 = vector.shape_cast %331 : vector<1x64x192xf32> to vector<64x192xf32>
    %cst_129 = arith.constant dense<0.000000e+00> : vector<16x192xf32>
    %333 = tpu.matmul %330, %332, %cst_129 {dimension_numbers = #tpu.dot_dimension_numbers<[1], [0], [0], [1], [0, 0, 1, 1], [], []>} : vector<16x64xf32>, vector<64x192xf32>, vector<16x192xf32> -> vector<16x192xf32>
    %c3_130 = arith.constant 3 : index
    %c0_131 = arith.constant 0 : index
    %c0_132 = arith.constant 0 : index
    %334 = vector.load %arg8[%c3_130, %c0_131, %c0_132] : memref<4x1x192xf32, #tpu.memory_space<vmem>>, vector<1x1x192xf32>
    %335 = vector.shape_cast %334 : vector<1x1x192xf32> to vector<1x192xf32>
    %336 = vector.broadcast %335 : vector<1x192xf32> to vector<16x192xf32>
    %337 = arith.addf %333, %336 : vector<16x192xf32>
    %338 = vector.extract_strided_slice %337 {offsets = [0, 0], sizes = [16, 16], strides = [1, 1]} : vector<16x192xf32> to vector<16x16xf32>
    %339 = vector.shape_cast %338 : vector<16x16xf32> to vector<2x8x16xf32>
    %340 = vector.extract_strided_slice %337 {offsets = [0, 64], sizes = [16, 16], strides = [1, 1]} : vector<16x192xf32> to vector<16x16xf32>
    %341 = vector.shape_cast %340 : vector<16x16xf32> to vector<2x8x16xf32>
    %342 = vector.extract_strided_slice %337 {offsets = [0, 128], sizes = [16, 16], strides = [1, 1]} : vector<16x192xf32> to vector<16x16xf32>
    %343 = vector.shape_cast %342 : vector<16x16xf32> to vector<2x8x16xf32>
    "tpu.trace_start"() <{level = 10 : i32, message = "bqd,bkd->bqk"}> : () -> ()
    %cst_133 = arith.constant dense<0.000000e+00> : vector<2x8x8xf32>
    %344 = tpu.matmul %339, %341, %cst_133 {dimension_numbers = #tpu.dot_dimension_numbers<[2], [2], [1], [1], [0, 0, 0, 1, 1, 1], [0], [0]>} : vector<2x8x16xf32>, vector<2x8x16xf32>, vector<2x8x8xf32> -> vector<2x8x8xf32>
    "tpu.trace_stop"() : () -> ()
    %cst_134 = arith.constant 2.500000e-01 : f32
    %345 = vector.broadcast %cst_134 : f32 to vector<2x8x8xf32>
    %346 = arith.mulf %344, %345 : vector<2x8x8xf32>
    %cst_135 = arith.constant dense<0xFF800000> : vector<2x8xf32>
    %347 = vector.multi_reduction <maximumf>, %346, %cst_135 [2] : vector<2x8x8xf32> to vector<2x8xf32>
    %348 = vector.shape_cast %347 : vector<2x8xf32> to vector<2x8x1xf32>
    %349 = vector.broadcast %348 : vector<2x8x1xf32> to vector<2x8x8xf32>
    %350 = arith.subf %346, %349 : vector<2x8x8xf32>
    %351 = math.exp %350 : vector<2x8x8xf32>
    %cst_136 = arith.constant dense<0.000000e+00> : vector<2x8xf32>
    %352 = vector.multi_reduction <add>, %351, %cst_136 [2] : vector<2x8x8xf32> to vector<2x8xf32>
    %353 = vector.shape_cast %352 : vector<2x8xf32> to vector<2x8x1xf32>
    %354 = vector.broadcast %353 : vector<2x8x1xf32> to vector<2x8x8xf32>
    %355 = arith.divf %351, %354 : vector<2x8x8xf32>
    "tpu.trace_start"() <{level = 10 : i32, message = "bqk,bkd->bqd"}> : () -> ()
    %cst_137 = arith.constant dense<0.000000e+00> : vector<2x8x16xf32>
    %356 = tpu.matmul %355, %343, %cst_137 {dimension_numbers = #tpu.dot_dimension_numbers<[2], [1], [1], [2], [0, 0, 0, 1, 1, 2], [0], [0]>} : vector<2x8x8xf32>, vector<2x8x16xf32>, vector<2x8x16xf32> -> vector<2x8x16xf32>
    "tpu.trace_stop"() : () -> ()
    %357 = vector.shape_cast %356 : vector<2x8x16xf32> to vector<16x16xf32>
    %358 = vector.extract_strided_slice %337 {offsets = [0, 16], sizes = [16, 16], strides = [1, 1]} : vector<16x192xf32> to vector<16x16xf32>
    %359 = vector.shape_cast %358 : vector<16x16xf32> to vector<2x8x16xf32>
    %360 = vector.extract_strided_slice %337 {offsets = [0, 80], sizes = [16, 16], strides = [1, 1]} : vector<16x192xf32> to vector<16x16xf32>
    %361 = vector.shape_cast %360 : vector<16x16xf32> to vector<2x8x16xf32>
    %362 = vector.extract_strided_slice %337 {offsets = [0, 144], sizes = [16, 16], strides = [1, 1]} : vector<16x192xf32> to vector<16x16xf32>
    %363 = vector.shape_cast %362 : vector<16x16xf32> to vector<2x8x16xf32>
    "tpu.trace_start"() <{level = 10 : i32, message = "bqd,bkd->bqk"}> : () -> ()
    %cst_138 = arith.constant dense<0.000000e+00> : vector<2x8x8xf32>
    %364 = tpu.matmul %359, %361, %cst_138 {dimension_numbers = #tpu.dot_dimension_numbers<[2], [2], [1], [1], [0, 0, 0, 1, 1, 1], [0], [0]>} : vector<2x8x16xf32>, vector<2x8x16xf32>, vector<2x8x8xf32> -> vector<2x8x8xf32>
    "tpu.trace_stop"() : () -> ()
    %cst_139 = arith.constant 2.500000e-01 : f32
    %365 = vector.broadcast %cst_139 : f32 to vector<2x8x8xf32>
    %366 = arith.mulf %364, %365 : vector<2x8x8xf32>
    %cst_140 = arith.constant dense<0xFF800000> : vector<2x8xf32>
    %367 = vector.multi_reduction <maximumf>, %366, %cst_140 [2] : vector<2x8x8xf32> to vector<2x8xf32>
    %368 = vector.shape_cast %367 : vector<2x8xf32> to vector<2x8x1xf32>
    %369 = vector.broadcast %368 : vector<2x8x1xf32> to vector<2x8x8xf32>
    %370 = arith.subf %366, %369 : vector<2x8x8xf32>
    %371 = math.exp %370 : vector<2x8x8xf32>
    %cst_141 = arith.constant dense<0.000000e+00> : vector<2x8xf32>
    %372 = vector.multi_reduction <add>, %371, %cst_141 [2] : vector<2x8x8xf32> to vector<2x8xf32>
    %373 = vector.shape_cast %372 : vector<2x8xf32> to vector<2x8x1xf32>
    %374 = vector.broadcast %373 : vector<2x8x1xf32> to vector<2x8x8xf32>
    %375 = arith.divf %371, %374 : vector<2x8x8xf32>
    "tpu.trace_start"() <{level = 10 : i32, message = "bqk,bkd->bqd"}> : () -> ()
    %cst_142 = arith.constant dense<0.000000e+00> : vector<2x8x16xf32>
    %376 = tpu.matmul %375, %363, %cst_142 {dimension_numbers = #tpu.dot_dimension_numbers<[2], [1], [1], [2], [0, 0, 0, 1, 1, 2], [0], [0]>} : vector<2x8x8xf32>, vector<2x8x16xf32>, vector<2x8x16xf32> -> vector<2x8x16xf32>
    "tpu.trace_stop"() : () -> ()
    %377 = vector.shape_cast %376 : vector<2x8x16xf32> to vector<16x16xf32>
    %378 = vector.extract_strided_slice %337 {offsets = [0, 32], sizes = [16, 16], strides = [1, 1]} : vector<16x192xf32> to vector<16x16xf32>
    %379 = vector.shape_cast %378 : vector<16x16xf32> to vector<2x8x16xf32>
    %380 = vector.extract_strided_slice %337 {offsets = [0, 96], sizes = [16, 16], strides = [1, 1]} : vector<16x192xf32> to vector<16x16xf32>
    %381 = vector.shape_cast %380 : vector<16x16xf32> to vector<2x8x16xf32>
    %382 = vector.extract_strided_slice %337 {offsets = [0, 160], sizes = [16, 16], strides = [1, 1]} : vector<16x192xf32> to vector<16x16xf32>
    %383 = vector.shape_cast %382 : vector<16x16xf32> to vector<2x8x16xf32>
    "tpu.trace_start"() <{level = 10 : i32, message = "bqd,bkd->bqk"}> : () -> ()
    %cst_143 = arith.constant dense<0.000000e+00> : vector<2x8x8xf32>
    %384 = tpu.matmul %379, %381, %cst_143 {dimension_numbers = #tpu.dot_dimension_numbers<[2], [2], [1], [1], [0, 0, 0, 1, 1, 1], [0], [0]>} : vector<2x8x16xf32>, vector<2x8x16xf32>, vector<2x8x8xf32> -> vector<2x8x8xf32>
    "tpu.trace_stop"() : () -> ()
    %cst_144 = arith.constant 2.500000e-01 : f32
    %385 = vector.broadcast %cst_144 : f32 to vector<2x8x8xf32>
    %386 = arith.mulf %384, %385 : vector<2x8x8xf32>
    %cst_145 = arith.constant dense<0xFF800000> : vector<2x8xf32>
    %387 = vector.multi_reduction <maximumf>, %386, %cst_145 [2] : vector<2x8x8xf32> to vector<2x8xf32>
    %388 = vector.shape_cast %387 : vector<2x8xf32> to vector<2x8x1xf32>
    %389 = vector.broadcast %388 : vector<2x8x1xf32> to vector<2x8x8xf32>
    %390 = arith.subf %386, %389 : vector<2x8x8xf32>
    %391 = math.exp %390 : vector<2x8x8xf32>
    %cst_146 = arith.constant dense<0.000000e+00> : vector<2x8xf32>
    %392 = vector.multi_reduction <add>, %391, %cst_146 [2] : vector<2x8x8xf32> to vector<2x8xf32>
    %393 = vector.shape_cast %392 : vector<2x8xf32> to vector<2x8x1xf32>
    %394 = vector.broadcast %393 : vector<2x8x1xf32> to vector<2x8x8xf32>
    %395 = arith.divf %391, %394 : vector<2x8x8xf32>
    "tpu.trace_start"() <{level = 10 : i32, message = "bqk,bkd->bqd"}> : () -> ()
    %cst_147 = arith.constant dense<0.000000e+00> : vector<2x8x16xf32>
    %396 = tpu.matmul %395, %383, %cst_147 {dimension_numbers = #tpu.dot_dimension_numbers<[2], [1], [1], [2], [0, 0, 0, 1, 1, 2], [0], [0]>} : vector<2x8x8xf32>, vector<2x8x16xf32>, vector<2x8x16xf32> -> vector<2x8x16xf32>
    "tpu.trace_stop"() : () -> ()
    %397 = vector.shape_cast %396 : vector<2x8x16xf32> to vector<16x16xf32>
    %398 = vector.extract_strided_slice %337 {offsets = [0, 48], sizes = [16, 16], strides = [1, 1]} : vector<16x192xf32> to vector<16x16xf32>
    %399 = vector.shape_cast %398 : vector<16x16xf32> to vector<2x8x16xf32>
    %400 = vector.extract_strided_slice %337 {offsets = [0, 112], sizes = [16, 16], strides = [1, 1]} : vector<16x192xf32> to vector<16x16xf32>
    %401 = vector.shape_cast %400 : vector<16x16xf32> to vector<2x8x16xf32>
    %402 = vector.extract_strided_slice %337 {offsets = [0, 176], sizes = [16, 16], strides = [1, 1]} : vector<16x192xf32> to vector<16x16xf32>
    %403 = vector.shape_cast %402 : vector<16x16xf32> to vector<2x8x16xf32>
    "tpu.trace_start"() <{level = 10 : i32, message = "bqd,bkd->bqk"}> : () -> ()
    %cst_148 = arith.constant dense<0.000000e+00> : vector<2x8x8xf32>
    %404 = tpu.matmul %399, %401, %cst_148 {dimension_numbers = #tpu.dot_dimension_numbers<[2], [2], [1], [1], [0, 0, 0, 1, 1, 1], [0], [0]>} : vector<2x8x16xf32>, vector<2x8x16xf32>, vector<2x8x8xf32> -> vector<2x8x8xf32>
    "tpu.trace_stop"() : () -> ()
    %cst_149 = arith.constant 2.500000e-01 : f32
    %405 = vector.broadcast %cst_149 : f32 to vector<2x8x8xf32>
    %406 = arith.mulf %404, %405 : vector<2x8x8xf32>
    %cst_150 = arith.constant dense<0xFF800000> : vector<2x8xf32>
    %407 = vector.multi_reduction <maximumf>, %406, %cst_150 [2] : vector<2x8x8xf32> to vector<2x8xf32>
    %408 = vector.shape_cast %407 : vector<2x8xf32> to vector<2x8x1xf32>
    %409 = vector.broadcast %408 : vector<2x8x1xf32> to vector<2x8x8xf32>
    %410 = arith.subf %406, %409 : vector<2x8x8xf32>
    %411 = math.exp %410 : vector<2x8x8xf32>
    %cst_151 = arith.constant dense<0.000000e+00> : vector<2x8xf32>
    %412 = vector.multi_reduction <add>, %411, %cst_151 [2] : vector<2x8x8xf32> to vector<2x8xf32>
    %413 = vector.shape_cast %412 : vector<2x8xf32> to vector<2x8x1xf32>
    %414 = vector.broadcast %413 : vector<2x8x1xf32> to vector<2x8x8xf32>
    %415 = arith.divf %411, %414 : vector<2x8x8xf32>
    "tpu.trace_start"() <{level = 10 : i32, message = "bqk,bkd->bqd"}> : () -> ()
    %cst_152 = arith.constant dense<0.000000e+00> : vector<2x8x16xf32>
    %416 = tpu.matmul %415, %403, %cst_152 {dimension_numbers = #tpu.dot_dimension_numbers<[2], [1], [1], [2], [0, 0, 0, 1, 1, 2], [0], [0]>} : vector<2x8x8xf32>, vector<2x8x16xf32>, vector<2x8x16xf32> -> vector<2x8x16xf32>
    "tpu.trace_stop"() : () -> ()
    %417 = vector.shape_cast %416 : vector<2x8x16xf32> to vector<16x16xf32>
    %418 = tpu.concatenate %357, %377, %397, %417 in 1 : vector<16x16xf32>, vector<16x16xf32>, vector<16x16xf32>, vector<16x16xf32> -> vector<16x64xf32>
    %c3_153 = arith.constant 3 : index
    %c0_154 = arith.constant 0 : index
    %c0_155 = arith.constant 0 : index
    %419 = vector.load %arg9[%c3_153, %c0_154, %c0_155] : memref<4x64x64xf32, #tpu.memory_space<vmem>>, vector<1x64x64xf32>
    %420 = vector.shape_cast %419 : vector<1x64x64xf32> to vector<64x64xf32>
    %cst_156 = arith.constant dense<0.000000e+00> : vector<16x64xf32>
    %421 = tpu.matmul %418, %420, %cst_156 {dimension_numbers = #tpu.dot_dimension_numbers<[1], [0], [0], [1], [0, 0, 1, 1], [], []>} : vector<16x64xf32>, vector<64x64xf32>, vector<16x64xf32> -> vector<16x64xf32>
    %c3_157 = arith.constant 3 : index
    %c0_158 = arith.constant 0 : index
    %c0_159 = arith.constant 0 : index
    %422 = vector.load %arg10[%c3_157, %c0_158, %c0_159] : memref<4x1x64xf32, #tpu.memory_space<vmem>>, vector<1x1x64xf32>
    %423 = vector.shape_cast %422 : vector<1x1x64xf32> to vector<1x64xf32>
    %424 = vector.broadcast %423 : vector<1x64xf32> to vector<16x64xf32>
    %425 = arith.addf %421, %424 : vector<16x64xf32>
    %cst_160 = arith.constant 0.000000e+00 : f32
    %426 = vector.broadcast %cst_160 : f32 to vector<16x64xf32>
    %427 = arith.cmpf ogt, %425, %426 : vector<16x64xf32>
    %cst_161 = arith.constant 2.000000e-01 : f32
    %428 = vector.broadcast %cst_161 : f32 to vector<16x64xf32>
    %429 = arith.mulf %428, %425 : vector<16x64xf32>
    %430 = arith.select %427, %425, %429 : vector<16x64xi1>, vector<16x64xf32>
    %431 = vector.shape_cast %430 : vector<16x64xf32> to vector<2x8x64xf32>
    %cst_162 = arith.constant dense<0xFF800000> : vector<2x8xf32>
    %432 = vector.multi_reduction <maximumf>, %431, %cst_162 [2] : vector<2x8x64xf32> to vector<2x8xf32>
    %c0_163 = arith.constant 0 : index
    %c0_164 = arith.constant 0 : index
    %433 = vector.load %arg11[%c0_163, %c0_164] : memref<1x8xf32, #tpu.memory_space<vmem>>, vector<1x8xf32>
    %434 = vector.broadcast %433 : vector<1x8xf32> to vector<2x8xf32>
    %435 = arith.mulf %432, %434 : vector<2x8xf32>
    %cst_165 = arith.constant dense<0.000000e+00> : vector<2xf32>
    %436 = vector.multi_reduction <add>, %435, %cst_165 [1] : vector<2x8xf32> to vector<2xf32>
    %437 = vector.shape_cast %436 : vector<2xf32> to vector<2x1xf32>
    %c0_166 = arith.constant 0 : index
    %c0_167 = arith.constant 0 : index
    %438 = vector.load %arg12[%c0_166, %c0_167] : memref<1x1xf32, #tpu.memory_space<vmem>>, vector<1x1xf32>
    %439 = vector.broadcast %438 : vector<1x1xf32> to vector<2x1xf32>
    %440 = arith.addf %437, %439 : vector<2x1xf32>
    %cst_168 = arith.constant 0.000000e+00 : f32
    %441 = vector.broadcast %cst_168 : f32 to vector<2x1xf32>
    %442 = arith.subf %441, %440 : vector<2x1xf32>
    %443 = math.exp %442 : vector<2x1xf32>
    %cst_169 = arith.constant 1.000000e+00 : f32
    %444 = vector.broadcast %cst_169 : f32 to vector<2x1xf32>
    %445 = arith.addf %444, %443 : vector<2x1xf32>
    %cst_170 = arith.constant 1.000000e+00 : f32
    %446 = vector.broadcast %cst_170 : f32 to vector<2x1xf32>
    %447 = arith.divf %446, %445 : vector<2x1xf32>
    %c0_171 = arith.constant 0 : index
    %c0_172 = arith.constant 0 : index
    %448 = vector.load %arg13[%c0_171, %c0_172] : memref<2x1xf32, #tpu.memory_space<vmem>>, vector<2x1xf32>
    tpu.vector_store %arg13[%c0_171, %c0_172], %447 {strides = array<i32>} : memref<2x1xf32, #tpu.memory_space<vmem>>, vector<2x1xf32>,
    return
  }
}

</mosaic_0001>

<bundles_post_ra>
// kernel: tpu_custom_call.1
= control target key start
LH: loop header
LB: loop body
LE: loop exit
PB: predicated region body
PF: predicated region fallthrough
CT: control target
= control target key end

     0   :  { %s8673_s0 = inlined_call_operand.vmem [shape: f32[16,8], index: 0, kind: input, shape index: {}]   ;;  %s8674_s1 = inlined_call_operand.hbm [shape: f32[8,16], index: 1, kind: input, shape index: {}]   ;;  %s8675_s2 = inlined_call_operand.hbm [shape: f32[1,16], index: 2, kind: input, shape index: {}]   ;;  %s8676_s3 = inlined_call_operand.hbm [shape: f32[16,32], index: 3, kind: input, shape index: {}]   ;;  %s8677_s4 = inlined_call_operand.hbm [shape: f32[1,32], index: 4, kind: input, shape index: {}]   ;;  %s8678_s5 = inlined_call_operand.vmem [shape: f32[32,64], index: 5, kind: input, shape index: {}]   ;;  %s8679_s6 = inlined_call_operand.hbm [shape: f32[1,64], index: 6, kind: input, shape index: {}]   ;;  %s8680_s7 = inlined_call_operand.hbm [shape: f32[4,64,192], index: 7, kind: input, shape index: {}]   ;;  %s8681_s8 = inlined_call_operand.vmem [shape: f32[4,1,192], index: 8, kind: input, shape index: {}]   ;;  %s8682_s9 = inlined_call_operand.hbm [shape: f32[4,64,64], index: 9, kind: input, shape index: {}]   ;;  %s8683_s10 = inlined_call_operand.vmem [shape: f32[4,1,64], index: 10, kind: input, shape index: {}]   ;;  %s8684_s11 = inlined_call_operand.vmem [shape: f32[1,8], index: 11, kind: input, shape index: {}]   ;;  %s8685_s12 = inlined_call_operand.<no memory space> [shape: f32[1,1], index: 12, kind: input, shape index: {}]   ;;  %s8686_s13 = inlined_call_operand.vmem [shape: f32[2,1], index: 13, kind: output, shape index: {}]  }
   0x1   :  { %v18_v0 = vstv %s8685_s12 }
   0x2   :  { %19 = vst [vmem:[#allocation2] sm:$0x1] %v18_v0 }
   0x3   :  { %20 = vsyncpa [#allocation4], 0 }
   0x4   :  { %21 = vsyncpa [#allocation6], 0 }
   0x5   :  { %22 = vsyncpa [#allocation9], 0 }
   0x6   :  { %23 = vsyncpa [#allocation12], 0  ;;  %s7803_s27 = smov [#allocation5]   ;;  %s7804_s29 = smov [#allocation8]  }
   0x7   :  { %s42_s28 = sshll.u32 %s7803_s27, 4  ;;  %s64_s30 = sshll.u32 %s7804_s29, 4  ;;  %s43_s28 = int_to_ptr.vmem [resolvable:$true] %s42_s28  ;;  %s65_s30 = int_to_ptr.vmem [resolvable:$true] %s64_s30 }
   0x8   :  { %s7663_s14 = scalar_lea.vmem %s43_s28, 16  ;;  %s7667_s15 = scalar_lea.vmem %s43_s28, 32 }
   0x9   :  { %p7664_p0 = scmp.ne.s32.totalorder %s43_s28, %s7663_s14  ;;  %p7668_p1 = scmp.lt.s32.totalorder %s43_s28, %s43_s28 }
   0xa   :  { %p7669_p2 = scmp.lt.s32.totalorder %s7667_s15, %s7663_s14 }
   0xc   :  { %p7670_p3 = por %p7669_p2, %p7668_p1 }
   0xe   :  { %p7671_p4 = pnand %p7670_p3, %p7664_p0 }
  0x10   :  { %7674 = shalt.err (!%p7671_p4)
}
  0x11   :  { %45 = dma.hbm_to_vmem [thread:$0]  %s8675_s2, 16, %s43_s28, [#allocation6]  }
  0x12   :  { %s7683_s17 = scalar_lea.vmem %s65_s30, 16  ;;  %s7687_s18 = scalar_lea.vmem %s65_s30, 32 }
  0x13   :  { %p7684_p5 = scmp.ne.s32.totalorder %s65_s30, %s7683_s17  ;;  %p7688_p6 = scmp.lt.s32.totalorder %s65_s30, %s65_s30 }
  0x14   :  { %p7689_p7 = scmp.lt.s32.totalorder %s7687_s18, %s7683_s17 }
  0x16   :  { %p7690_p8 = por %p7689_p7, %p7688_p6 }
  0x18   :  { %p7691_p9 = pnand %p7690_p8, %p7684_p5 }
  0x1a   :  { %7694 = shalt.err (!%p7691_p9)
}
  0x1b   :  { %67 = dma.hbm_to_vmem [thread:$0]  %s8677_s4, 16, %s65_s30, [#allocation9]  }
  0x1c   :  { %s7805_s21 = smov [#allocation11]  }
  0x1d   :  { %s85_s22 = sshll.u32 %s7805_s21, 4  ;;  %s86_s22 = int_to_ptr.vmem [resolvable:$true] %s85_s22 }
  0x1e   :  { %s7703_s23 = scalar_lea.vmem %s86_s22, 8192  ;;  %p7708_p11 = scmp.lt.s32.totalorder %s86_s22, %s86_s22 }
  0x1f   :  { %p7704_p10 = scmp.ne.s32.totalorder %s86_s22, %s7703_s23  ;;  %p7709_p12 = scmp.lt.s32.totalorder %s7703_s23, %s7703_s23 }
  0x21   :  { %p7710_p13 = por %p7709_p12, %p7708_p11 }
  0x23   :  { %p7711_p0 = pnand %p7710_p13, %p7704_p10 }
  0x25   :  { %7714 = shalt.err (!%p7711_p0)
}
  0x26   :  { %s7806_s2 = smov 256   ;;  %s7807_s24 = smov 16  }
  0x27   :  { %91 = dma.hbm_to_vmem [thread:$0]  %s8680_s7, 8192, %s86_s22, [#allocation12], %s7806_s2, %s7806_s2, %s7807_s24  }
  0x28   :  { %s7808_s27 = smov [#allocation3]   ;;  %s7809_s4 = smov [#allocation7]  }
  0x29   :  { %s32_s28 = sshll.u32 %s7808_s27, 4  ;;  %s51_s29 = sshll.u32 %s7809_s4, 4  ;;  %s33_s28 = int_to_ptr.vmem [resolvable:$true] %s32_s28  ;;  %s52_s29 = int_to_ptr.vmem [resolvable:$true] %s51_s29 }
  0x2a   :  { %s7723_s30 = scalar_lea.vmem %s33_s28, 128  ;;  %p7728_p2 = scmp.lt.s32.totalorder %s33_s28, %s33_s28 }
  0x2b   :  { %p7724_p1 = scmp.ne.s32.totalorder %s33_s28, %s7723_s30  ;;  %p7729_p3 = scmp.lt.s32.totalorder %s7723_s30, %s7723_s30 }
  0x2d   :  { %p7730_p4 = por %p7729_p3, %p7728_p2 }
  0x2f   :  { %p7731_p5 = pnand %p7730_p4, %p7724_p1 }
  0x31   :  { %7734 = shalt.err (!%p7731_p5)
}
  0x32   :  { %35 = dma.hbm_to_vmem [thread:$0]  %s8674_s1, 128, %s33_s28, [#allocation4]  }
  0x33   :  { %s7743_s12 = scalar_lea.vmem %s52_s29, 256  ;;  %p7748_p7 = scmp.lt.s32.totalorder %s52_s29, %s52_s29 }
  0x34   :  { %p7744_p6 = scmp.ne.s32.totalorder %s52_s29, %s7743_s12  ;;  %p7749_p8 = scmp.lt.s32.totalorder %s7743_s12, %s7743_s12 }
  0x36   :  { %p7750_p9 = por %p7749_p8, %p7748_p7 }
  0x38   :  { %p7751_p10 = pnand %p7750_p9, %p7744_p6 }
  0x3a   :  { %7754 = shalt.err (!%p7751_p10)
}
  0x3b   :  { %s7810_s7 = smov 128   ;;  %s7811_s16 = smov 8  }
  0x3c   :  { %57 = dma.hbm_to_vmem [thread:$0]  %s8676_s3, 256, %s52_s29, [#allocation6], %s7810_s7, %s7810_s7, %s7811_s16  }
  0x3d   :  { %s7812_s19 = smov [#allocation10]   ;;  %s7813_s21 = smov [#allocation13]  }
  0x3e   :  { %s76_s20 = sshll.u32 %s7812_s19, 4  ;;  %s99_s22 = sshll.u32 %s7813_s21, 4  ;;  %s77_s20 = int_to_ptr.vmem [resolvable:$true] %s76_s20  ;;  %s100_s22 = int_to_ptr.vmem [resolvable:$true] %s99_s22 }
  0x3f   :  { %s7763_s1 = scalar_lea.vmem %s77_s20, 16  ;;  %s7767_s23 = scalar_lea.vmem %s77_s20, 32 }
  0x40   :  { %p7764_p11 = scmp.ne.s32.totalorder %s77_s20, %s7763_s1  ;;  %p7768_p12 = scmp.lt.s32.totalorder %s77_s20, %s77_s20 }
  0x41   :  { %p7769_p13 = scmp.lt.s32.totalorder %s7767_s23, %s7763_s1 }
  0x43   :  { %p7770_p0 = por %p7769_p13, %p7768_p12 }
  0x45   :  { %p7771_p1 = pnand %p7770_p0, %p7764_p11 }
  0x47   :  { %7774 = shalt.err (!%p7771_p1)
}
  0x48   :  { %79 = dma.hbm_to_vmem [thread:$0]  %s8679_s6, 16, %s77_s20, [#allocation9]  }
  0x49   :  { %s7783_s26 = scalar_lea.vmem %s100_s22, 4096  ;;  %p7788_p3 = scmp.lt.s32.totalorder %s100_s22, %s100_s22 }
  0x4a   :  { %p7784_p2 = scmp.ne.s32.totalorder %s100_s22, %s7783_s26  ;;  %p7789_p4 = scmp.lt.s32.totalorder %s7783_s26, %s7783_s26 }
  0x4c   :  { %p7790_p5 = por %p7789_p4, %p7788_p3 }
  0x4e   :  { %p7791_p6 = pnand %p7790_p5, %p7784_p2 }
  0x50   :  { %7794 = shalt.err (!%p7791_p6)
}
  0x51   :  { %105 = dma.hbm_to_vmem [thread:$0]  %s8682_s9, 4096, %s100_s22, [#allocation12], %s7810_s7, %s7810_s7, %s7811_s16  }
  0x52   :  { %7795 = dma.done.wait [#allocation4], 128  }
  0x53   :  { %7796 = vsyncadd [#allocation4], 4294967168 }
  0x54   :  { %7797 = dma.done.wait [#allocation6], 272  }
  0x55   :  { %7798 = vsyncadd [#allocation6], 4294967024 }
  0x56   :  { %7799 = dma.done.wait [#allocation9], 32  }
  0x57   :  { %7800 = vsyncadd [#allocation9], 4294967264 }
  0x58   :  { %7801 = dma.done.wait [#allocation12], 12288  }
  0x59   :  { %7802 = vsyncadd [#allocation12], 4294955008  ;;  %vm143_vm0 = vcmask 64512   ;;  %v135_v1 = vld [vmem:[#allocation3] sm:$0xff]  ;;  %v232_v4 = vld [vmem:[#allocation7 + $0x8] sm:$0xff]  ;;  %vm240_vm3 = vcmask 130048   ;;  %v445_v54 = vlaneseq }
  0x5a   :  { %v133_v2 = vld [vmem:[%s8673_s0] sm:$0xff]  ;;  %v134_v3 = vld [vmem:[%s8673_s0 + $0x8] sm:$0xff]  ;;  %7082 = vmatprep.subr.mxu0 %v135_v1  ;;  %7087 = vmatprep.subr.mxu1 %v232_v4  ;;  %v331_v15 = vld [vmem:[%s8678_s5 + $0x18] sm:$0xff]  ;;  %vm339_vm6 = vcmask 261120   ;;  %v7814_v44 = vmov 0.0   ;;  %vm455_vm8 = vcmask 523264  }
  0x5b   :  { %7084 = vmatprep.mubr.msk.f32.mxu0 %vm143_vm0, %v133_v2  ;;  %7083 = vmatpush3.msra.mxu0 %v135_v1  ;;  %v231_v5 = vld [vmem:[#allocation7] sm:$0xff]  ;;  %v6768_v6 = vld [vmem:[#allocation5] ss:$0 sm:$0xff]  ;;  %v328_v18 = vld [vmem:[%s8678_s5] sm:$0xff]  ;;  %v7949_v55 = vshrl.u32 %v445_v54, 7  ;;  %vm7815_vm10 = vmmov 0  }
  0x5c   :  { %7085 = vmatmul.mubr.msk.f32.vlgmr.msra.gmra.mxu0 %vm143_vm0, %v134_v3  ;;  %7088 = vmatpush3.msra.mxu1 %v232_v4  ;;  %v330_v16 = vld [vmem:[%s8678_s5 + $0x10] sm:$0xff]  ;;  %v329_v17 = vld [vmem:[%s8678_s5 + $0x8] sm:$0xff]  ;;  %v6771_v20 = vld [vmem:[#allocation8] ss:$0 sm:$0xff]  ;;  %s7816_s18 = smov 64   ;;  %s7817_s19 = smov 48  }
  0x5d   :  { %7089 = vmatprep.subr.mxu1 %v231_v5  ;;  %v442_v19 = vld [vmem:[#allocation11 + $0x78] sm:$0xff]  ;;  %v441_v28 = vld [vmem:[#allocation11 + $0x70] sm:$0xff]  ;;  %v440_v30 = vld [vmem:[#allocation11 + $0x68] sm:$0xff]  ;;  %7105 = vmatprep.subr.mxu0 %v7814_v44  ;;  %v7956_v56 = vsub.s32 0, %v7949_v55  ;;  %v7971_v0 = vsub.s32 1, %v7949_v55  ;;  %s7818_s20 = smov 112  }
  0x5e   :  { %7090 = vmatpush3.msra.mxu1 %v231_v5  ;;  %v439_v31 = vld [vmem:[#allocation11 + $0x60] sm:$0xff]  ;;  %v438_v32 = vld [vmem:[#allocation11 + $0x58] sm:$0xff]  ;;  %v437_v33 = vld [vmem:[#allocation11 + $0x50] sm:$0xff]  ;;  %7107 = vmatprep.mubr.msk.f32.mxu0 %vm7815_vm10, %v7814_v44  ;;  %s7819_s21 = smov 32   ;;  %s7820_s22 = smov 96   ;;  %vm1889_vm11 = vcmask 392192  }
  0x5f   :  { %7094 = vmatprep.subr.mxu1 %v331_v15  ;;  %v436_v34 = vld [vmem:[#allocation11 + $0x48] sm:$0xff]  ;;  %v435_v35 = vld [vmem:[#allocation11 + $0x40] sm:$0xff]  ;;  %v434_v36 = vld [vmem:[#allocation11 + $0x38] sm:$0xff]  ;;  %s7821_s1 = smov 80  }
  0x60   :  { %v433_v37 = vld [vmem:[#allocation11 + $0x30] sm:$0xff]  ;;  %v432_v38 = vld [vmem:[#allocation11 + $0x28] sm:$0xff]  ;;  %v431_v39 = vld [vmem:[#allocation11 + $0x20] sm:$0xff] }
  0x61   :  { %v430_v40 = vld [vmem:[#allocation11 + $0x18] sm:$0xff]  ;;  %v429_v41 = vld [vmem:[#allocation11 + $0x10] sm:$0xff]  ;;  %v428_v42 = vld [vmem:[#allocation11 + $0x8] sm:$0xff] }
  0x62   :  { %v427_v43 = vld [vmem:[#allocation11] sm:$0xff]  ;;  %v6774_v46 = vld [vmem:[#allocation10] ss:$0 sm:$0xff] }
  0x63   :  { %v443_v57 = vld [vmem:[%s8681_s8] sm:$0x3] }
  0x64   :  { %v448_v58 = vrot.slane %v443_v57, %v7956_v56  ;;  %v452_v2 = vrot.slane %v443_v57, %v7971_v0 }
 0x11c   :  { %v7086_v7 = vpop.f32.mrf.mxu0 }
 0x11d   :  { %v222_v8 = vadd.f32 %v7086_v7, %v6768_v6 }
 0x11e   :  { %v216_v9 = vpop.f32.mrf.mxu0 }
 0x11f   :  { %v217_v10 = vadd.f32 %v6768_v6, %v216_v9  ;;  %v228_v11 = vmul.f32 0.2, %v222_v8  ;;  %vm226_vm1 = vcmp.gt.f32.partialorder %v222_v8, 0.0 }
 0x121   :  { %vm225_vm2 = vcmp.gt.f32.partialorder %v217_v10, 0.0  ;;  %v227_v12 = vmul.f32 0.2, %v217_v10  ;;  %v230_v14 = vsel %vm226_vm1, %v222_v8, %v228_v11 }
 0x123   :  { %v229_v13 = vsel %vm225_vm2, %v217_v10, %v227_v12 }
 0x124   :  { %7091 = vmatprep.mubr.msk.f32.mxu1 %vm240_vm3, %v229_v13 }
 0x125   :  { %7092 = vmatmul.mubr.msk.f32.vlgmr.msra.gmra.mxu1 %vm240_vm3, %v230_v14 }
 0x126   :  { %7095 = vmatpush3.msra.mxu1 %v331_v15 }
 0x127   :  { %7096 = vmatprep.subr.mxu1 %v330_v16 }
 0x128   :  { %7097 = vmatpush3.msra.mxu1 %v330_v16 }
 0x129   :  { %7098 = vmatprep.subr.mxu1 %v329_v17 }
 0x12a   :  { %7099 = vmatpush3.msra.mxu1 %v329_v17 }
 0x12b   :  { %7100 = vmatprep.subr.mxu1 %v328_v18 }
 0x12c   :  { %7101 = vmatpush3.msra.mxu1 %v328_v18 }
 0x12d   :  { %478 = vmatprep.subr.mxu1 %v442_v19 }
 0x1e5   :  { %v7093_v21 = vpop.f32.mrf.mxu1 }
 0x1e6   :  { %v319_v22 = vadd.f32 %v7093_v21, %v6771_v20 }
 0x1e7   :  { %v313_v23 = vpop.f32.mrf.mxu1 }
 0x1e8   :  { %v314_v24 = vadd.f32 %v6771_v20, %v313_v23  ;;  %v325_v25 = vmul.f32 0.2, %v319_v22  ;;  %vm323_vm4 = vcmp.gt.f32.partialorder %v319_v22, 0.0 }
 0x1ea   :  { %vm322_vm5 = vcmp.gt.f32.partialorder %v314_v24, 0.0  ;;  %v324_v26 = vmul.f32 0.2, %v314_v24  ;;  %v327_v29 = vsel %vm323_vm4, %v319_v22, %v325_v25  ;;  %vm6737_vm4 = vcmask 1041409  }
 0x1ec   :  { %v326_v27 = vsel %vm322_vm5, %v314_v24, %v324_v26  ;;  %vm6740_vm5 = vcmask 58368  }
 0x1ed   :  { %7102 = vmatprep.mubr.msk.f32.mxu1 %vm339_vm6, %v326_v27 }
 0x1ee   :  { %7103 = vmatmul.mubr.msk.f32.vlgmr.msra.gmra.mxu1 %vm339_vm6, %v327_v29 }
 0x1ef   :  { %479 = vmatpush1.msra.mxu1 %v441_v28  ;;  %526 = vmatprep.mubr.f32.mxu1 %v7814_v44 }
 0x1f0   :  { %480 = vmatprep.subr.mxu1 %v440_v30 }
 0x1f1   :  { %481 = vmatpush1.msra.mxu1 %v439_v31 }
 0x1f2   :  { %482 = vmatprep.subr.mxu1 %v438_v32 }
 0x1f3   :  { %483 = vmatpush1.msra.mxu1 %v437_v33 }
 0x1f4   :  { %484 = vmatprep.subr.mxu1 %v436_v34 }
 0x1f5   :  { %485 = vmatpush1.msra.mxu1 %v435_v35 }
 0x1f6   :  { %486 = vmatprep.subr.mxu1 %v434_v36 }
 0x1f7   :  { %487 = vmatpush1.msra.mxu1 %v433_v37 }
 0x1f8   :  { %488 = vmatprep.subr.mxu1 %v432_v38 }
 0x1f9   :  { %489 = vmatpush1.msra.mxu1 %v431_v39 }
 0x1fa   :  { %490 = vmatprep.subr.mxu1 %v430_v40 }
 0x1fb   :  { %491 = vmatpush1.msra.mxu1 %v429_v41 }
 0x1fc   :  { %492 = vmatprep.subr.mxu1 %v428_v42 }
 0x1fd   :  { %493 = vmatpush1.msra.mxu1 %v427_v43 }
 0x1fe   :  { %7125 = vmatprep.subr.mxu1 %v7814_v44 }
 0x2ae   :  { %v7104_v45 = vpop.f32.mrf.mxu1 }
 0x2af   :  { %v418_v48 = vadd.f32 %v7104_v45, %v6774_v46 }
 0x2b0   :  { %v412_v47 = vpop.f32.mrf.mxu1 }
 0x2b1   :  { %v413_v49 = vadd.f32 %v6774_v46, %v412_v47  ;;  %v424_v51 = vmul.f32 0.2, %v418_v48  ;;  %vm422_vm9 = vcmp.gt.f32.partialorder %v418_v48, 0.0 }
 0x2b3   :  { %vm421_vm7 = vcmp.gt.f32.partialorder %v413_v49, 0.0  ;;  %v423_v50 = vmul.f32 0.2, %v413_v49  ;;  %v426_v53 = vsel %vm422_vm9, %v418_v48, %v424_v51 }
 0x2b5   :  { %v425_v52 = vsel %vm421_vm7, %v413_v49, %v423_v50 }
 0x2b6   :  { %6777 = vmatmul.mubr.msk.f32.vlgmr.msra.gmra.mxu1 %vm455_vm8, %v425_v52 }
 0x2b7   :  { %532 = vmatprep.mubr.f32.mxu1 %v7814_v44 }
 0x2ba   :  { %6778 = vmatmul.mubr.msk.f32.gmra.mxu1 %vm455_vm8, %v426_v53 }
 0x2bb   :  { %7127 = vmatprep.mubr.msk.f32.mxu1 %vm7815_vm10, %v7814_v44 }
 0x376   :  { %v528_v59 = vpop.f32.mrf.mxu1 }
 0x377   :  { %v7962_v60 = vadd.f32 %v528_v59, %v448_v58 }
 0x378   :  { %v530_v61 = vpop.f32.mrf.mxu1 }
 0x379   :  { %540 = vrot.lane.b32.xlu0 %v7962_v60, %s7816_s18  ;;  %v7982_v4 = vadd.f32 %v530_v61, %v452_v2 }
 0x37a   :  { %v534_v62 = vpop.f32.mrf.mxu1 }
 0x37b   :  { %v7966_v63 = vadd.f32 %v534_v62, %v448_v58 }
 0x37c   :  { %v536_v28 = vpop.f32.mrf.mxu1 }
 0x37d   :  { %617 = vrot.lane.b32.xlu0 %v7966_v63, %s7816_s18  ;;  %v8007_v31 = vadd.f32 %v536_v28, %v452_v2 }
 0x3eb   :  { %v541_v1 = vpop.permute.xlu0 %540 }
 0x3ec   :  { %7106 = vmatpush3.xpose.msk.msra.mxu0 %vm240_vm3, %v541_v1 }
 0x3ed   :  { %7110 = vmatprep.subr.mxu0 %v7814_v44 }
 0x3ef   :  { %7108 = vmatmul.mubr.msk.f32.vlgmr.msra.gmra.mxu0 %vm240_vm3, %v7962_v60  ;;  %v618_v3 = vpop.permute.xlu0 %617 }
 0x3f0   :  { %7111 = vmatpush3.xpose.msk.msra.mxu0 %vm240_vm3, %v618_v3  ;;  %7112 = vmatprep.mubr.msk.f32.mxu0 %vm7815_vm10, %v7814_v44 }
 0x3f1   :  { %7115 = vmatprep.subr.mxu0 %v7814_v44 }
 0x3f3   :  { %7113 = vmatmul.mubr.msk.f32.vlgmr.msra.gmra.mxu0 %vm240_vm3, %v7966_v63 }
 0x3f4   :  { %7116 = vmatpush3.msra.mxu0 %v7982_v4  ;;  %7117 = vmatprep.mubr.msk.f32.mxu0 %vm7815_vm10, %v7814_v44 }
 0x3f5   :  { %7120 = vmatprep.subr.mxu0 %v7814_v44 }
 0x4af   :  { %v612_v5 = vpop.f32.mrf.mxu0 }
 0x4b0   :  { %v693_v6 = vmul.f32 0.25, %v612_v5 }
 0x4b1   :  { %v7109_v7 = vpop.f32.mrf.mxu0 }
 0x4b2   :  { %v695_v8 = vsel %vm143_vm0, %v693_v6, -inf }
 0x4b3   :  { %696 = vmax.xlane.f32.xlu1 %v695_v8  ;;  %v689_v9 = vpop.f32.mrf.mxu0 }
 0x4b4   :  { %v694_v10 = vmul.f32 0.25, %v689_v9 }
 0x4b5   :  { %v7114_v11 = vpop.f32.mrf.mxu0 }
 0x4b6   :  { %v698_v12 = vsel %vm143_vm0, %v694_v10, -inf }
 0x4b7   :  { %699 = vmax.xlane.f32.xlu1 %v698_v12 }
 0x4c8   :  { %865 = vrot.lane.b32.xlu1 %v7962_v60, %s7817_s19 }
 0x4cc   :  { %943 = vrot.lane.b32.xlu1 %v7966_v63, %s7817_s19 }
 0x4d0   :  { %863 = vrot.lane.b32.xlu1 %v7962_v60, %s7818_s20 }
 0x53c   :  { %v697_v13 = vpop.xlane.xlu1 %696 }
 0x53d   :  { %v701_v14 = vsub.f32 %v693_v6, %v697_v13 }
 0x53f   :  { %v703_v15 = vmul.f32 1.442695, %v701_v14 }
 0x540   :  { %v700_v16 = vpop.xlane.xlu1 %699 }
 0x541   :  { %7523 = vpow2.f32 %v703_v15  ;;  %v702_v17 = vsub.f32 %v694_v10, %v700_v16 }
 0x543   :  { %v705_v18 = vmul.f32 1.442695, %v702_v17 }
 0x544   :  { %v866_v19 = vpop.permute.xlu1 %865 }
 0x545   :  { %7525 = vpow2.f32 %v705_v18  ;;  %7126 = vmatpush3.xpose.msk.msra.mxu1 %vm240_vm3, %v866_v19 }
 0x546   :  { %7135 = vmatprep.subr.mxu1 %v7814_v44 }
 0x548   :  { %v944_v20 = vpop.permute.xlu1 %943 }
 0x54c   :  { %v864_v21 = vpop.permute.xlu1 %863 }
 0x54d   :  { %7128 = vmatmul.mubr.msk.f32.vlgmr.msra.gmra.mxu1 %vm240_vm3, %v864_v21 }
 0x54e   :  { %v7524_v22 = vpop.eup %7523  ;;  %7137 = vmatprep.mubr.msk.f32.mxu1 %vm7815_vm10, %v7814_v44 }
 0x54f   :  { %v707_v23 = vsel %vm143_vm0, %v7524_v22, 0.0 }
 0x550   :  { %708 = vadd.xlane.f32.xlu0 %v707_v23 }
 0x552   :  { %v7526_v24 = vpop.eup %7525 }
 0x553   :  { %v710_v25 = vsel %vm143_vm0, %v7526_v24, 0.0 }
 0x554   :  { %711 = vadd.xlane.f32.xlu1 %v710_v25 }
 0x565   :  { %941 = vrot.lane.b32.xlu1 %v7966_v63, %s7818_s20 }
 0x5d9   :  { %v709_v26 = vpop.xlane.xlu0 %708 }
 0x5da   :  { %7527 = vrcp.f32 %v709_v26 }
 0x5dd   :  { %v712_v27 = vpop.xlane.xlu1 %711 }
 0x5de   :  { %7529 = vrcp.f32 %v712_v27 }
 0x5e1   :  { %v942_v34 = vpop.permute.xlu1 %941 }
 0x5e7   :  { %v7528_v29 = vpop.eup %7527 }
 0x5e8   :  { %v714_v30 = vmul.f32 %v7528_v29, %v7524_v22 }
 0x5ea   :  { %7118 = vmatmul.mubr.msk.f32.vlgmr.msra.gmra.mxu0 %vm143_vm0, %v714_v30 }
 0x5eb   :  { %v7530_v32 = vpop.eup %7529  ;;  %7121 = vmatpush3.msra.mxu0 %v8007_v31  ;;  %7122 = vmatprep.mubr.msk.f32.mxu0 %vm7815_vm10, %v7814_v44 }
 0x5ec   :  { %7130 = vmatprep.subr.mxu0 %v7814_v44  ;;  %v716_v33 = vmul.f32 %v7530_v32, %v7526_v24 }
 0x5ee   :  { %7123 = vmatmul.mubr.msk.f32.vlgmr.msra.gmra.mxu0 %vm143_vm0, %v716_v33 }
 0x5ef   :  { %7131 = vmatpush3.xpose.msk.msra.mxu0 %vm240_vm3, %v944_v20  ;;  %7132 = vmatprep.mubr.msk.f32.mxu0 %vm7815_vm10, %v7814_v44 }
 0x5f0   :  { %7140 = vmatprep.subr.mxu0 %v7814_v44 }
 0x5f2   :  { %7133 = vmatmul.mubr.msk.f32.vlgmr.msra.gmra.mxu0 %vm240_vm3, %v942_v34 }
 0x5f3   :  { %7142 = vmatprep.mubr.msk.f32.mxu0 %vm7815_vm10, %v7814_v44 }
 0x60d   :  { %v937_v35 = vpop.f32.mrf.mxu1 }
 0x60e   :  { %v1019_v36 = vmul.f32 0.25, %v937_v35 }
 0x60f   :  { %v7129_v37 = vpop.f32.mrf.mxu1 }
 0x610   :  { %v1021_v38 = vsel %vm143_vm0, %v1019_v36, -inf }
 0x611   :  { %1022 = vmax.xlane.f32.xlu0 %v1021_v38 }
 0x69a   :  { %v1023_v39 = vpop.xlane.xlu0 %1022 }
 0x69b   :  { %v1027_v40 = vsub.f32 %v1019_v36, %v1023_v39 }
 0x69d   :  { %v1029_v41 = vmul.f32 1.442695, %v1027_v40 }
 0x69f   :  { %7531 = vpow2.f32 %v1029_v41 }
 0x6aa   :  { %v8023_v42 = vpop.f32.mrf.mxu0 }
 0x6ac   :  { %v7532_v43 = vpop.eup %7531  ;;  %v7119_v45 = vpop.f32.mrf.mxu0 }
 0x6ad   :  { %v1033_v46 = vsel %vm143_vm0, %v7532_v43, 0.0 }
 0x6ae   :  { %v8026_v47 = vpop.f32.mrf.mxu0  ;;  %1034 = vadd.xlane.f32.xlu0 %v1033_v46 }
 0x6b0   :  { %v7124_v48 = vpop.f32.mrf.mxu0 }
 0x6b2   :  { %v1015_v49 = vpop.f32.mrf.mxu0 }
 0x6b3   :  { %v1020_v50 = vmul.f32 0.25, %v1015_v49 }
 0x6b4   :  { %v7134_v51 = vpop.f32.mrf.mxu0 }
 0x6b5   :  { %v1024_v52 = vsel %vm143_vm0, %v1020_v50, -inf }
 0x6b6   :  { %1025 = vmax.xlane.f32.xlu1 %v1024_v52 }
 0x6c4   :  { %1044 = vrot.lane.b32.xlu0 %v7982_v4, %s7818_s20 }
 0x6c7   :  { %1277 = vrot.lane.b32.xlu1 %v7966_v63, %s7819_s21 }
 0x6c8   :  { %1121 = vrot.lane.b32.xlu0 %v8007_v31, %s7818_s20 }
 0x6cc   :  { %1199 = vrot.lane.b32.xlu0 %v7962_v60, %s7819_s21 }
 0x737   :  { %v1035_v53 = vpop.xlane.xlu0 %1034 }
 0x738   :  { %7533 = vrcp.f32 %v1035_v53 }
 0x73b   :  { %v1045_v57 = vpop.permute.xlu0 %1044 }
 0x73c   :  { %7136 = vmatpush3.msra.mxu1 %v1045_v57 }
 0x73d   :  { %7145 = vmatprep.subr.mxu1 %v7814_v44 }
 0x73f   :  { %v1026_v58 = vpop.xlane.xlu1 %1025  ;;  %v1122_v59 = vpop.permute.xlu0 %1121 }
 0x740   :  { %v1028_v61 = vsub.f32 %v1020_v50, %v1026_v58  ;;  %7141 = vmatpush3.msra.mxu0 %v1122_v59 }
 0x741   :  { %7150 = vmatprep.subr.mxu0 %v7814_v44 }
 0x742   :  { %v1031_v62 = vmul.f32 1.442695, %v1028_v61 }
 0x743   :  { %v1200_v3 = vpop.permute.xlu0 %1199  ;;  %v1278_v11 = vpop.permute.xlu1 %1277 }
 0x744   :  { %7535 = vpow2.f32 %v1031_v62 }
 0x745   :  { %v7534_v1 = vpop.eup %7533 }
 0x746   :  { %v1040_v2 = vmul.f32 %v7534_v1, %v7532_v43 }
 0x748   :  { %7138 = vmatmul.mubr.msk.f32.vlgmr.msra.gmra.mxu1 %vm143_vm0, %v1040_v2 }
 0x749   :  { %7146 = vmatpush3.xpose.msk.msra.mxu1 %vm240_vm3, %v1200_v3  ;;  %7147 = vmatprep.mubr.msk.f32.mxu1 %vm7815_vm10, %v7814_v44 }
 0x74a   :  { %7155 = vmatprep.subr.mxu1 %v7814_v44 }
 0x751   :  { %v7536_v5 = vpop.eup %7535 }
 0x752   :  { %v1036_v6 = vsel %vm143_vm0, %v7536_v5, 0.0 }
 0x753   :  { %1037 = vadd.xlane.f32.xlu0 %v1036_v6 }
 0x769   :  { %1197 = vrot.lane.b32.xlu0 %v7962_v60, %s7820_s22 }
 0x76d   :  { %1275 = vrot.lane.b32.xlu0 %v7966_v63, %s7820_s22 }
 0x7dc   :  { %v1038_v7 = vpop.xlane.xlu0 %1037 }
 0x7dd   :  { %7537 = vrcp.f32 %v1038_v7 }
 0x7e0   :  { %v1198_v8 = vpop.permute.xlu0 %1197 }
 0x7e1   :  { %7148 = vmatmul.mubr.msk.f32.vlgmr.msra.gmra.mxu1 %vm240_vm3, %v1198_v8 }
 0x7e2   :  { %7157 = vmatprep.mubr.msk.f32.mxu1 %vm7815_vm10, %v7814_v44 }
 0x7e4   :  { %v1276_v12 = vpop.permute.xlu0 %1275 }
 0x7ea   :  { %v7538_v9 = vpop.eup %7537 }
 0x7eb   :  { %v1042_v10 = vmul.f32 %v7538_v9, %v7536_v5 }
 0x7ed   :  { %7143 = vmatmul.mubr.msk.f32.vlgmr.msra.gmra.mxu0 %vm143_vm0, %v1042_v10 }
 0x7ee   :  { %7151 = vmatpush3.xpose.msk.msra.mxu0 %vm240_vm3, %v1278_v11  ;;  %7152 = vmatprep.mubr.msk.f32.mxu0 %vm7815_vm10, %v7814_v44 }
 0x7ef   :  { %7160 = vmatprep.subr.mxu0 %v7814_v44 }
 0x7f1   :  { %7153 = vmatmul.mubr.msk.f32.vlgmr.msra.gmra.mxu0 %vm240_vm3, %v1276_v12 }
 0x7f2   :  { %7162 = vmatprep.mubr.msk.f32.mxu0 %vm7815_vm10, %v7814_v44 }
 0x808   :  { %v8060_v13 = vpop.f32.mrf.mxu1 }
 0x80a   :  { %v7139_v14 = vpop.f32.mrf.mxu1 }
 0x8a1   :  { %v1271_v15 = vpop.f32.mrf.mxu1 }
 0x8a2   :  { %v1353_v16 = vmul.f32 0.25, %v1271_v15 }
 0x8a3   :  { %v7149_v17 = vpop.f32.mrf.mxu1 }
 0x8a4   :  { %v1355_v18 = vsel %vm143_vm0, %v1353_v16, -inf }
 0x8a5   :  { %1356 = vmax.xlane.f32.xlu0 %v1355_v18 }
 0x8ad   :  { %v8063_v19 = vpop.f32.mrf.mxu0 }
 0x8af   :  { %v7144_v20 = vpop.f32.mrf.mxu0 }
 0x8b1   :  { %v1349_v21 = vpop.f32.mrf.mxu0 }
 0x8b2   :  { %v1354_v22 = vmul.f32 0.25, %v1349_v21 }
 0x8b3   :  { %v7154_v23 = vpop.f32.mrf.mxu0 }
 0x8b4   :  { %v1358_v24 = vsel %vm143_vm0, %v1354_v22, -inf  ;;  %v1896_v23 = vld [vmem:[#allocation13 + $0x20] sm:$0xff] }
 0x8b5   :  { %1359 = vmax.xlane.f32.xlu1 %v1358_v24  ;;  %v1895_v24 = vld [vmem:[#allocation13 + $0x18] sm:$0xff] }
 0x8c6   :  { %1453 = vrot.lane.b32.xlu1 %v8007_v31, %s7820_s22 }
 0x8ca   :  { %1531 = vrot.lane.b32.xlu1 %v7962_v60, %s7807_s24 }
 0x8ce   :  { %1529 = vrot.lane.b32.xlu1 %v7962_v60, %s7821_s1 }
 0x92e   :  { %v1357_v25 = vpop.xlane.xlu0 %1356 }
 0x92f   :  { %v1361_v26 = vsub.f32 %v1353_v16, %v1357_v25  ;;  %v1894_v25 = vld [vmem:[#allocation13 + $0x10] sm:$0xff] }
 0x931   :  { %v1363_v27 = vmul.f32 1.442695, %v1361_v26  ;;  %v1893_v26 = vld [vmem:[#allocation13 + $0x8] sm:$0xff] }
 0x933   :  { %7539 = vpow2.f32 %v1363_v27 }
 0x93e   :  { %v1360_v28 = vpop.xlane.xlu1 %1359 }
 0x93f   :  { %v1362_v33 = vsub.f32 %v1354_v22, %v1360_v28  ;;  %v1897_v22 = vld [vmem:[#allocation13 + $0x28] sm:$0xff]  ;;  %v1892_v28 = vld [vmem:[#allocation13] sm:$0xff] }
 0x940   :  { %v7540_v29 = vpop.eup %7539 }
 0x941   :  { %v1367_v30 = vsel %vm143_vm0, %v7540_v29, 0.0  ;;  %v1365_v34 = vmul.f32 1.442695, %v1362_v33  ;;  %v2008_v33 = vld [vmem:[#allocation11 + $0xe8] sm:$0xff] }
 0x942   :  { %v1454_v32 = vpop.permute.xlu1 %1453  ;;  %1368 = vadd.xlane.f32.xlu0 %v1367_v30  ;;  %v2010_v30 = vld [vmem:[#allocation11 + $0xf8] sm:$0xff] }
 0x943   :  { %7161 = vmatpush3.msra.mxu0 %v1454_v32  ;;  %7541 = vpow2.f32 %v1365_v34  ;;  %v2009_v32 = vld [vmem:[#allocation11 + $0xf0] sm:$0xff]  ;;  %v2007_v34 = vld [vmem:[#allocation11 + $0xe0] sm:$0xff] }
 0x944   :  { %7170 = vmatprep.subr.mxu0 %v7814_v44 }
 0x946   :  { %v1532_v39 = vpop.permute.xlu1 %1531 }
 0x94a   :  { %v1530_v41 = vpop.permute.xlu1 %1529 }
 0x950   :  { %v7542_v60 = vpop.eup %7541 }
 0x951   :  { %v1370_v35 = vsel %vm143_vm0, %v7542_v60, 0.0 }
 0x958   :  { %1377 = vrot.lane.b32.xlu0 %v7982_v4, %s7820_s22 }
 0x977   :  { %1371 = vadd.xlane.f32.xlu0 %v1370_v35  ;;  %v2005_v35 = vld [vmem:[#allocation11 + $0xd0] sm:$0xff] }
 0x98d   :  { %1609 = vrot.lane.b32.xlu0 %v7966_v63, %s7807_s24 }
 0x991   :  { %1607 = vrot.lane.b32.xlu0 %v7966_v63, %s7821_s1 }
 0x9cb   :  { %v1369_v36 = vpop.xlane.xlu0 %1368 }
 0x9cc   :  { %7543 = vrcp.f32 %v1369_v36  ;;  %v2004_v36 = vld [vmem:[#allocation11 + $0xc8] sm:$0xff] }
 0x9cf   :  { %v1378_v37 = vpop.permute.xlu0 %1377 }
 0x9d0   :  { %7156 = vmatpush3.msra.mxu1 %v1378_v37  ;;  %v2003_v37 = vld [vmem:[#allocation11 + $0xc0] sm:$0xff] }
 0x9d1   :  { %7165 = vmatprep.subr.mxu1 %v7814_v44 }
 0x9d9   :  { %v7544_v38 = vpop.eup %7543 }
 0x9da   :  { %v1374_v40 = vmul.f32 %v7544_v38, %v7540_v29 }
 0x9dc   :  { %7158 = vmatmul.mubr.msk.f32.vlgmr.msra.gmra.mxu1 %vm143_vm0, %v1374_v40 }
 0x9dd   :  { %7166 = vmatpush3.xpose.msk.msra.mxu1 %vm240_vm3, %v1532_v39  ;;  %7167 = vmatprep.mubr.msk.f32.mxu1 %vm7815_vm10, %v7814_v44 }
 0x9de   :  { %7175 = vmatprep.subr.mxu1 %v7814_v44 }
 0x9e0   :  { %7168 = vmatmul.mubr.msk.f32.vlgmr.msra.gmra.mxu1 %vm240_vm3, %v1530_v41 }
 0x9e1   :  { %7177 = vmatprep.mubr.msk.f32.mxu1 %vm7815_vm10, %v7814_v44 }
 0xa00   :  { %v1372_v63 = vpop.xlane.xlu0 %1371 }
 0xa01   :  { %7545 = vrcp.f32 %v1372_v63 }
 0xa04   :  { %v1610_v45 = vpop.permute.xlu0 %1609 }
 0xa08   :  { %v1608_v48 = vpop.permute.xlu0 %1607 }
 0xa0e   :  { %v7546_v43 = vpop.eup %7545 }
 0xa0f   :  { %v1376_v46 = vmul.f32 %v7546_v43, %v7542_v60  ;;  %v2006_v60 = vld [vmem:[#allocation11 + $0xd8] sm:$0xff] }
 0xa11   :  { %7163 = vmatmul.mubr.msk.f32.vlgmr.msra.gmra.mxu0 %vm143_vm0, %v1376_v46 }
 0xa12   :  { %7171 = vmatpush3.xpose.msk.msra.mxu0 %vm240_vm3, %v1610_v45  ;;  %7172 = vmatprep.mubr.msk.f32.mxu0 %vm7815_vm10, %v7814_v44 }
 0xa13   :  { %7180 = vmatprep.subr.mxu0 %v7814_v44 }
 0xa15   :  { %7173 = vmatmul.mubr.msk.f32.vlgmr.msra.gmra.mxu0 %vm240_vm3, %v1608_v48 }
 0xa16   :  { %7182 = vmatprep.mubr.msk.f32.mxu0 %vm7815_vm10, %v7814_v44 }
 0xa9c   :  { %v1449_v49 = vpop.f32.mrf.mxu1 }
 0xa9e   :  { %v7159_v50 = vpop.f32.mrf.mxu1 }
 0xaa0   :  { %v1603_v51 = vpop.f32.mrf.mxu1 }
 0xaa1   :  { %v1685_v52 = vmul.f32 0.25, %v1603_v51 }
 0xaa2   :  { %v7169_v53 = vpop.f32.mrf.mxu1 }
 0xaa3   :  { %v1687_v57 = vsel %vm143_vm0, %v1685_v52, -inf }
 0xaa4   :  { %1688 = vmax.xlane.f32.xlu1 %v1687_v57  ;;  %v2001_v57 = vld [vmem:[#allocation11 + $0xb0] sm:$0xff] }
 0xad1   :  { %v1525_v58 = vpop.f32.mrf.mxu0 }
 0xad3   :  { %v7164_v59 = vpop.f32.mrf.mxu0 }
 0xad4   :  { %v1999_v59 = vld [vmem:[#allocation11 + $0xa0] sm:$0xff] }
 0xad5   :  { %v1681_v61 = vpop.f32.mrf.mxu0 }
 0xad6   :  { %v1686_v62 = vmul.f32 0.25, %v1681_v61  ;;  %v1998_v61 = vld [vmem:[#allocation11 + $0x98] sm:$0xff] }
 0xad7   :  { %v7174_v1 = vpop.f32.mrf.mxu0 }
 0xad8   :  { %v1690_v2 = vsel %vm143_vm0, %v1686_v62, -inf  ;;  %v1995_v1 = vld [vmem:[#allocation11 + $0x80] sm:$0xff] }
 0xad9   :  { %1691 = vmax.xlane.f32.xlu0 %v1690_v2 }
 0xb2d   :  { %v1689_v3 = vpop.xlane.xlu1 %1688 }
 0xb2e   :  { %v1693_v5 = vsub.f32 %v1685_v52, %v1689_v3  ;;  %v6803_v3 = vld [vmem:[%s8683_s10] ss:$0 sm:$0xff] }
 0xb30   :  { %v1695_v6 = vmul.f32 1.442695, %v1693_v5 }
 0xb32   :  { %7547 = vpow2.f32 %v1695_v6 }
 0xb3f   :  { %v7548_v7 = vpop.eup %7547 }
 0xb40   :  { %v1699_v8 = vsel %vm143_vm0, %v7548_v7, 0.0 }
 0xb41   :  { %1700 = vadd.xlane.f32.xlu0 %v1699_v8 }
 0xb57   :  { %1709 = vrot.lane.b32.xlu0 %v7982_v4, %s7821_s1 }
 0xb5b   :  { %1865 = vrot.lane.b32.xlu0 %v8063_v19, %s7807_s24 }
 0xb5f   :  { %1873 = vrot.lane.b32.xlu0 %v1525_v58, %s7819_s21  ;;  %v2000_v58 = vld [vmem:[#allocation11 + $0xa8] sm:$0xff] }
 0xb62   :  { %v1692_v9 = vpop.xlane.xlu0 %1691 }
 0xb63   :  { %v1694_v10 = vsub.f32 %v1686_v62, %v1692_v9  ;;  %v1996_v62 = vld [vmem:[#allocation11 + $0x88] sm:$0xff] }
 0xb65   :  { %v1697_v11 = vmul.f32 1.442695, %v1694_v10 }
 0xb67   :  { %7549 = vpow2.f32 %v1697_v11 }
 0xb74   :  { %v7550_v12 = vpop.eup %7549 }
 0xb75   :  { %v1702_v14 = vsel %vm143_vm0, %v7550_v12, 0.0 }
 0xb76   :  { %1703 = vadd.xlane.f32.xlu1 %v1702_v14 }
 0xb87   :  { %1785 = vrot.lane.b32.xlu1 %v8007_v31, %s7821_s1  ;;  %v1899_v31 = vld [vmem:[#allocation13 + $0x38] sm:$0xff] }
 0xb8b   :  { %1863 = vrot.lane.b32.xlu1 %v8060_v13, %s7807_s24  ;;  %v1898_v13 = vld [vmem:[#allocation13 + $0x30] sm:$0xff] }
 0xb8f   :  { %1871 = vrot.lane.b32.xlu1 %v1449_v49, %s7819_s21 }
 0xbca   :  { %v1701_v4 = vpop.xlane.xlu0 %1700 }
 0xbcb   :  { %7551 = vrcp.f32 %v1701_v4 }
 0xbce   :  { %v1710_v15 = vpop.permute.xlu0 %1709 }
 0xbcf   :  { %7176 = vmatpush3.msra.mxu1 %v1710_v15 }
 0xbd0   :  { %7185 = vmatprep.subr.mxu1 %v1899_v31 }
 0xbd2   :  { %v1866_v48 = vpop.permute.xlu0 %1865 }
 0xbd3   :  { %v1886_v50 = vsel %vm240_vm3, %v8026_v47, %v1866_v48  ;;  %v1997_v47 = vld [vmem:[#allocation11 + $0x90] sm:$0xff] }
 0xbd6   :  { %v1874_v49 = vpop.permute.xlu0 %1873 }
 0xbd7   :  { %v1888_v51 = vsel %vm339_vm6, %v1886_v50, %v1874_v49 }
 0xbd8   :  { %v7552_v16 = vpop.eup %7551 }
 0xbd9   :  { %v1706_v17 = vmul.f32 %v7552_v16, %v7548_v7 }
 0xbdb   :  { %7178 = vmatmul.mubr.msk.f32.vlgmr.msra.gmra.mxu1 %vm143_vm0, %v1706_v17 }
 0xbdc   :  { %7186 = vmatpush3.msra.mxu1 %v1899_v31 }
 0xbdd   :  { %7187 = vmatprep.subr.mxu1 %v1898_v13 }
 0xbde   :  { %7188 = vmatpush3.msra.mxu1 %v1898_v13 }
 0xbdf   :  { %7189 = vmatprep.subr.mxu1 %v1897_v22 }
 0xbe0   :  { %7190 = vmatpush3.msra.mxu1 %v1897_v22 }
 0xbe1   :  { %7191 = vmatprep.subr.mxu1 %v1896_v23 }
 0xbe2   :  { %7192 = vmatpush3.msra.mxu1 %v1896_v23 }
 0xbe3   :  { %7193 = vmatprep.subr.mxu1 %v1895_v24 }
 0xbe4   :  { %7194 = vmatpush3.msra.mxu1 %v1895_v24 }
 0xbe5   :  { %7195 = vmatprep.subr.mxu1 %v1894_v25 }
 0xbe6   :  { %7196 = vmatpush3.msra.mxu1 %v1894_v25 }
 0xbe7   :  { %7197 = vmatprep.subr.mxu1 %v1893_v26 }
 0xbe8   :  { %7198 = vmatpush3.msra.mxu1 %v1893_v26 }
 0xbe9   :  { %7199 = vmatprep.subr.mxu1 %v1892_v28 }
 0xbea   :  { %7200 = vmatpush3.msra.mxu1 %v1892_v28 }
 0xbeb   :  { %7204 = vmatprep.subr.mxu1 %v7814_v44 }
 0xbff   :  { %v1704_v18 = vpop.xlane.xlu1 %1703 }
 0xc00   :  { %7553 = vrcp.f32 %v1704_v18 }
 0xc03   :  { %v1786_v19 = vpop.permute.xlu1 %1785 }
 0xc04   :  { %7181 = vmatpush3.msra.mxu0 %v1786_v19 }
 0xc05   :  { %2046 = vmatprep.subr.mxu0 %v2010_v30 }
 0xc07   :  { %v1864_v40 = vpop.permute.xlu1 %1863 }
 0xc08   :  { %v1885_v63 = vsel %vm240_vm3, %v8023_v42, %v1864_v40  ;;  %v2002_v42 = vld [vmem:[#allocation11 + $0xb8] sm:$0xff] }
 0xc0b   :  { %v1872_v41 = vpop.permute.xlu1 %1871 }
 0xc0c   :  { %v1887_v43 = vsel %vm339_vm6, %v1885_v63, %v1872_v41 }
 0xc0d   :  { %v7554_v20 = vpop.eup %7553 }
 0xc0e   :  { %v1708_v21 = vmul.f32 %v7554_v20, %v7550_v12  ;;  %v6806_v12 = vld [vmem:[%s8681_s8 + $0x2] sm:$0x3] }
 0xc0f   :  { %v2017_v14 = vrot.slane %v6806_v12, %v7956_v56  ;;  %v2021_v4 = vrot.slane %v6806_v12, %v7971_v0 }
 0xc10   :  { %7183 = vmatmul.mubr.msk.f32.vlgmr.msra.gmra.mxu0 %vm143_vm0, %v1708_v21 }
 0xc11   :  { %2094 = vmatprep.mubr.f32.mxu0 %v7814_v44  ;;  %2047 = vmatpush1.msra.mxu0 %v2009_v32 }
 0xc12   :  { %2048 = vmatprep.subr.mxu0 %v2008_v33 }
 0xc13   :  { %2049 = vmatpush1.msra.mxu0 %v2007_v34 }
 0xc14   :  { %2050 = vmatprep.subr.mxu0 %v2006_v60 }
 0xc15   :  { %2051 = vmatpush1.msra.mxu0 %v2005_v35 }
 0xc16   :  { %2052 = vmatprep.subr.mxu0 %v2004_v36 }
 0xc17   :  { %2053 = vmatpush1.msra.mxu0 %v2003_v37 }
 0xc18   :  { %2054 = vmatprep.subr.mxu0 %v2002_v42 }
 0xc19   :  { %2055 = vmatpush1.msra.mxu0 %v2001_v57 }
 0xc1a   :  { %2056 = vmatprep.subr.mxu0 %v2000_v58 }
 0xc1b   :  { %2057 = vmatpush1.msra.mxu0 %v1999_v59 }
 0xc1c   :  { %2058 = vmatprep.subr.mxu0 %v1998_v61 }
 0xc1d   :  { %2059 = vmatpush1.msra.mxu0 %v1997_v47 }
 0xc1e   :  { %2060 = vmatprep.subr.mxu0 %v1996_v62 }
 0xc1f   :  { %2061 = vmatpush1.msra.mxu0 %v1995_v1 }
 0xc20   :  { %7214 = vmatprep.subr.mxu0 %v7814_v44 }
 0xc9b   :  { %v1781_v27 = vpop.f32.mrf.mxu1 }
 0xc9c   :  { %1879 = vrot.lane.b32.xlu1 %v1781_v27, %s7817_s19 }
 0xc9d   :  { %v7179_v29 = vpop.f32.mrf.mxu1 }
 0xcd0   :  { %v1857_v38 = vpop.f32.mrf.mxu0 }
 0xcd1   :  { %1881 = vrot.lane.b32.xlu0 %v1857_v38, %s7817_s19 }
 0xcd2   :  { %v7184_v39 = vpop.f32.mrf.mxu0 }
 0xd0e   :  { %v1880_v45 = vpop.permute.xlu1 %1879 }
 0xd0f   :  { %v1890_v46 = vsel %vm1889_vm11, %v1887_v43, %v1880_v45 }
 0xd10   :  { %7201 = vmatprep.mubr.msk.f32.mxu1 %vm455_vm8, %v1890_v46 }
 0xd43   :  { %v1882_v52 = vpop.permute.xlu0 %1881 }
 0xd44   :  { %v1891_v53 = vsel %vm1889_vm11, %v1888_v51, %v1882_v52 }
 0xd45   :  { %7202 = vmatmul.mubr.msk.f32.vlgmr.msra.gmra.mxu1 %vm455_vm8, %v1891_v53 }
 0xd46   :  { %7206 = vmatprep.mubr.msk.f32.mxu1 %vm7815_vm10, %v7814_v44 }
 0xe05   :  { %v7203_v2 = vpop.f32.mrf.mxu1 }
 0xe06   :  { %v1985_v6 = vadd.f32 %v7203_v2, %v6803_v3 }
 0xe07   :  { %v1979_v5 = vpop.f32.mrf.mxu1 }
 0xe08   :  { %v1980_v7 = vadd.f32 %v6803_v3, %v1979_v5  ;;  %v1991_v9 = vmul.f32 0.2, %v1985_v6  ;;  %vm1989_vm13 = vcmp.gt.f32.partialorder %v1985_v6, 0.0 }
 0xe0a   :  { %vm1988_vm12 = vcmp.gt.f32.partialorder %v1980_v7, 0.0  ;;  %v1990_v8 = vmul.f32 0.2, %v1980_v7  ;;  %v1993_v11 = vsel %vm1989_vm13, %v1985_v6, %v1991_v9 }
 0xe0c   :  { %v1992_v10 = vsel %vm1988_vm12, %v1980_v7, %v1990_v8 }
 0xe0d   :  { %6807 = vmatmul.mubr.msk.f32.vlgmr.msra.gmra.mxu0 %vm455_vm8, %v1992_v10 }
 0xe0e   :  { %2100 = vmatprep.mubr.f32.mxu0 %v7814_v44 }
 0xe11   :  { %6808 = vmatmul.mubr.msk.f32.gmra.mxu0 %vm455_vm8, %v1993_v11 }
 0xe12   :  { %7216 = vmatprep.mubr.msk.f32.mxu0 %vm7815_vm10, %v7814_v44 }
 0xecd   :  { %v2096_v15 = vpop.f32.mrf.mxu0 }
 0xece   :  { %v8144_v16 = vadd.f32 %v2096_v15, %v2017_v14 }
 0xecf   :  { %v2098_v17 = vpop.f32.mrf.mxu0 }
 0xed0   :  { %v8146_v18 = vadd.f32 %v2098_v17, %v2021_v4  ;;  %2108 = vrot.lane.b32.xlu1 %v8144_v16, %s7816_s18 }
 0xed1   :  { %v2102_v19 = vpop.f32.mrf.mxu0 }
 0xed2   :  { %v8150_v20 = vadd.f32 %v2102_v19, %v2017_v14  ;;  %7215 = vmatpush3.msra.mxu0 %v8146_v18 }
 0xed3   :  { %7224 = vmatprep.subr.mxu0 %v7814_v44  ;;  %v2104_v31 = vpop.f32.mrf.mxu0 }
 0xed4   :  { %2185 = vrot.lane.b32.xlu0 %v8150_v20, %s7816_s18  ;;  %v8164_v22 = vadd.f32 %v2104_v31, %v2021_v4 }
 0xf42   :  { %v2109_v21 = vpop.permute.xlu1 %2108 }
 0xf43   :  { %7205 = vmatpush3.xpose.msk.msra.mxu1 %vm240_vm3, %v2109_v21 }
 0xf44   :  { %7209 = vmatprep.subr.mxu1 %v7814_v44 }
 0xf46   :  { %v2186_v13 = vpop.permute.xlu0 %2185  ;;  %7207 = vmatmul.mubr.msk.f32.vlgmr.msra.gmra.mxu1 %vm240_vm3, %v8144_v16 }
 0xf47   :  { %7210 = vmatpush3.xpose.msk.msra.mxu1 %vm240_vm3, %v2186_v13  ;;  %7211 = vmatprep.mubr.msk.f32.mxu1 %vm7815_vm10, %v7814_v44 }
 0xf48   :  { %7219 = vmatprep.subr.mxu1 %v7814_v44 }
 0xf4a   :  { %7212 = vmatmul.mubr.msk.f32.vlgmr.msra.gmra.mxu1 %vm240_vm3, %v8150_v20 }
 0xf4b   :  { %7220 = vmatpush3.msra.mxu1 %v8164_v22  ;;  %7221 = vmatprep.mubr.msk.f32.mxu1 %vm7815_vm10, %v7814_v44 }
 0xf4c   :  { %7229 = vmatprep.subr.mxu1 %v7814_v44 }
0x1006   :  { %v2180_v23 = vpop.f32.mrf.mxu1 }
0x1007   :  { %v2261_v24 = vmul.f32 0.25, %v2180_v23 }
0x1008   :  { %v7208_v25 = vpop.f32.mrf.mxu1 }
0x1009   :  { %v2263_v26 = vsel %vm143_vm0, %v2261_v24, -inf }
0x100a   :  { %2264 = vmax.xlane.f32.xlu1 %v2263_v26  ;;  %v2257_v27 = vpop.f32.mrf.mxu1 }
0x100b   :  { %v2262_v28 = vmul.f32 0.25, %v2257_v27 }
0x100c   :  { %v7213_v29 = vpop.f32.mrf.mxu1 }
0x100d   :  { %v2266_v30 = vsel %vm143_vm0, %v2262_v28, -inf }
0x100e   :  { %2267 = vmax.xlane.f32.xlu0 %v2266_v30 }
0x101b   :  { %2511 = vrot.lane.b32.xlu1 %v8150_v20, %s7817_s19 }
0x1093   :  { %v2265_v32 = vpop.xlane.xlu1 %2264 }
0x1094   :  { %v2269_v33 = vsub.f32 %v2261_v24, %v2265_v32 }
0x1096   :  { %v2271_v34 = vmul.f32 1.442695, %v2269_v33 }
0x1097   :  { %v2268_v60 = vpop.xlane.xlu0 %2267  ;;  %v2512_v41 = vpop.permute.xlu1 %2511 }
0x1098   :  { %7555 = vpow2.f32 %v2271_v34  ;;  %v2270_v35 = vsub.f32 %v2262_v28, %v2268_v60 }
0x109a   :  { %v2273_v36 = vmul.f32 1.442695, %v2270_v35 }
0x109c   :  { %7557 = vpow2.f32 %v2273_v36 }
0x10a5   :  { %v7556_v37 = vpop.eup %7555 }
0x10a6   :  { %v2275_v38 = vsel %vm143_vm0, %v7556_v37, 0.0 }
0x10a7   :  { %2276 = vadd.xlane.f32.xlu0 %v2275_v38 }
0x10a9   :  { %v7558_v39 = vpop.eup %7557 }
0x10aa   :  { %v2278_v40 = vsel %vm143_vm0, %v7558_v39, 0.0 }
0x10ab   :  { %2279 = vadd.xlane.f32.xlu1 %v2278_v40 }
0x10bc   :  { %2431 = vrot.lane.b32.xlu1 %v8144_v16, %s7818_s20 }
0x10bd   :  { %2433 = vrot.lane.b32.xlu0 %v8144_v16, %s7817_s19 }
0x10c1   :  { %2509 = vrot.lane.b32.xlu0 %v8150_v20, %s7818_s20 }
0x1130   :  { %v2277_v63 = vpop.xlane.xlu0 %2276 }
0x1131   :  { %7559 = vrcp.f32 %v2277_v63 }
0x1134   :  { %v2280_v43 = vpop.xlane.xlu1 %2279  ;;  %v2434_v48 = vpop.permute.xlu0 %2433 }
0x1135   :  { %7561 = vrcp.f32 %v2280_v43 }
0x1138   :  { %v2432_v51 = vpop.permute.xlu1 %2431  ;;  %v2510_v52 = vpop.permute.xlu0 %2509 }
0x113e   :  { %v7560_v45 = vpop.eup %7559 }
0x113f   :  { %v2282_v46 = vmul.f32 %v7560_v45, %v7556_v37 }
0x1141   :  { %7217 = vmatmul.mubr.msk.f32.vlgmr.msra.gmra.mxu0 %vm143_vm0, %v2282_v46 }
0x1142   :  { %v7562_v49 = vpop.eup %7561  ;;  %7225 = vmatpush3.xpose.msk.msra.mxu0 %vm240_vm3, %v2434_v48  ;;  %7226 = vmatprep.mubr.msk.f32.mxu0 %vm7815_vm10, %v7814_v44 }
0x1143   :  { %v2284_v50 = vmul.f32 %v7562_v49, %v7558_v39  ;;  %7234 = vmatprep.subr.mxu0 %v7814_v44 }
0x1145   :  { %7222 = vmatmul.mubr.msk.f32.vlgmr.msra.gmra.mxu1 %vm143_vm0, %v2284_v50  ;;  %7227 = vmatmul.mubr.msk.f32.vlgmr.msra.gmra.mxu0 %vm240_vm3, %v2432_v51 }
0x1146   :  { %7230 = vmatpush3.xpose.msk.msra.mxu1 %vm240_vm3, %v2512_v41  ;;  %7231 = vmatprep.mubr.msk.f32.mxu1 %vm7815_vm10, %v7814_v44 }
0x1147   :  { %7239 = vmatprep.subr.mxu1 %v7814_v44  ;;  %7236 = vmatprep.mubr.msk.f32.mxu0 %vm7815_vm10, %v7814_v44 }
0x1149   :  { %7232 = vmatmul.mubr.msk.f32.vlgmr.msra.gmra.mxu1 %vm240_vm3, %v2510_v52 }
0x114a   :  { %7241 = vmatprep.mubr.msk.f32.mxu1 %vm7815_vm10, %v7814_v44 }
0x1201   :  { %v8200_v53 = vpop.f32.mrf.mxu0 }
0x1203   :  { %v7218_v42 = vpop.f32.mrf.mxu0 }
0x1205   :  { %v8202_v57 = vpop.f32.mrf.mxu1  ;;  %v2505_v58 = vpop.f32.mrf.mxu0 }
0x1206   :  { %v2587_v59 = vmul.f32 0.25, %v2505_v58 }
0x1207   :  { %v7223_v61 = vpop.f32.mrf.mxu1  ;;  %v7228_v47 = vpop.f32.mrf.mxu0 }
0x1208   :  { %v2589_v62 = vsel %vm143_vm0, %v2587_v59, -inf }
0x1209   :  { %2590 = vmax.xlane.f32.xlu1 %v2589_v62  ;;  %v2583_v1 = vpop.f32.mrf.mxu1 }
0x120a   :  { %v2588_v2 = vmul.f32 0.25, %v2583_v1 }
0x120b   :  { %v7233_v3 = vpop.f32.mrf.mxu1 }
0x120c   :  { %v2592_v5 = vsel %vm143_vm0, %v2588_v2, -inf }
0x120d   :  { %2593 = vmax.xlane.f32.xlu0 %v2592_v5 }
0x121a   :  { %2689 = vrot.lane.b32.xlu1 %v8164_v22, %s7818_s20 }
0x121e   :  { %2767 = vrot.lane.b32.xlu1 %v8144_v16, %s7819_s21 }
0x1223   :  { %2612 = vrot.lane.b32.xlu0 %v8146_v18, %s7818_s20 }
0x1292   :  { %v2591_v6 = vpop.xlane.xlu1 %2590 }
0x1293   :  { %v2595_v7 = vsub.f32 %v2587_v59, %v2591_v6 }
0x1295   :  { %v2597_v8 = vmul.f32 1.442695, %v2595_v7 }
0x1296   :  { %v2690_v9 = vpop.permute.xlu1 %2689  ;;  %v2594_v10 = vpop.xlane.xlu0 %2593 }
0x1297   :  { %7563 = vpow2.f32 %v2597_v8  ;;  %v2596_v11 = vsub.f32 %v2588_v2, %v2594_v10  ;;  %7240 = vmatpush3.msra.mxu1 %v2690_v9 }
0x1298   :  { %7249 = vmatprep.subr.mxu1 %v7814_v44 }
0x1299   :  { %v2599_v12 = vmul.f32 1.442695, %v2596_v11 }
0x129a   :  { %v2613_v14 = vpop.permute.xlu0 %2612  ;;  %v2768_v21 = vpop.permute.xlu1 %2767 }
0x129b   :  { %7565 = vpow2.f32 %v2599_v12  ;;  %7235 = vmatpush3.msra.mxu0 %v2613_v14 }
0x129c   :  { %7244 = vmatprep.subr.mxu0 %v7814_v44 }
0x12a4   :  { %v7564_v4 = vpop.eup %7563 }
0x12a5   :  { %v2601_v15 = vsel %vm143_vm0, %v7564_v4, 0.0 }
0x12a6   :  { %2602 = vadd.xlane.f32.xlu0 %v2601_v15 }
0x12a8   :  { %v7566_v17 = vpop.eup %7565 }
0x12a9   :  { %v2604_v19 = vsel %vm143_vm0, %v7566_v17, 0.0 }
0x12aa   :  { %2605 = vadd.xlane.f32.xlu1 %v2604_v19 }
0x12bb   :  { %2765 = vrot.lane.b32.xlu1 %v8144_v16, %s7820_s22 }
0x12bc   :  { %2845 = vrot.lane.b32.xlu0 %v8150_v20, %s7819_s21 }
0x12c0   :  { %2843 = vrot.lane.b32.xlu0 %v8150_v20, %s7820_s22 }
0x132f   :  { %v2603_v31 = vpop.xlane.xlu0 %2602 }
0x1330   :  { %7567 = vrcp.f32 %v2603_v31 }
0x1333   :  { %v2606_v13 = vpop.xlane.xlu1 %2605  ;;  %v2846_v26 = vpop.permute.xlu0 %2845 }
0x1334   :  { %7569 = vrcp.f32 %v2606_v13 }
0x1337   :  { %v2766_v28 = vpop.permute.xlu1 %2765  ;;  %v2844_v29 = vpop.permute.xlu0 %2843 }
0x133d   :  { %v7568_v23 = vpop.eup %7567 }
0x133e   :  { %v2608_v24 = vmul.f32 %v7568_v23, %v7564_v4 }
0x1340   :  { %7237 = vmatmul.mubr.msk.f32.vlgmr.msra.gmra.mxu0 %vm143_vm0, %v2608_v24 }
0x1341   :  { %v7570_v25 = vpop.eup %7569  ;;  %7245 = vmatpush3.xpose.msk.msra.mxu0 %vm240_vm3, %v2768_v21  ;;  %7246 = vmatprep.mubr.msk.f32.mxu0 %vm7815_vm10, %v7814_v44 }
0x1342   :  { %v2610_v27 = vmul.f32 %v7570_v25, %v7566_v17  ;;  %7254 = vmatprep.subr.mxu0 %v7814_v44 }
0x1344   :  { %7242 = vmatmul.mubr.msk.f32.vlgmr.msra.gmra.mxu1 %vm143_vm0, %v2610_v27  ;;  %7247 = vmatmul.mubr.msk.f32.vlgmr.msra.gmra.mxu0 %vm240_vm3, %v2766_v28 }
0x1345   :  { %7250 = vmatpush3.xpose.msk.msra.mxu1 %vm240_vm3, %v2846_v26  ;;  %7251 = vmatprep.mubr.msk.f32.mxu1 %vm7815_vm10, %v7814_v44 }
0x1346   :  { %7259 = vmatprep.subr.mxu1 %v7814_v44  ;;  %7256 = vmatprep.mubr.msk.f32.mxu0 %vm7815_vm10, %v7814_v44 }
0x1348   :  { %7252 = vmatmul.mubr.msk.f32.vlgmr.msra.gmra.mxu1 %vm240_vm3, %v2844_v29 }
0x1349   :  { %7261 = vmatprep.mubr.msk.f32.mxu1 %vm7815_vm10, %v7814_v44 }
0x1400   :  { %v8238_v30 = vpop.f32.mrf.mxu0 }
0x1402   :  { %v7238_v32 = vpop.f32.mrf.mxu0 }
0x1404   :  { %v8240_v33 = vpop.f32.mrf.mxu1  ;;  %v2839_v34 = vpop.f32.mrf.mxu0 }
0x1405   :  { %v2921_v60 = vmul.f32 0.25, %v2839_v34 }
0x1406   :  { %v7243_v35 = vpop.f32.mrf.mxu1  ;;  %v7248_v36 = vpop.f32.mrf.mxu0 }
0x1407   :  { %v2923_v37 = vsel %vm143_vm0, %v2921_v60, -inf }
0x1408   :  { %2924 = vmax.xlane.f32.xlu1 %v2923_v37  ;;  %v2917_v38 = vpop.f32.mrf.mxu1 }
0x1409   :  { %v2922_v39 = vmul.f32 0.25, %v2917_v38  ;;  %v3466_v38 = vld [vmem:[#allocation13 + $0x70] sm:$0xff] }
0x140a   :  { %v7253_v40 = vpop.f32.mrf.mxu1 }
0x140b   :  { %v2926_v41 = vsel %vm143_vm0, %v2922_v39, -inf  ;;  %v3464_v40 = vld [vmem:[#allocation13 + $0x60] sm:$0xff] }
0x140c   :  { %2927 = vmax.xlane.f32.xlu0 %v2926_v41  ;;  %v3463_v41 = vld [vmem:[#allocation13 + $0x58] sm:$0xff] }
0x1419   :  { %3021 = vrot.lane.b32.xlu1 %v8164_v22, %s7820_s22 }
0x141d   :  { %3099 = vrot.lane.b32.xlu1 %v8144_v16, %s7807_s24 }
0x1422   :  { %2945 = vrot.lane.b32.xlu0 %v8146_v18, %s7820_s22 }
0x1491   :  { %v2925_v63 = vpop.xlane.xlu1 %2924 }
0x1492   :  { %v2929_v43 = vsub.f32 %v2921_v60, %v2925_v63  ;;  %v3462_v63 = vld [vmem:[#allocation13 + $0x50] sm:$0xff] }
0x1494   :  { %v2931_v45 = vmul.f32 1.442695, %v2929_v43  ;;  %v3461_v43 = vld [vmem:[#allocation13 + $0x48] sm:$0xff] }
0x1495   :  { %v3022_v46 = vpop.permute.xlu1 %3021  ;;  %v2928_v48 = vpop.xlane.xlu0 %2927 }
0x1496   :  { %7571 = vpow2.f32 %v2931_v45  ;;  %v2930_v49 = vsub.f32 %v2922_v39, %v2928_v48  ;;  %7260 = vmatpush3.msra.mxu1 %v3022_v46  ;;  %v3465_v39 = vld [vmem:[#allocation13 + $0x68] sm:$0xff]  ;;  %v3460_v45 = vld [vmem:[#allocation13 + $0x40] sm:$0xff]  ;;  %v3579_v46 = vld [vmem:[#allocation11 + $0x178] sm:$0xff] }
0x1497   :  { %7269 = vmatprep.subr.mxu1 %v7814_v44  ;;  %v3578_v48 = vld [vmem:[#allocation11 + $0x170] sm:$0xff] }
0x1498   :  { %v2933_v50 = vmul.f32 1.442695, %v2930_v49  ;;  %v3577_v49 = vld [vmem:[#allocation11 + $0x168] sm:$0xff] }
0x1499   :  { %v2946_v51 = vpop.permute.xlu0 %2945  ;;  %v3100_v61 = vpop.permute.xlu1 %3099 }
0x149a   :  { %7573 = vpow2.f32 %v2933_v50  ;;  %7255 = vmatpush3.msra.mxu0 %v2946_v51  ;;  %v3576_v50 = vld [vmem:[#allocation11 + $0x160] sm:$0xff]  ;;  %v3575_v51 = vld [vmem:[#allocation11 + $0x158] sm:$0xff] }
0x149b   :  { %7264 = vmatprep.subr.mxu0 %v7814_v44 }
0x14a3   :  { %v7572_v52 = vpop.eup %7571 }
0x14a4   :  { %v2935_v42 = vsel %vm143_vm0, %v7572_v52, 0.0 }
0x14a5   :  { %2936 = vadd.xlane.f32.xlu0 %v2935_v42  ;;  %v3573_v42 = vld [vmem:[#allocation11 + $0x148] sm:$0xff] }
0x14a7   :  { %v7574_v58 = vpop.eup %7573 }
0x14a8   :  { %v2938_v59 = vsel %vm143_vm0, %v7574_v58, 0.0 }
0x14a9   :  { %2939 = vadd.xlane.f32.xlu1 %v2938_v59 }
0x14ba   :  { %3097 = vrot.lane.b32.xlu1 %v8144_v16, %s7821_s1 }
0x14bb   :  { %3177 = vrot.lane.b32.xlu0 %v8150_v20, %s7807_s24 }
0x14bf   :  { %3175 = vrot.lane.b32.xlu0 %v8150_v20, %s7821_s1 }
0x152e   :  { %v2937_v47 = vpop.xlane.xlu0 %2936 }
0x152f   :  { %7575 = vrcp.f32 %v2937_v47 }
0x1532   :  { %v2940_v62 = vpop.xlane.xlu1 %2939  ;;  %v3178_v5 = vpop.permute.xlu0 %3177 }
0x1533   :  { %7577 = vrcp.f32 %v2940_v62 }
0x1536   :  { %v3098_v20 = vpop.permute.xlu1 %3097  ;;  %v3176_v6 = vpop.permute.xlu0 %3175 }
0x153c   :  { %v7576_v1 = vpop.eup %7575 }
0x153d   :  { %v2942_v2 = vmul.f32 %v7576_v1, %v7572_v52  ;;  %v3574_v52 = vld [vmem:[#allocation11 + $0x150] sm:$0xff] }
0x153f   :  { %7257 = vmatmul.mubr.msk.f32.vlgmr.msra.gmra.mxu0 %vm143_vm0, %v2942_v2 }
0x1540   :  { %v7578_v3 = vpop.eup %7577  ;;  %7265 = vmatpush3.xpose.msk.msra.mxu0 %vm240_vm3, %v3100_v61  ;;  %7266 = vmatprep.mubr.msk.f32.mxu0 %vm7815_vm10, %v7814_v44 }
0x1541   :  { %v2944_v16 = vmul.f32 %v7578_v3, %v7574_v58  ;;  %7274 = vmatprep.subr.mxu0 %v7814_v44  ;;  %v3572_v58 = vld [vmem:[#allocation11 + $0x140] sm:$0xff] }
0x1543   :  { %7262 = vmatmul.mubr.msk.f32.vlgmr.msra.gmra.mxu1 %vm143_vm0, %v2944_v16  ;;  %7267 = vmatmul.mubr.msk.f32.vlgmr.msra.gmra.mxu0 %vm240_vm3, %v3098_v20 }
0x1544   :  { %7270 = vmatpush3.xpose.msk.msra.mxu1 %vm240_vm3, %v3178_v5  ;;  %7271 = vmatprep.mubr.msk.f32.mxu1 %vm7815_vm10, %v7814_v44 }
0x1545   :  { %7279 = vmatprep.subr.mxu1 %v7814_v44  ;;  %7276 = vmatprep.mubr.msk.f32.mxu0 %vm7815_vm10, %v7814_v44 }
0x1547   :  { %7272 = vmatmul.mubr.msk.f32.vlgmr.msra.gmra.mxu1 %vm240_vm3, %v3176_v6 }
0x1548   :  { %7281 = vmatprep.mubr.msk.f32.mxu1 %vm7815_vm10, %v7814_v44 }
0x15ff   :  { %v3017_v7 = vpop.f32.mrf.mxu0 }
0x1601   :  { %v7258_v8 = vpop.f32.mrf.mxu0 }
0x1603   :  { %v3093_v9 = vpop.f32.mrf.mxu1  ;;  %v3171_v10 = vpop.f32.mrf.mxu0 }
0x1604   :  { %v3253_v11 = vmul.f32 0.25, %v3171_v10 }
0x1605   :  { %v7263_v12 = vpop.f32.mrf.mxu1  ;;  %v7268_v14 = vpop.f32.mrf.mxu0 }
0x1606   :  { %v3255_v4 = vsel %vm143_vm0, %v3253_v11, -inf  ;;  %v3570_v12 = vld [vmem:[#allocation11 + $0x130] sm:$0xff]  ;;  %v3569_v14 = vld [vmem:[#allocation11 + $0x128] sm:$0xff] }
0x1607   :  { %3256 = vmax.xlane.f32.xlu1 %v3255_v4  ;;  %v3249_v15 = vpop.f32.mrf.mxu1  ;;  %v3568_v4 = vld [vmem:[#allocation11 + $0x120] sm:$0xff] }
0x1608   :  { %v3254_v17 = vmul.f32 0.25, %v3249_v15  ;;  %v3567_v15 = vld [vmem:[#allocation11 + $0x118] sm:$0xff] }
0x1609   :  { %v7273_v19 = vpop.f32.mrf.mxu1 }
0x160a   :  { %v3258_v21 = vsel %vm143_vm0, %v3254_v17, -inf  ;;  %v3564_v19 = vld [vmem:[#allocation11 + $0x100] sm:$0xff] }
0x160b   :  { %3259 = vmax.xlane.f32.xlu0 %v3258_v21 }
0x1690   :  { %v3257_v31 = vpop.xlane.xlu1 %3256 }
0x1691   :  { %v3261_v13 = vsub.f32 %v3253_v11, %v3257_v31  ;;  %v6834_v31 = vld [vmem:[%s8683_s10 + $0x1] ss:$0 sm:$0xff] }
0x1693   :  { %v3263_v23 = vmul.f32 1.442695, %v3261_v13 }
0x1694   :  { %v3260_v24 = vpop.xlane.xlu0 %3259 }
0x1695   :  { %7579 = vpow2.f32 %v3263_v23  ;;  %v3262_v25 = vsub.f32 %v3254_v17, %v3260_v24  ;;  %v3565_v17 = vld [vmem:[#allocation11 + $0x108] sm:$0xff] }
0x1697   :  { %v3265_v26 = vmul.f32 1.442695, %v3262_v25 }
0x1699   :  { %7581 = vpow2.f32 %v3265_v26 }
0x16a2   :  { %v7580_v27 = vpop.eup %7579 }
0x16a3   :  { %v3267_v28 = vsel %vm143_vm0, %v7580_v27, 0.0 }
0x16a4   :  { %3268 = vadd.xlane.f32.xlu0 %v3267_v28 }
0x16a6   :  { %v7582_v29 = vpop.eup %7581 }
0x16a7   :  { %v3270_v32 = vsel %vm143_vm0, %v7582_v29, 0.0 }
0x16a8   :  { %3271 = vadd.xlane.f32.xlu1 %v3270_v32 }
0x16b9   :  { %3353 = vrot.lane.b32.xlu1 %v8164_v22, %s7821_s1 }
0x16ba   :  { %3277 = vrot.lane.b32.xlu0 %v8146_v18, %s7821_s1 }
0x16bd   :  { %3431 = vrot.lane.b32.xlu1 %v8238_v30, %s7807_s24 }
0x16be   :  { %3433 = vrot.lane.b32.xlu0 %v8240_v33, %s7807_s24  ;;  %v3467_v33 = vld [vmem:[#allocation13 + $0x78] sm:$0xff] }
0x16c1   :  { %3439 = vrot.lane.b32.xlu1 %v3017_v7, %s7819_s21 }
0x16c2   :  { %3441 = vrot.lane.b32.xlu0 %v3093_v9, %s7819_s21 }
0x172d   :  { %v3269_v34 = vpop.xlane.xlu0 %3268 }
0x172e   :  { %7583 = vrcp.f32 %v3269_v34 }
0x1731   :  { %v3272_v60 = vpop.xlane.xlu1 %3271  ;;  %v3278_v35 = vpop.permute.xlu0 %3277 }
0x1732   :  { %7585 = vrcp.f32 %v3272_v60  ;;  %7275 = vmatpush3.msra.mxu0 %v3278_v35 }
0x1733   :  { %7284 = vmatprep.subr.mxu0 %v3467_v33 }
0x1735   :  { %v3354_v22 = vpop.permute.xlu1 %3353  ;;  %v3434_v2 = vpop.permute.xlu0 %3433 }
0x1736   :  { %7280 = vmatpush3.msra.mxu1 %v3354_v22  ;;  %v3454_v8 = vsel %vm240_vm3, %v8202_v57, %v3434_v2  ;;  %v3566_v57 = vld [vmem:[#allocation11 + $0x110] sm:$0xff] }
0x1737   :  { %3615 = vmatprep.subr.mxu1 %v3579_v46 }
0x1739   :  { %v3432_v1 = vpop.permute.xlu1 %3431  ;;  %v3442_v16 = vpop.permute.xlu0 %3441 }
0x173a   :  { %v3453_v5 = vsel %vm240_vm3, %v8200_v53, %v3432_v1  ;;  %v3456_v9 = vsel %vm339_vm6, %v3454_v8, %v3442_v16  ;;  %v3571_v53 = vld [vmem:[#allocation11 + $0x138] sm:$0xff] }
0x173b   :  { %v7584_v36 = vpop.eup %7583 }
0x173c   :  { %v3274_v18 = vmul.f32 %v7584_v36, %v7580_v27 }
0x173d   :  { %v3440_v3 = vpop.permute.xlu1 %3439 }
0x173e   :  { %7277 = vmatmul.mubr.msk.f32.vlgmr.msra.gmra.mxu0 %vm143_vm0, %v3274_v18  ;;  %v3455_v20 = vsel %vm339_vm6, %v3453_v5, %v3440_v3 }
0x173f   :  { %v7586_v30 = vpop.eup %7585  ;;  %7285 = vmatpush3.msra.mxu0 %v3467_v33 }
0x1740   :  { %v3276_v37 = vmul.f32 %v7586_v30, %v7582_v29  ;;  %7286 = vmatprep.subr.mxu0 %v3466_v38  ;;  %v6837_v29 = vld [vmem:[%s8681_s8 + $0x4] sm:$0x3] }
0x1741   :  { %7287 = vmatpush3.msra.mxu0 %v3466_v38  ;;  %v3586_v32 = vrot.slane %v6837_v29, %v7956_v56  ;;  %v3590_v34 = vrot.slane %v6837_v29, %v7971_v0 }
0x1742   :  { %7282 = vmatmul.mubr.msk.f32.vlgmr.msra.gmra.mxu1 %vm143_vm0, %v3276_v37  ;;  %7288 = vmatprep.subr.mxu0 %v3465_v39 }
0x1743   :  { %3663 = vmatprep.mubr.f32.mxu1 %v7814_v44  ;;  %7289 = vmatpush3.msra.mxu0 %v3465_v39 }
0x1744   :  { %7290 = vmatprep.subr.mxu0 %v3464_v40  ;;  %3616 = vmatpush1.msra.mxu1 %v3578_v48 }
0x1745   :  { %7291 = vmatpush3.msra.mxu0 %v3464_v40  ;;  %3617 = vmatprep.subr.mxu1 %v3577_v49 }
0x1746   :  { %7292 = vmatprep.subr.mxu0 %v3463_v41  ;;  %3618 = vmatpush1.msra.mxu1 %v3576_v50 }
0x1747   :  { %7293 = vmatpush3.msra.mxu0 %v3463_v41  ;;  %3619 = vmatprep.subr.mxu1 %v3575_v51 }
0x1748   :  { %7294 = vmatprep.subr.mxu0 %v3462_v63  ;;  %3620 = vmatpush1.msra.mxu1 %v3574_v52 }
0x1749   :  { %7295 = vmatpush3.msra.mxu0 %v3462_v63  ;;  %3621 = vmatprep.subr.mxu1 %v3573_v42 }
0x174a   :  { %7296 = vmatprep.subr.mxu0 %v3461_v43  ;;  %3622 = vmatpush1.msra.mxu1 %v3572_v58 }
0x174b   :  { %7297 = vmatpush3.msra.mxu0 %v3461_v43  ;;  %3623 = vmatprep.subr.mxu1 %v3571_v53 }
0x174c   :  { %7298 = vmatprep.subr.mxu0 %v3460_v45  ;;  %3624 = vmatpush1.msra.mxu1 %v3570_v12 }
0x174d   :  { %7299 = vmatpush3.msra.mxu0 %v3460_v45  ;;  %3625 = vmatprep.subr.mxu1 %v3569_v14 }
0x174e   :  { %7303 = vmatprep.subr.mxu0 %v7814_v44  ;;  %3626 = vmatpush1.msra.mxu1 %v3568_v4 }
0x174f   :  { %3627 = vmatprep.subr.mxu1 %v3567_v15 }
0x1750   :  { %3628 = vmatpush1.msra.mxu1 %v3566_v57 }
0x1751   :  { %3629 = vmatprep.subr.mxu1 %v3565_v17 }
0x1752   :  { %3630 = vmatpush1.msra.mxu1 %v3564_v19 }
0x1753   :  { %7313 = vmatprep.subr.mxu1 %v7814_v44 }
0x17fe   :  { %v3349_v59 = vpop.f32.mrf.mxu0 }
0x17ff   :  { %3447 = vrot.lane.b32.xlu1 %v3349_v59, %s7817_s19 }
0x1800   :  { %v7278_v61 = vpop.f32.mrf.mxu0 }
0x1802   :  { %v3425_v47 = vpop.f32.mrf.mxu1 }
0x1803   :  { %3449 = vrot.lane.b32.xlu0 %v3425_v47, %s7817_s19 }
0x1804   :  { %v7283_v62 = vpop.f32.mrf.mxu1 }
0x1871   :  { %v3448_v6 = vpop.permute.xlu1 %3447 }
0x1872   :  { %v3457_v7 = vsel %vm1889_vm11, %v3455_v20, %v3448_v6 }
0x1873   :  { %7300 = vmatprep.mubr.msk.f32.mxu0 %vm455_vm8, %v3457_v7 }
0x1875   :  { %v3450_v10 = vpop.permute.xlu0 %3449 }
0x1876   :  { %v3458_v11 = vsel %vm1889_vm11, %v3456_v9, %v3450_v10 }
0x1877   :  { %7301 = vmatmul.mubr.msk.f32.vlgmr.msra.gmra.mxu0 %vm455_vm8, %v3458_v11 }
0x1878   :  { %7305 = vmatprep.mubr.msk.f32.mxu0 %vm7815_vm10, %v7814_v44 }
0x1937   :  { %v7302_v21 = vpop.f32.mrf.mxu0 }
0x1938   :  { %v3554_v23 = vadd.f32 %v7302_v21, %v6834_v31 }
0x1939   :  { %v3548_v13 = vpop.f32.mrf.mxu0 }
0x193a   :  { %v3549_v24 = vadd.f32 %v6834_v31, %v3548_v13  ;;  %v3560_v26 = vmul.f32 0.2, %v3554_v23  ;;  %vm3558_vm15 = vcmp.gt.f32.partialorder %v3554_v23, 0.0 }
0x193c   :  { %vm3557_vm14 = vcmp.gt.f32.partialorder %v3549_v24, 0.0  ;;  %v3559_v25 = vmul.f32 0.2, %v3549_v24  ;;  %v3562_v28 = vsel %vm3558_vm15, %v3554_v23, %v3560_v26 }
0x193e   :  { %v3561_v27 = vsel %vm3557_vm14, %v3549_v24, %v3559_v25 }
0x193f   :  { %6838 = vmatmul.mubr.msk.f32.vlgmr.msra.gmra.mxu1 %vm455_vm8, %v3561_v27 }
0x1940   :  { %3669 = vmatprep.mubr.f32.mxu1 %v7814_v44 }
0x1943   :  { %6839 = vmatmul.mubr.msk.f32.gmra.mxu1 %vm455_vm8, %v3562_v28 }
0x1944   :  { %7315 = vmatprep.mubr.msk.f32.mxu1 %vm7815_vm10, %v7814_v44 }
0x19ff   :  { %v3665_v60 = vpop.f32.mrf.mxu1 }
0x1a00   :  { %v8322_v35 = vadd.f32 %v3665_v60, %v3586_v32 }
0x1a01   :  { %v3667_v22 = vpop.f32.mrf.mxu1 }
0x1a02   :  { %v8324_v36 = vadd.f32 %v3667_v22, %v3590_v34  ;;  %3677 = vrot.lane.b32.xlu1 %v8322_v35, %s7816_s18 }
0x1a03   :  { %v3671_v18 = vpop.f32.mrf.mxu1 }
0x1a04   :  { %v8328_v30 = vadd.f32 %v3671_v18, %v3586_v32  ;;  %7314 = vmatpush3.msra.mxu1 %v8324_v36 }
0x1a05   :  { %7323 = vmatprep.subr.mxu1 %v7814_v44  ;;  %v3673_v33 = vpop.f32.mrf.mxu1 }
0x1a06   :  { %3754 = vrot.lane.b32.xlu0 %v8328_v30, %s7816_s18  ;;  %v8342_v39 = vadd.f32 %v3673_v33, %v3590_v34 }
0x1a74   :  { %v3678_v37 = vpop.permute.xlu1 %3677 }
0x1a75   :  { %7304 = vmatpush3.xpose.msk.msra.mxu0 %vm240_vm3, %v3678_v37 }
0x1a76   :  { %7308 = vmatprep.subr.mxu0 %v7814_v44 }
0x1a78   :  { %v3755_v38 = vpop.permute.xlu0 %3754  ;;  %7306 = vmatmul.mubr.msk.f32.vlgmr.msra.gmra.mxu0 %vm240_vm3, %v8322_v35 }
0x1a79   :  { %7309 = vmatpush3.xpose.msk.msra.mxu0 %vm240_vm3, %v3755_v38  ;;  %7310 = vmatprep.mubr.msk.f32.mxu0 %vm7815_vm10, %v7814_v44 }
0x1a7a   :  { %7318 = vmatprep.subr.mxu0 %v7814_v44 }
0x1a7c   :  { %7311 = vmatmul.mubr.msk.f32.vlgmr.msra.gmra.mxu0 %vm240_vm3, %v8328_v30 }
0x1a7d   :  { %7319 = vmatpush3.msra.mxu0 %v8342_v39  ;;  %7320 = vmatprep.mubr.msk.f32.mxu0 %vm7815_vm10, %v7814_v44 }
0x1a7e   :  { %7328 = vmatprep.subr.mxu0 %v7814_v44 }
0x1b38   :  { %v3749_v40 = vpop.f32.mrf.mxu0 }
0x1b39   :  { %v3830_v41 = vmul.f32 0.25, %v3749_v40 }
0x1b3a   :  { %v7307_v63 = vpop.f32.mrf.mxu0 }
0x1b3b   :  { %v3832_v43 = vsel %vm143_vm0, %v3830_v41, -inf }
0x1b3c   :  { %3833 = vmax.xlane.f32.xlu1 %v3832_v43  ;;  %v3826_v45 = vpop.f32.mrf.mxu0 }
0x1b3d   :  { %v3831_v46 = vmul.f32 0.25, %v3826_v45 }
0x1b3e   :  { %v7312_v48 = vpop.f32.mrf.mxu0 }
0x1b3f   :  { %v3835_v49 = vsel %vm143_vm0, %v3831_v46, -inf }
0x1b40   :  { %3836 = vmax.xlane.f32.xlu0 %v3835_v49 }
0x1b4d   :  { %4080 = vrot.lane.b32.xlu1 %v8328_v30, %s7817_s19 }
0x1bc5   :  { %v3834_v50 = vpop.xlane.xlu1 %3833 }
0x1bc6   :  { %v3838_v51 = vsub.f32 %v3830_v41, %v3834_v50 }
0x1bc8   :  { %v3840_v52 = vmul.f32 1.442695, %v3838_v51 }
0x1bc9   :  { %v3837_v42 = vpop.xlane.xlu0 %3836  ;;  %v4081_v2 = vpop.permute.xlu1 %4080 }
0x1bca   :  { %7587 = vpow2.f32 %v3840_v52  ;;  %v3839_v58 = vsub.f32 %v3831_v46, %v3837_v42 }
0x1bcc   :  { %v3842_v59 = vmul.f32 1.442695, %v3839_v58 }
0x1bce   :  { %7589 = vpow2.f32 %v3842_v59 }
0x1bd7   :  { %v7588_v61 = vpop.eup %7587 }
0x1bd8   :  { %v3844_v47 = vsel %vm143_vm0, %v7588_v61, 0.0 }
0x1bd9   :  { %3845 = vadd.xlane.f32.xlu0 %v3844_v47 }
0x1bdb   :  { %v7590_v62 = vpop.eup %7589 }
0x1bdc   :  { %v3847_v1 = vsel %vm143_vm0, %v7590_v62, 0.0 }
0x1bdd   :  { %3848 = vadd.xlane.f32.xlu1 %v3847_v1 }
0x1bee   :  { %4000 = vrot.lane.b32.xlu1 %v8322_v35, %s7818_s20 }
0x1bef   :  { %4002 = vrot.lane.b32.xlu0 %v8322_v35, %s7817_s19 }
0x1bf3   :  { %4078 = vrot.lane.b32.xlu0 %v8328_v30, %s7818_s20 }
0x1c62   :  { %v3846_v3 = vpop.xlane.xlu0 %3845 }
0x1c63   :  { %7591 = vrcp.f32 %v3846_v3 }
0x1c66   :  { %v3849_v5 = vpop.xlane.xlu1 %3848  ;;  %v4003_v6 = vpop.permute.xlu0 %4002 }
0x1c67   :  { %7593 = vrcp.f32 %v3849_v5 }
0x1c6a   :  { %v4001_v9 = vpop.permute.xlu1 %4000  ;;  %v4079_v10 = vpop.permute.xlu0 %4078 }
0x1c70   :  { %v7592_v16 = vpop.eup %7591 }
0x1c71   :  { %v3851_v20 = vmul.f32 %v7592_v16, %v7588_v61 }
0x1c73   :  { %7316 = vmatmul.mubr.msk.f32.vlgmr.msra.gmra.mxu1 %vm143_vm0, %v3851_v20 }
0x1c74   :  { %v7594_v7 = vpop.eup %7593  ;;  %7324 = vmatpush3.xpose.msk.msra.mxu1 %vm240_vm3, %v4003_v6  ;;  %7325 = vmatprep.mubr.msk.f32.mxu1 %vm7815_vm10, %v7814_v44 }
0x1c75   :  { %v3853_v8 = vmul.f32 %v7594_v7, %v7590_v62  ;;  %7333 = vmatprep.subr.mxu1 %v7814_v44 }
0x1c77   :  { %7321 = vmatmul.mubr.msk.f32.vlgmr.msra.gmra.mxu0 %vm143_vm0, %v3853_v8  ;;  %7326 = vmatmul.mubr.msk.f32.vlgmr.msra.gmra.mxu1 %vm240_vm3, %v4001_v9 }
0x1c78   :  { %7329 = vmatpush3.xpose.msk.msra.mxu0 %vm240_vm3, %v4081_v2  ;;  %7330 = vmatprep.mubr.msk.f32.mxu0 %vm7815_vm10, %v7814_v44 }
0x1c79   :  { %7338 = vmatprep.subr.mxu0 %v7814_v44  ;;  %7335 = vmatprep.mubr.msk.f32.mxu1 %vm7815_vm10, %v7814_v44 }
0x1c7b   :  { %7331 = vmatmul.mubr.msk.f32.vlgmr.msra.gmra.mxu0 %vm240_vm3, %v4079_v10 }
0x1c7c   :  { %7340 = vmatprep.mubr.msk.f32.mxu0 %vm7815_vm10, %v7814_v44 }
0x1d33   :  { %v8378_v11 = vpop.f32.mrf.mxu1 }
0x1d35   :  { %v7317_v53 = vpop.f32.mrf.mxu1 }
0x1d37   :  { %v8380_v12 = vpop.f32.mrf.mxu0  ;;  %v4074_v14 = vpop.f32.mrf.mxu1 }
0x1d38   :  { %v4156_v4 = vmul.f32 0.25, %v4074_v14 }
0x1d39   :  { %v7322_v15 = vpop.f32.mrf.mxu0  ;;  %v7327_v57 = vpop.f32.mrf.mxu1 }
0x1d3a   :  { %v4158_v17 = vsel %vm143_vm0, %v4156_v4, -inf }
0x1d3b   :  { %4159 = vmax.xlane.f32.xlu1 %v4158_v17  ;;  %v4152_v19 = vpop.f32.mrf.mxu0 }
0x1d3c   :  { %v4157_v21 = vmul.f32 0.25, %v4152_v19 }
0x1d3d   :  { %v7332_v31 = vpop.f32.mrf.mxu0 }
0x1d3e   :  { %v4161_v13 = vsel %vm143_vm0, %v4157_v21, -inf }
0x1d3f   :  { %4162 = vmax.xlane.f32.xlu0 %v4161_v13 }
0x1d4c   :  { %4258 = vrot.lane.b32.xlu1 %v8342_v39, %s7818_s20 }
0x1d50   :  { %4336 = vrot.lane.b32.xlu1 %v8322_v35, %s7819_s21 }
0x1d55   :  { %4181 = vrot.lane.b32.xlu0 %v8324_v36, %s7818_s20 }
0x1dc4   :  { %v4160_v23 = vpop.xlane.xlu1 %4159 }
0x1dc5   :  { %v4164_v24 = vsub.f32 %v4156_v4, %v4160_v23 }
0x1dc7   :  { %v4166_v25 = vmul.f32 1.442695, %v4164_v24 }
0x1dc8   :  { %v4259_v26 = vpop.permute.xlu1 %4258  ;;  %v4163_v27 = vpop.xlane.xlu0 %4162 }
0x1dc9   :  { %7595 = vpow2.f32 %v4166_v25  ;;  %v4165_v28 = vsub.f32 %v4157_v21, %v4163_v27  ;;  %7339 = vmatpush3.msra.mxu0 %v4259_v26 }
0x1dca   :  { %7348 = vmatprep.subr.mxu0 %v7814_v44 }
0x1dcb   :  { %v4168_v29 = vmul.f32 1.442695, %v4165_v28 }
0x1dcc   :  { %v4182_v32 = vpop.permute.xlu0 %4181  ;;  %v4337_v37 = vpop.permute.xlu1 %4336 }
0x1dcd   :  { %7597 = vpow2.f32 %v4168_v29  ;;  %7334 = vmatpush3.msra.mxu1 %v4182_v32 }
0x1dce   :  { %7343 = vmatprep.subr.mxu1 %v7814_v44 }
0x1dd6   :  { %v7596_v34 = vpop.eup %7595 }
0x1dd7   :  { %v4170_v60 = vsel %vm143_vm0, %v7596_v34, 0.0 }
0x1dd8   :  { %4171 = vadd.xlane.f32.xlu0 %v4170_v60 }
0x1dda   :  { %v7598_v22 = vpop.eup %7597 }
0x1ddb   :  { %v4173_v18 = vsel %vm143_vm0, %v7598_v22, 0.0 }
0x1ddc   :  { %4174 = vadd.xlane.f32.xlu1 %v4173_v18 }
0x1ded   :  { %4334 = vrot.lane.b32.xlu1 %v8322_v35, %s7820_s22 }
0x1dee   :  { %4414 = vrot.lane.b32.xlu0 %v8328_v30, %s7819_s21 }
0x1df2   :  { %4412 = vrot.lane.b32.xlu0 %v8328_v30, %s7820_s22 }
0x1e61   :  { %v4172_v33 = vpop.xlane.xlu0 %4171 }
0x1e62   :  { %7599 = vrcp.f32 %v4172_v33 }
0x1e65   :  { %v4175_v38 = vpop.xlane.xlu1 %4174  ;;  %v4415_v43 = vpop.permute.xlu0 %4414 }
0x1e66   :  { %7601 = vrcp.f32 %v4175_v38 }
0x1e69   :  { %v4335_v46 = vpop.permute.xlu1 %4334  ;;  %v4413_v48 = vpop.permute.xlu0 %4412 }
0x1e6f   :  { %v7600_v40 = vpop.eup %7599 }
0x1e70   :  { %v4177_v41 = vmul.f32 %v7600_v40, %v7596_v34 }
0x1e72   :  { %7336 = vmatmul.mubr.msk.f32.vlgmr.msra.gmra.mxu1 %vm143_vm0, %v4177_v41 }
0x1e73   :  { %v7602_v63 = vpop.eup %7601  ;;  %7344 = vmatpush3.xpose.msk.msra.mxu1 %vm240_vm3, %v4337_v37  ;;  %7345 = vmatprep.mubr.msk.f32.mxu1 %vm7815_vm10, %v7814_v44 }
0x1e74   :  { %v4179_v45 = vmul.f32 %v7602_v63, %v7598_v22  ;;  %7353 = vmatprep.subr.mxu1 %v7814_v44 }
0x1e76   :  { %7341 = vmatmul.mubr.msk.f32.vlgmr.msra.gmra.mxu0 %vm143_vm0, %v4179_v45  ;;  %7346 = vmatmul.mubr.msk.f32.vlgmr.msra.gmra.mxu1 %vm240_vm3, %v4335_v46 }
0x1e77   :  { %7349 = vmatpush3.xpose.msk.msra.mxu0 %vm240_vm3, %v4415_v43  ;;  %7350 = vmatprep.mubr.msk.f32.mxu0 %vm7815_vm10, %v7814_v44 }
0x1e78   :  { %7358 = vmatprep.subr.mxu0 %v7814_v44  ;;  %7355 = vmatprep.mubr.msk.f32.mxu1 %vm7815_vm10, %v7814_v44 }
0x1e7a   :  { %7351 = vmatmul.mubr.msk.f32.vlgmr.msra.gmra.mxu0 %vm240_vm3, %v4413_v48 }
0x1e7b   :  { %7360 = vmatprep.mubr.msk.f32.mxu0 %vm7815_vm10, %v7814_v44 }
0x1f32   :  { %v8416_v49 = vpop.f32.mrf.mxu1 }
0x1f34   :  { %v7337_v50 = vpop.f32.mrf.mxu1 }
0x1f36   :  { %v8418_v51 = vpop.f32.mrf.mxu0  ;;  %v4408_v52 = vpop.f32.mrf.mxu1 }
0x1f37   :  { %v4490_v42 = vmul.f32 0.25, %v4408_v52 }
0x1f38   :  { %v7342_v58 = vpop.f32.mrf.mxu0  ;;  %v7347_v59 = vpop.f32.mrf.mxu1 }
0x1f39   :  { %v4492_v61 = vsel %vm143_vm0, %v4490_v42, -inf }
0x1f3a   :  { %4493 = vmax.xlane.f32.xlu1 %v4492_v61  ;;  %v4486_v47 = vpop.f32.mrf.mxu0 }
0x1f3b   :  { %v4491_v62 = vmul.f32 0.25, %v4486_v47  ;;  %v5035_v47 = vld [vmem:[#allocation13 + $0xb0] sm:$0xff] }
0x1f3c   :  { %v7352_v1 = vpop.f32.mrf.mxu0 }
0x1f3d   :  { %v4495_v2 = vsel %vm143_vm0, %v4491_v62, -inf  ;;  %v5033_v1 = vld [vmem:[#allocation13 + $0xa0] sm:$0xff] }
0x1f3e   :  { %4496 = vmax.xlane.f32.xlu0 %v4495_v2  ;;  %v5032_v2 = vld [vmem:[#allocation13 + $0x98] sm:$0xff] }
0x1f4b   :  { %4590 = vrot.lane.b32.xlu1 %v8342_v39, %s7820_s22 }
0x1f4f   :  { %4668 = vrot.lane.b32.xlu1 %v8322_v35, %s7807_s24 }
0x1f54   :  { %4514 = vrot.lane.b32.xlu0 %v8324_v36, %s7820_s22 }
0x1fc3   :  { %v4494_v3 = vpop.xlane.xlu1 %4493 }
0x1fc4   :  { %v4498_v5 = vsub.f32 %v4490_v42, %v4494_v3  ;;  %v5031_v3 = vld [vmem:[#allocation13 + $0x90] sm:$0xff] }
0x1fc6   :  { %v4500_v16 = vmul.f32 1.442695, %v4498_v5  ;;  %v5030_v5 = vld [vmem:[#allocation13 + $0x88] sm:$0xff] }
0x1fc7   :  { %v4591_v20 = vpop.permute.xlu1 %4590  ;;  %v4497_v6 = vpop.xlane.xlu0 %4496 }
0x1fc8   :  { %7603 = vpow2.f32 %v4500_v16  ;;  %v4499_v7 = vsub.f32 %v4491_v62, %v4497_v6  ;;  %7359 = vmatpush3.msra.mxu0 %v4591_v20  ;;  %v5034_v62 = vld [vmem:[#allocation13 + $0xa8] sm:$0xff]  ;;  %v5029_v16 = vld [vmem:[#allocation13 + $0x80] sm:$0xff]  ;;  %v5148_v20 = vld [vmem:[#allocation11 + $0x1f8] sm:$0xff] }
0x1fc9   :  { %7368 = vmatprep.subr.mxu0 %v7814_v44  ;;  %v5147_v6 = vld [vmem:[#allocation11 + $0x1f0] sm:$0xff] }
0x1fca   :  { %v4502_v8 = vmul.f32 1.442695, %v4499_v7  ;;  %v5146_v7 = vld [vmem:[#allocation11 + $0x1e8] sm:$0xff] }
0x1fcb   :  { %v4515_v9 = vpop.permute.xlu0 %4514  ;;  %v4669_v15 = vpop.permute.xlu1 %4668 }
0x1fcc   :  { %7605 = vpow2.f32 %v4502_v8  ;;  %7354 = vmatpush3.msra.mxu1 %v4515_v9  ;;  %v5145_v8 = vld [vmem:[#allocation11 + $0x1e0] sm:$0xff]  ;;  %v5144_v9 = vld [vmem:[#allocation11 + $0x1d8] sm:$0xff] }
0x1fcd   :  { %7363 = vmatprep.subr.mxu1 %v7814_v44 }
0x1fd5   :  { %v7604_v10 = vpop.eup %7603 }
0x1fd6   :  { %v4504_v53 = vsel %vm143_vm0, %v7604_v10, 0.0 }
0x1fd7   :  { %4505 = vadd.xlane.f32.xlu0 %v4504_v53  ;;  %v5142_v53 = vld [vmem:[#allocation11 + $0x1c8] sm:$0xff] }
0x1fd9   :  { %v7606_v14 = vpop.eup %7605 }
0x1fda   :  { %v4507_v4 = vsel %vm143_vm0, %v7606_v14, 0.0 }
0x1fdb   :  { %4508 = vadd.xlane.f32.xlu1 %v4507_v4 }
0x1fec   :  { %4666 = vrot.lane.b32.xlu1 %v8322_v35, %s7821_s1 }
0x1fed   :  { %4746 = vrot.lane.b32.xlu0 %v8328_v30, %s7807_s24 }
0x1ff1   :  { %4744 = vrot.lane.b32.xlu0 %v8328_v30, %s7821_s1 }
0x2060   :  { %v4506_v57 = vpop.xlane.xlu0 %4505 }
0x2061   :  { %7607 = vrcp.f32 %v4506_v57 }
0x2064   :  { %v4509_v17 = vpop.xlane.xlu1 %4508  ;;  %v4747_v13 = vpop.permute.xlu0 %4746 }
0x2065   :  { %7609 = vrcp.f32 %v4509_v17 }
0x2068   :  { %v4667_v30 = vpop.permute.xlu1 %4666  ;;  %v4745_v23 = vpop.permute.xlu0 %4744 }
0x206e   :  { %v7608_v19 = vpop.eup %7607 }
0x206f   :  { %v4511_v21 = vmul.f32 %v7608_v19, %v7604_v10  ;;  %v5143_v10 = vld [vmem:[#allocation11 + $0x1d0] sm:$0xff] }
0x2071   :  { %7356 = vmatmul.mubr.msk.f32.vlgmr.msra.gmra.mxu1 %vm143_vm0, %v4511_v21 }
0x2072   :  { %v7610_v31 = vpop.eup %7609  ;;  %7364 = vmatpush3.xpose.msk.msra.mxu1 %vm240_vm3, %v4669_v15  ;;  %7365 = vmatprep.mubr.msk.f32.mxu1 %vm7815_vm10, %v7814_v44 }
0x2073   :  { %v4513_v35 = vmul.f32 %v7610_v31, %v7606_v14  ;;  %7373 = vmatprep.subr.mxu1 %v7814_v44  ;;  %v5141_v14 = vld [vmem:[#allocation11 + $0x1c0] sm:$0xff] }
0x2075   :  { %7361 = vmatmul.mubr.msk.f32.vlgmr.msra.gmra.mxu0 %vm143_vm0, %v4513_v35  ;;  %7366 = vmatmul.mubr.msk.f32.vlgmr.msra.gmra.mxu1 %vm240_vm3, %v4667_v30 }
0x2076   :  { %7369 = vmatpush3.xpose.msk.msra.mxu0 %vm240_vm3, %v4747_v13  ;;  %7370 = vmatprep.mubr.msk.f32.mxu0 %vm7815_vm10, %v7814_v44 }
0x2077   :  { %7378 = vmatprep.subr.mxu0 %v7814_v44  ;;  %7375 = vmatprep.mubr.msk.f32.mxu1 %vm7815_vm10, %v7814_v44 }
0x2079   :  { %7371 = vmatmul.mubr.msk.f32.vlgmr.msra.gmra.mxu0 %vm240_vm3, %v4745_v23 }
0x207a   :  { %7380 = vmatprep.mubr.msk.f32.mxu0 %vm7815_vm10, %v7814_v44 }
0x2131   :  { %v4586_v24 = vpop.f32.mrf.mxu1 }
0x2133   :  { %v7357_v25 = vpop.f32.mrf.mxu1 }
0x2135   :  { %v4662_v26 = vpop.f32.mrf.mxu0  ;;  %v4740_v27 = vpop.f32.mrf.mxu1 }
0x2136   :  { %v4822_v28 = vmul.f32 0.25, %v4740_v27 }
0x2137   :  { %v7362_v29 = vpop.f32.mrf.mxu0  ;;  %v7367_v32 = vpop.f32.mrf.mxu1 }
0x2138   :  { %v4824_v34 = vsel %vm143_vm0, %v4822_v28, -inf  ;;  %v5139_v29 = vld [vmem:[#allocation11 + $0x1b0] sm:$0xff]  ;;  %v5138_v32 = vld [vmem:[#allocation11 + $0x1a8] sm:$0xff] }
0x2139   :  { %4825 = vmax.xlane.f32.xlu1 %v4824_v34  ;;  %v4818_v60 = vpop.f32.mrf.mxu0  ;;  %v5137_v34 = vld [vmem:[#allocation11 + $0x1a0] sm:$0xff] }
0x213a   :  { %v4823_v22 = vmul.f32 0.25, %v4818_v60  ;;  %v5136_v60 = vld [vmem:[#allocation11 + $0x198] sm:$0xff] }
0x213b   :  { %v7372_v18 = vpop.f32.mrf.mxu0 }
0x213c   :  { %v4827_v37 = vsel %vm143_vm0, %v4823_v22, -inf  ;;  %v5133_v18 = vld [vmem:[#allocation11 + $0x180] sm:$0xff] }
0x213d   :  { %4828 = vmax.xlane.f32.xlu0 %v4827_v37 }
0x21c2   :  { %v4826_v33 = vpop.xlane.xlu1 %4825 }
0x21c3   :  { %v4830_v38 = vsub.f32 %v4822_v28, %v4826_v33  ;;  %v6865_v33 = vld [vmem:[%s8683_s10 + $0x2] ss:$0 sm:$0xff] }
0x21c5   :  { %v4832_v40 = vmul.f32 1.442695, %v4830_v38 }
0x21c6   :  { %v4829_v41 = vpop.xlane.xlu0 %4828 }
0x21c7   :  { %7611 = vpow2.f32 %v4832_v40  ;;  %v4831_v63 = vsub.f32 %v4823_v22, %v4829_v41  ;;  %v5134_v22 = vld [vmem:[#allocation11 + $0x188] sm:$0xff] }
0x21c9   :  { %v4834_v43 = vmul.f32 1.442695, %v4831_v63 }
0x21cb   :  { %7613 = vpow2.f32 %v4834_v43 }
0x21d4   :  { %v7612_v45 = vpop.eup %7611 }
0x21d5   :  { %v4836_v46 = vsel %vm143_vm0, %v7612_v45, 0.0 }
0x21d6   :  { %4837 = vadd.xlane.f32.xlu0 %v4836_v46 }
0x21d8   :  { %v7614_v48 = vpop.eup %7613 }
0x21d9   :  { %v4839_v50 = vsel %vm143_vm0, %v7614_v48, 0.0 }
0x21da   :  { %4840 = vadd.xlane.f32.xlu1 %v4839_v50 }
0x21eb   :  { %4922 = vrot.lane.b32.xlu1 %v8342_v39, %s7821_s1 }
0x21ec   :  { %4846 = vrot.lane.b32.xlu0 %v8324_v36, %s7821_s1 }
0x21ef   :  { %5000 = vrot.lane.b32.xlu1 %v8416_v49, %s7807_s24 }
0x21f0   :  { %5002 = vrot.lane.b32.xlu0 %v8418_v51, %s7807_s24  ;;  %v5036_v51 = vld [vmem:[#allocation13 + $0xb8] sm:$0xff] }
0x21f3   :  { %5008 = vrot.lane.b32.xlu1 %v4586_v24, %s7819_s21 }
0x21f4   :  { %5010 = vrot.lane.b32.xlu0 %v4662_v26, %s7819_s21 }
0x225f   :  { %v4838_v52 = vpop.xlane.xlu0 %4837 }
0x2260   :  { %7615 = vrcp.f32 %v4838_v52 }
0x2263   :  { %v4841_v42 = vpop.xlane.xlu1 %4840  ;;  %v4847_v58 = vpop.permute.xlu0 %4846 }
0x2264   :  { %7617 = vrcp.f32 %v4841_v42  ;;  %7374 = vmatpush3.msra.mxu1 %v4847_v58 }
0x2265   :  { %7383 = vmatprep.subr.mxu1 %v5036_v51 }
0x2267   :  { %v4923_v39 = vpop.permute.xlu1 %4922  ;;  %v5003_v21 = vpop.permute.xlu0 %5002 }
0x2268   :  { %7379 = vmatpush3.msra.mxu0 %v4923_v39  ;;  %v5023_v25 = vsel %vm240_vm3, %v8380_v12, %v5003_v21  ;;  %v5135_v12 = vld [vmem:[#allocation11 + $0x190] sm:$0xff] }
0x2269   :  { %5184 = vmatprep.subr.mxu0 %v5148_v20 }
0x226b   :  { %v5001_v19 = vpop.permute.xlu1 %5000  ;;  %v5011_v35 = vpop.permute.xlu0 %5010 }
0x226c   :  { %v5022_v13 = vsel %vm240_vm3, %v8378_v11, %v5001_v19  ;;  %v5025_v26 = vsel %vm339_vm6, %v5023_v25, %v5011_v35  ;;  %v5140_v11 = vld [vmem:[#allocation11 + $0x1b8] sm:$0xff] }
0x226d   :  { %v7616_v59 = vpop.eup %7615 }
0x226e   :  { %v4843_v36 = vmul.f32 %v7616_v59, %v7612_v45 }
0x226f   :  { %v5009_v31 = vpop.permute.xlu1 %5008 }
0x2270   :  { %7376 = vmatmul.mubr.msk.f32.vlgmr.msra.gmra.mxu1 %vm143_vm0, %v4843_v36  ;;  %v5024_v30 = vsel %vm339_vm6, %v5022_v13, %v5009_v31 }
0x2271   :  { %v7618_v49 = vpop.eup %7617  ;;  %7384 = vmatpush3.msra.mxu1 %v5036_v51 }
0x2272   :  { %v4845_v61 = vmul.f32 %v7618_v49, %v7614_v48  ;;  %7385 = vmatprep.subr.mxu1 %v5035_v47  ;;  %v6868_v48 = vld [vmem:[%s8681_s8 + $0x6] sm:$0x3] }
0x2273   :  { %7386 = vmatpush3.msra.mxu1 %v5035_v47  ;;  %v5155_v50 = vrot.slane %v6868_v48, %v7956_v56  ;;  %v5159_v52 = vrot.slane %v6868_v48, %v7971_v0 }
0x2274   :  { %7381 = vmatmul.mubr.msk.f32.vlgmr.msra.gmra.mxu0 %vm143_vm0, %v4845_v61  ;;  %7387 = vmatprep.subr.mxu1 %v5034_v62 }
0x2275   :  { %5232 = vmatprep.mubr.f32.mxu0 %v7814_v44  ;;  %7388 = vmatpush3.msra.mxu1 %v5034_v62 }
0x2276   :  { %7389 = vmatprep.subr.mxu1 %v5033_v1  ;;  %5185 = vmatpush1.msra.mxu0 %v5147_v6 }
0x2277   :  { %7390 = vmatpush3.msra.mxu1 %v5033_v1  ;;  %5186 = vmatprep.subr.mxu0 %v5146_v7 }
0x2278   :  { %7391 = vmatprep.subr.mxu1 %v5032_v2  ;;  %5187 = vmatpush1.msra.mxu0 %v5145_v8 }
0x2279   :  { %7392 = vmatpush3.msra.mxu1 %v5032_v2  ;;  %5188 = vmatprep.subr.mxu0 %v5144_v9 }
0x227a   :  { %7393 = vmatprep.subr.mxu1 %v5031_v3  ;;  %5189 = vmatpush1.msra.mxu0 %v5143_v10 }
0x227b   :  { %7394 = vmatpush3.msra.mxu1 %v5031_v3  ;;  %5190 = vmatprep.subr.mxu0 %v5142_v53 }
0x227c   :  { %7395 = vmatprep.subr.mxu1 %v5030_v5  ;;  %5191 = vmatpush1.msra.mxu0 %v5141_v14 }
0x227d   :  { %7396 = vmatpush3.msra.mxu1 %v5030_v5  ;;  %5192 = vmatprep.subr.mxu0 %v5140_v11 }
0x227e   :  { %7397 = vmatprep.subr.mxu1 %v5029_v16  ;;  %5193 = vmatpush1.msra.mxu0 %v5139_v29 }
0x227f   :  { %7398 = vmatpush3.msra.mxu1 %v5029_v16  ;;  %5194 = vmatprep.subr.mxu0 %v5138_v32 }
0x2280   :  { %7402 = vmatprep.subr.mxu1 %v7814_v44  ;;  %5195 = vmatpush1.msra.mxu0 %v5137_v34 }
0x2281   :  { %5196 = vmatprep.subr.mxu0 %v5136_v60 }
0x2282   :  { %5197 = vmatpush1.msra.mxu0 %v5135_v12 }
0x2283   :  { %5198 = vmatprep.subr.mxu0 %v5134_v22 }
0x2284   :  { %5199 = vmatpush1.msra.mxu0 %v5133_v18 }
0x2285   :  { %7412 = vmatprep.subr.mxu0 %v7814_v44 }
0x2330   :  { %v4918_v4 = vpop.f32.mrf.mxu1 }
0x2331   :  { %5016 = vrot.lane.b32.xlu1 %v4918_v4, %s7817_s19 }
0x2332   :  { %v7377_v15 = vpop.f32.mrf.mxu1 }
0x2334   :  { %v4994_v57 = vpop.f32.mrf.mxu0 }
0x2335   :  { %5018 = vrot.lane.b32.xlu0 %v4994_v57, %s7817_s19 }
0x2336   :  { %v7382_v17 = vpop.f32.mrf.mxu0 }
0x23a3   :  { %v5017_v23 = vpop.permute.xlu1 %5016 }
0x23a4   :  { %v5026_v24 = vsel %vm1889_vm11, %v5024_v30, %v5017_v23 }
0x23a5   :  { %7399 = vmatprep.mubr.msk.f32.mxu1 %vm455_vm8, %v5026_v24 }
0x23a7   :  { %v5019_v27 = vpop.permute.xlu0 %5018 }
0x23a8   :  { %v5027_v28 = vsel %vm1889_vm11, %v5025_v26, %v5019_v27 }
0x23a9   :  { %7400 = vmatmul.mubr.msk.f32.vlgmr.msra.gmra.mxu1 %vm455_vm8, %v5027_v28 }
0x23aa   :  { %7404 = vmatprep.mubr.msk.f32.mxu1 %vm7815_vm10, %v7814_v44 }
0x2469   :  { %v7401_v37 = vpop.f32.mrf.mxu1 }
0x246a   :  { %v5123_v40 = vadd.f32 %v7401_v37, %v6865_v33 }
0x246b   :  { %v5117_v38 = vpop.f32.mrf.mxu1 }
0x246c   :  { %v5118_v41 = vadd.f32 %v6865_v33, %v5117_v38  ;;  %v5129_v43 = vmul.f32 0.2, %v5123_v40  ;;  %vm5127_vm2 = vcmp.gt.f32.partialorder %v5123_v40, 0.0 }
0x246e   :  { %vm5126_vm1 = vcmp.gt.f32.partialorder %v5118_v41, 0.0  ;;  %v5128_v63 = vmul.f32 0.2, %v5118_v41  ;;  %v5131_v46 = vsel %vm5127_vm2, %v5123_v40, %v5129_v43 }
0x2470   :  { %v5130_v45 = vsel %vm5126_vm1, %v5118_v41, %v5128_v63 }
0x2471   :  { %6869 = vmatmul.mubr.msk.f32.vlgmr.msra.gmra.mxu0 %vm455_vm8, %v5130_v45 }
0x2472   :  { %5238 = vmatprep.mubr.f32.mxu0 %v7814_v44 }
0x2475   :  { %6870 = vmatmul.mubr.msk.f32.gmra.mxu0 %vm455_vm8, %v5131_v46 }
0x2476   :  { %7414 = vmatprep.mubr.msk.f32.mxu0 %vm7815_vm10, %v7814_v44 }
0x2531   :  { %v5234_v42 = vpop.f32.mrf.mxu0 }
0x2532   :  { %v8500_v58 = vadd.f32 %v5234_v42, %v5155_v50 }
0x2533   :  { %v5236_v39 = vpop.f32.mrf.mxu0 }
0x2534   :  { %v8502_v59 = vadd.f32 %v5236_v39, %v5159_v52  ;;  %5246 = vrot.lane.b32.xlu1 %v8500_v58, %s7816_s18 }
0x2535   :  { %v5240_v36 = vpop.f32.mrf.mxu0 }
0x2536   :  { %v8506_v49 = vadd.f32 %v5240_v36, %v5155_v50  ;;  %7413 = vmatpush3.msra.mxu0 %v8502_v59 }
0x2537   :  { %7422 = vmatprep.subr.mxu0 %v7814_v44  ;;  %v5242_v0 = vpop.f32.mrf.mxu0 }
0x2538   :  { %5323 = vrot.lane.b32.xlu0 %v8506_v49, %s7816_s18  ;;  %v8520_v51 = vadd.f32 %v5242_v0, %v5159_v52 }
0x25a6   :  { %v5247_v56 = vpop.permute.xlu1 %5246 }
0x25a7   :  { %7403 = vmatpush3.xpose.msk.msra.mxu1 %vm240_vm3, %v5247_v56 }
0x25a8   :  { %7407 = vmatprep.subr.mxu1 %v7814_v44 }
0x25aa   :  { %v5324_v61 = vpop.permute.xlu0 %5323  ;;  %7405 = vmatmul.mubr.msk.f32.vlgmr.msra.gmra.mxu1 %vm240_vm3, %v8500_v58 }
0x25ab   :  { %7408 = vmatpush3.xpose.msk.msra.mxu1 %vm240_vm3, %v5324_v61  ;;  %7409 = vmatprep.mubr.msk.f32.mxu1 %vm7815_vm10, %v7814_v44 }
0x25ac   :  { %7417 = vmatprep.subr.mxu1 %v7814_v44 }
0x25ae   :  { %7410 = vmatmul.mubr.msk.f32.vlgmr.msra.gmra.mxu1 %vm240_vm3, %v8506_v49 }
0x25af   :  { %7418 = vmatpush3.msra.mxu1 %v8520_v51  ;;  %7419 = vmatprep.mubr.msk.f32.mxu1 %vm7815_vm10, %v7814_v44 }
0x25b0   :  { %7427 = vmatprep.subr.mxu1 %v7814_v44 }
0x266a   :  { %v5318_v47 = vpop.f32.mrf.mxu1 }
0x266b   :  { %v5399_v62 = vmul.f32 0.25, %v5318_v47 }
0x266c   :  { %v7406_v1 = vpop.f32.mrf.mxu1 }
0x266d   :  { %v5401_v2 = vsel %vm143_vm0, %v5399_v62, -inf }
0x266e   :  { %5402 = vmax.xlane.f32.xlu1 %v5401_v2  ;;  %v5395_v3 = vpop.f32.mrf.mxu1 }
0x266f   :  { %v5400_v5 = vmul.f32 0.25, %v5395_v3 }
0x2670   :  { %v7411_v16 = vpop.f32.mrf.mxu1 }
0x2671   :  { %v5404_v20 = vsel %vm143_vm0, %v5400_v5, -inf }
0x2672   :  { %5405 = vmax.xlane.f32.xlu0 %v5404_v20 }
0x267f   :  { %5649 = vrot.lane.b32.xlu1 %v8506_v49, %s7817_s19 }
0x26f7   :  { %v5403_v6 = vpop.xlane.xlu1 %5402 }
0x26f8   :  { %v5407_v7 = vsub.f32 %v5399_v62, %v5403_v6 }
0x26fa   :  { %v5409_v8 = vmul.f32 1.442695, %v5407_v7 }
0x26fb   :  { %v5406_v9 = vpop.xlane.xlu0 %5405  ;;  %v5650_v17 = vpop.permute.xlu1 %5649 }
0x26fc   :  { %7619 = vpow2.f32 %v5409_v8  ;;  %v5408_v10 = vsub.f32 %v5400_v5, %v5406_v9 }
0x26fe   :  { %v5411_v53 = vmul.f32 1.442695, %v5408_v10 }
0x2700   :  { %7621 = vpow2.f32 %v5411_v53 }
0x2709   :  { %v7620_v14 = vpop.eup %7619 }
0x270a   :  { %v5413_v4 = vsel %vm143_vm0, %v7620_v14, 0.0 }
0x270b   :  { %5414 = vadd.xlane.f32.xlu0 %v5413_v4 }
0x270d   :  { %v7622_v15 = vpop.eup %7621 }
0x270e   :  { %v5416_v57 = vsel %vm143_vm0, %v7622_v15, 0.0 }
0x270f   :  { %5417 = vadd.xlane.f32.xlu1 %v5416_v57 }
0x2720   :  { %5569 = vrot.lane.b32.xlu1 %v8500_v58, %s7818_s20 }
0x2721   :  { %5571 = vrot.lane.b32.xlu0 %v8500_v58, %s7817_s19 }
0x2725   :  { %5647 = vrot.lane.b32.xlu0 %v8506_v49, %s7818_s20 }
0x2794   :  { %v5415_v19 = vpop.xlane.xlu0 %5414 }
0x2795   :  { %7623 = vrcp.f32 %v5415_v19 }
0x2798   :  { %v5418_v21 = vpop.xlane.xlu1 %5417  ;;  %v5572_v35 = vpop.permute.xlu0 %5571 }
0x2799   :  { %7625 = vrcp.f32 %v5418_v21 }
0x279c   :  { %v5570_v24 = vpop.permute.xlu1 %5569  ;;  %v5648_v25 = vpop.permute.xlu0 %5647 }
0x27a2   :  { %v7624_v31 = vpop.eup %7623 }
0x27a3   :  { %v5420_v13 = vmul.f32 %v7624_v31, %v7620_v14 }
0x27a5   :  { %7415 = vmatmul.mubr.msk.f32.vlgmr.msra.gmra.mxu0 %vm143_vm0, %v5420_v13 }
0x27a6   :  { %v7626_v30 = vpop.eup %7625  ;;  %7423 = vmatpush3.xpose.msk.msra.mxu0 %vm240_vm3, %v5572_v35  ;;  %7424 = vmatprep.mubr.msk.f32.mxu0 %vm7815_vm10, %v7814_v44 }
0x27a7   :  { %v5422_v23 = vmul.f32 %v7626_v30, %v7622_v15  ;;  %7432 = vmatprep.subr.mxu0 %v7814_v44 }
0x27a9   :  { %7420 = vmatmul.mubr.msk.f32.vlgmr.msra.gmra.mxu1 %vm143_vm0, %v5422_v23  ;;  %7425 = vmatmul.mubr.msk.f32.vlgmr.msra.gmra.mxu0 %vm240_vm3, %v5570_v24 }
0x27aa   :  { %7428 = vmatpush3.xpose.msk.msra.mxu1 %vm240_vm3, %v5650_v17  ;;  %7429 = vmatprep.mubr.msk.f32.mxu1 %vm7815_vm10, %v7814_v44 }
0x27ab   :  { %7437 = vmatprep.subr.mxu1 %v7814_v44  ;;  %7434 = vmatprep.mubr.msk.f32.mxu0 %vm7815_vm10, %v7814_v44 }
0x27ad   :  { %7430 = vmatmul.mubr.msk.f32.vlgmr.msra.gmra.mxu1 %vm240_vm3, %v5648_v25 }
0x27ae   :  { %7439 = vmatprep.mubr.msk.f32.mxu1 %vm7815_vm10, %v7814_v44 }
0x2865   :  { %v8556_v26 = vpop.f32.mrf.mxu0 }
0x2867   :  { %v7416_v27 = vpop.f32.mrf.mxu0 }
0x2869   :  { %v8558_v28 = vpop.f32.mrf.mxu1  ;;  %v5643_v11 = vpop.f32.mrf.mxu0 }
0x286a   :  { %v5725_v29 = vmul.f32 0.25, %v5643_v11 }
0x286b   :  { %v7421_v32 = vpop.f32.mrf.mxu1  ;;  %v7426_v34 = vpop.f32.mrf.mxu0 }
0x286c   :  { %v5727_v60 = vsel %vm143_vm0, %v5725_v29, -inf }
0x286d   :  { %5728 = vmax.xlane.f32.xlu1 %v5727_v60  ;;  %v5721_v12 = vpop.f32.mrf.mxu1 }
0x286e   :  { %v5726_v22 = vmul.f32 0.25, %v5721_v12 }
0x286f   :  { %v7431_v18 = vpop.f32.mrf.mxu1 }
0x2870   :  { %v5730_v37 = vsel %vm143_vm0, %v5726_v22, -inf }
0x2871   :  { %5731 = vmax.xlane.f32.xlu0 %v5730_v37 }
0x287e   :  { %5827 = vrot.lane.b32.xlu1 %v8520_v51, %s7818_s20 }
0x2882   :  { %5905 = vrot.lane.b32.xlu1 %v8500_v58, %s7819_s21 }
0x2887   :  { %5750 = vrot.lane.b32.xlu0 %v8502_v59, %s7818_s20 }
0x28f6   :  { %v5729_v33 = vpop.xlane.xlu1 %5728 }
0x28f7   :  { %v5733_v38 = vsub.f32 %v5725_v29, %v5729_v33 }
0x28f9   :  { %v5735_v40 = vmul.f32 1.442695, %v5733_v38 }
0x28fa   :  { %v5828_v41 = vpop.permute.xlu1 %5827  ;;  %v5732_v63 = vpop.xlane.xlu0 %5731 }
0x28fb   :  { %7627 = vpow2.f32 %v5735_v40  ;;  %v5734_v43 = vsub.f32 %v5726_v22, %v5732_v63  ;;  %7438 = vmatpush3.msra.mxu1 %v5828_v41 }
0x28fc   :  { %7447 = vmatprep.subr.mxu1 %v7814_v44 }
0x28fd   :  { %v5737_v45 = vmul.f32 1.442695, %v5734_v43 }
0x28fe   :  { %v5751_v46 = vpop.permute.xlu0 %5750  ;;  %v5906_v39 = vpop.permute.xlu1 %5905 }
0x28ff   :  { %7629 = vpow2.f32 %v5737_v45  ;;  %7433 = vmatpush3.msra.mxu0 %v5751_v46 }
0x2900   :  { %7442 = vmatprep.subr.mxu0 %v7814_v44 }
0x2908   :  { %v7628_v48 = vpop.eup %7627 }
0x2909   :  { %v5739_v50 = vsel %vm143_vm0, %v7628_v48, 0.0 }
0x290a   :  { %5740 = vadd.xlane.f32.xlu0 %v5739_v50 }
0x290c   :  { %v7630_v52 = vpop.eup %7629 }
0x290d   :  { %v5742_v42 = vsel %vm143_vm0, %v7630_v52, 0.0 }
0x290e   :  { %5743 = vadd.xlane.f32.xlu1 %v5742_v42 }
0x291f   :  { %5903 = vrot.lane.b32.xlu1 %v8500_v58, %s7820_s22 }
0x2920   :  { %5983 = vrot.lane.b32.xlu0 %v8506_v49, %s7819_s21 }
0x2924   :  { %5981 = vrot.lane.b32.xlu0 %v8506_v49, %s7820_s22 }
0x2993   :  { %v5741_v36 = vpop.xlane.xlu0 %5740 }
0x2994   :  { %7631 = vrcp.f32 %v5741_v36 }
0x2997   :  { %v5744_v56 = vpop.xlane.xlu1 %5743  ;;  %v5984_v62 = vpop.permute.xlu0 %5983 }
0x2998   :  { %7633 = vrcp.f32 %v5744_v56 }
0x299b   :  { %v5904_v2 = vpop.permute.xlu1 %5903  ;;  %v5982_v3 = vpop.permute.xlu0 %5981 }
0x29a1   :  { %v7632_v0 = vpop.eup %7631 }
0x29a2   :  { %v5746_v61 = vmul.f32 %v7632_v0, %v7628_v48 }
0x29a4   :  { %7435 = vmatmul.mubr.msk.f32.vlgmr.msra.gmra.mxu0 %vm143_vm0, %v5746_v61 }
0x29a5   :  { %v7634_v47 = vpop.eup %7633  ;;  %7443 = vmatpush3.xpose.msk.msra.mxu0 %vm240_vm3, %v5906_v39  ;;  %7444 = vmatprep.mubr.msk.f32.mxu0 %vm7815_vm10, %v7814_v44 }
0x29a6   :  { %v5748_v1 = vmul.f32 %v7634_v47, %v7630_v52  ;;  %7452 = vmatprep.subr.mxu0 %v7814_v44 }
0x29a8   :  { %7440 = vmatmul.mubr.msk.f32.vlgmr.msra.gmra.mxu1 %vm143_vm0, %v5748_v1  ;;  %7445 = vmatmul.mubr.msk.f32.vlgmr.msra.gmra.mxu0 %vm240_vm3, %v5904_v2 }
0x29a9   :  { %7448 = vmatpush3.xpose.msk.msra.mxu1 %vm240_vm3, %v5984_v62  ;;  %7449 = vmatprep.mubr.msk.f32.mxu1 %vm7815_vm10, %v7814_v44 }
0x29aa   :  { %7457 = vmatprep.subr.mxu1 %v7814_v44  ;;  %7454 = vmatprep.mubr.msk.f32.mxu0 %vm7815_vm10, %v7814_v44 }
0x29ac   :  { %7450 = vmatmul.mubr.msk.f32.vlgmr.msra.gmra.mxu1 %vm240_vm3, %v5982_v3 }
0x29ad   :  { %7459 = vmatprep.mubr.msk.f32.mxu1 %vm7815_vm10, %v7814_v44 }
0x2a64   :  { %v8594_v5 = vpop.f32.mrf.mxu0 }
0x2a66   :  { %v7436_v16 = vpop.f32.mrf.mxu0 }
0x2a68   :  { %v8596_v20 = vpop.f32.mrf.mxu1  ;;  %v5977_v6 = vpop.f32.mrf.mxu0 }
0x2a69   :  { %v6059_v7 = vmul.f32 0.25, %v5977_v6 }
0x2a6a   :  { %v7441_v8 = vpop.f32.mrf.mxu1  ;;  %v7446_v9 = vpop.f32.mrf.mxu0 }
0x2a6b   :  { %v6061_v10 = vsel %vm143_vm0, %v6059_v7, -inf  ;;  %v6604_v8 = vld [vmem:[#allocation13 + $0xf0] sm:$0xff]  ;;  %v6603_v9 = vld [vmem:[#allocation13 + $0xe8] sm:$0xff] }
0x2a6c   :  { %6062 = vmax.xlane.f32.xlu1 %v6061_v10  ;;  %v6055_v53 = vpop.f32.mrf.mxu1  ;;  %v6602_v10 = vld [vmem:[#allocation13 + $0xe0] sm:$0xff] }
0x2a6d   :  { %v6060_v14 = vmul.f32 0.25, %v6055_v53  ;;  %v6601_v53 = vld [vmem:[#allocation13 + $0xd8] sm:$0xff] }
0x2a6e   :  { %v7451_v4 = vpop.f32.mrf.mxu1 }
0x2a6f   :  { %v6064_v15 = vsel %vm143_vm0, %v6060_v14, -inf  ;;  %v6599_v4 = vld [vmem:[#allocation13 + $0xc8] sm:$0xff] }
0x2a70   :  { %6065 = vmax.xlane.f32.xlu0 %v6064_v15  ;;  %v6598_v15 = vld [vmem:[#allocation13 + $0xc0] sm:$0xff] }
0x2a7d   :  { %6159 = vrot.lane.b32.xlu1 %v8520_v51, %s7820_s22 }
0x2a81   :  { %6237 = vrot.lane.b32.xlu1 %v8500_v58, %s7807_s24 }
0x2a86   :  { %6083 = vrot.lane.b32.xlu0 %v8502_v59, %s7820_s22 }
0x2af5   :  { %v6063_v57 = vpop.xlane.xlu1 %6062 }
0x2af6   :  { %v6067_v17 = vsub.f32 %v6059_v7, %v6063_v57 }
0x2af8   :  { %v6069_v19 = vmul.f32 1.442695, %v6067_v17 }
0x2af9   :  { %v6160_v21 = vpop.permute.xlu1 %6159  ;;  %v6066_v31 = vpop.xlane.xlu0 %6065 }
0x2afa   :  { %7635 = vpow2.f32 %v6069_v19  ;;  %v6068_v13 = vsub.f32 %v6060_v14, %v6066_v31  ;;  %7458 = vmatpush3.msra.mxu1 %v6160_v21  ;;  %v6600_v14 = vld [vmem:[#allocation13 + $0xd0] sm:$0xff] }
0x2afb   :  { %7467 = vmatprep.subr.mxu1 %v7814_v44 }
0x2afc   :  { %v6071_v35 = vmul.f32 1.442695, %v6068_v13 }
0x2afd   :  { %v6084_v30 = vpop.permute.xlu0 %6083  ;;  %v6238_v11 = vpop.permute.xlu1 %6237 }
0x2afe   :  { %7637 = vpow2.f32 %v6071_v35  ;;  %7453 = vmatpush3.msra.mxu0 %v6084_v30 }
0x2aff   :  { %7462 = vmatprep.subr.mxu0 %v7814_v44 }
0x2b07   :  { %v7636_v23 = vpop.eup %7635 }
0x2b08   :  { %v6073_v24 = vsel %vm143_vm0, %v7636_v23, 0.0 }
0x2b09   :  { %6074 = vadd.xlane.f32.xlu0 %v6073_v24 }
0x2b0b   :  { %v7638_v25 = vpop.eup %7637 }
0x2b0c   :  { %v6076_v27 = vsel %vm143_vm0, %v7638_v25, 0.0 }
0x2b0d   :  { %6077 = vadd.xlane.f32.xlu1 %v6076_v27 }
0x2b1e   :  { %6235 = vrot.lane.b32.xlu1 %v8500_v58, %s7821_s1 }
0x2b1f   :  { %6315 = vrot.lane.b32.xlu0 %v8506_v49, %s7807_s24 }
0x2b23   :  { %6313 = vrot.lane.b32.xlu0 %v8506_v49, %s7821_s1 }
0x2b92   :  { %v6075_v29 = vpop.xlane.xlu0 %6074 }
0x2b93   :  { %7639 = vrcp.f32 %v6075_v29 }
0x2b96   :  { %v6078_v32 = vpop.xlane.xlu1 %6077  ;;  %v6316_v22 = vpop.permute.xlu0 %6315 }
0x2b97   :  { %7641 = vrcp.f32 %v6078_v32 }
0x2b9a   :  { %v6236_v49 = vpop.permute.xlu1 %6235  ;;  %v6314_v18 = vpop.permute.xlu0 %6313 }
0x2ba0   :  { %v7640_v34 = vpop.eup %7639 }
0x2ba1   :  { %v6080_v60 = vmul.f32 %v7640_v34, %v7636_v23 }
0x2ba3   :  { %7455 = vmatmul.mubr.msk.f32.vlgmr.msra.gmra.mxu0 %vm143_vm0, %v6080_v60 }
0x2ba4   :  { %v7642_v12 = vpop.eup %7641  ;;  %7463 = vmatpush3.xpose.msk.msra.mxu0 %vm240_vm3, %v6238_v11  ;;  %7464 = vmatprep.mubr.msk.f32.mxu0 %vm7815_vm10, %v7814_v44 }
0x2ba5   :  { %v6082_v58 = vmul.f32 %v7642_v12, %v7638_v25  ;;  %7472 = vmatprep.subr.mxu0 %v7814_v44 }
0x2ba7   :  { %7460 = vmatmul.mubr.msk.f32.vlgmr.msra.gmra.mxu1 %vm143_vm0, %v6082_v58  ;;  %7465 = vmatmul.mubr.msk.f32.vlgmr.msra.gmra.mxu0 %vm240_vm3, %v6236_v49 }
0x2ba8   :  { %7468 = vmatpush3.xpose.msk.msra.mxu1 %vm240_vm3, %v6316_v22  ;;  %7469 = vmatprep.mubr.msk.f32.mxu1 %vm7815_vm10, %v7814_v44 }
0x2ba9   :  { %7477 = vmatprep.subr.mxu1 %v7814_v44  ;;  %7474 = vmatprep.mubr.msk.f32.mxu0 %vm7815_vm10, %v7814_v44 }
0x2bab   :  { %7470 = vmatmul.mubr.msk.f32.vlgmr.msra.gmra.mxu1 %vm240_vm3, %v6314_v18 }
0x2bac   :  { %7479 = vmatprep.mubr.msk.f32.mxu1 %vm7815_vm10, %v7814_v44 }
0x2c63   :  { %v6155_v37 = vpop.f32.mrf.mxu0 }
0x2c65   :  { %v7456_v33 = vpop.f32.mrf.mxu0 }
0x2c67   :  { %v6231_v38 = vpop.f32.mrf.mxu1  ;;  %v6309_v40 = vpop.f32.mrf.mxu0 }
0x2c68   :  { %v6391_v41 = vmul.f32 0.25, %v6309_v40  ;;  %v7822_v40 = vmov 0  }
0x2c69   :  { %v7461_v63 = vpop.f32.mrf.mxu1  ;;  %v7466_v43 = vpop.f32.mrf.mxu0  ;;  %7521 = vset.pattern.permute.xlu1 %v7822_v40  ;;  %7522 = vset.pattern.permute.xlu0 %v7822_v40 }
0x2c6a   :  { %v6393_v45 = vsel %vm143_vm0, %v6391_v41, -inf }
0x2c6b   :  { %6394 = vmax.xlane.f32.xlu1 %v6393_v45  ;;  %v6387_v46 = vpop.f32.mrf.mxu1 }
0x2c6c   :  { %v6392_v48 = vmul.f32 0.25, %v6387_v46 }
0x2c6d   :  { %v7471_v50 = vpop.f32.mrf.mxu1 }
0x2c6e   :  { %v6396_v52 = vsel %vm143_vm0, %v6392_v48, -inf  ;;  %v6728_v50 = vand.u32 127, %v445_v54 }
0x2c6f   :  { %6397 = vmax.xlane.f32.xlu0 %v6396_v52 }
0x2cf4   :  { %v6395_v42 = vpop.xlane.xlu1 %6394 }
0x2cf5   :  { %v6399_v39 = vsub.f32 %v6391_v41, %v6395_v42  ;;  %v6899_v41 = vld [vmem:[%s8684_s11] ss:$0 sm:$0xff]  ;;  %v6731_v42 = vsub.s32 %v6728_v50, %v7949_v55 }
0x2cf7   :  { %v6401_v36 = vmul.f32 1.442695, %v6399_v39 }
0x2cf8   :  { %v6398_v44 = vpop.xlane.xlu0 %6397 }
0x2cf9   :  { %7643 = vpow2.f32 %v6401_v36  ;;  %v6400_v56 = vsub.f32 %v6392_v48, %v6398_v44 }
0x2cfb   :  { %v6403_v0 = vmul.f32 1.442695, %v6400_v56 }
0x2cfd   :  { %7645 = vpow2.f32 %v6403_v0 }
0x2d06   :  { %v7644_v61 = vpop.eup %7643 }
0x2d07   :  { %v6405_v47 = vsel %vm143_vm0, %v7644_v61, 0.0 }
0x2d08   :  { %6406 = vadd.xlane.f32.xlu0 %v6405_v47 }
0x2d0a   :  { %v7646_v62 = vpop.eup %7645 }
0x2d0b   :  { %v6408_v1 = vsel %vm143_vm0, %v7646_v62, 0.0 }
0x2d0c   :  { %6409 = vadd.xlane.f32.xlu1 %v6408_v1 }
0x2d1d   :  { %6491 = vrot.lane.b32.xlu1 %v8520_v51, %s7821_s1 }
0x2d1e   :  { %6415 = vrot.lane.b32.xlu0 %v8502_v59, %s7821_s1 }
0x2d21   :  { %6569 = vrot.lane.b32.xlu1 %v8594_v5, %s7807_s24 }
0x2d22   :  { %6571 = vrot.lane.b32.xlu0 %v8596_v20, %s7807_s24  ;;  %v6605_v20 = vld [vmem:[#allocation13 + $0xf8] sm:$0xff] }
0x2d25   :  { %6577 = vrot.lane.b32.xlu1 %v6155_v37, %s7819_s21 }
0x2d26   :  { %6579 = vrot.lane.b32.xlu0 %v6231_v38, %s7819_s21 }
0x2d91   :  { %v6407_v2 = vpop.xlane.xlu0 %6406 }
0x2d92   :  { %7647 = vrcp.f32 %v6407_v2 }
0x2d95   :  { %v6410_v3 = vpop.xlane.xlu1 %6409  ;;  %v6416_v16 = vpop.permute.xlu0 %6415 }
0x2d96   :  { %7649 = vrcp.f32 %v6410_v3  ;;  %7473 = vmatpush3.msra.mxu0 %v6416_v16 }
0x2d97   :  { %7482 = vmatprep.subr.mxu0 %v6605_v20 }
0x2d99   :  { %v6492_v51 = vpop.permute.xlu1 %6491  ;;  %v6572_v13 = vpop.permute.xlu0 %6571 }
0x2d9a   :  { %7478 = vmatpush3.msra.mxu1 %v6492_v51  ;;  %v6592_v11 = vsel %vm240_vm3, %v8558_v28, %v6572_v13 }
0x2d9d   :  { %v6570_v31 = vpop.permute.xlu1 %6569  ;;  %v6580_v23 = vpop.permute.xlu0 %6579 }
0x2d9e   :  { %v6591_v30 = vsel %vm240_vm3, %v8556_v26, %v6570_v31  ;;  %v6594_v29 = vsel %vm339_vm6, %v6592_v11, %v6580_v23  ;;  %v6896_v26 = vld [vmem:[%s8683_s10 + $0x3] ss:$0 sm:$0xff] }
0x2d9f   :  { %v7648_v6 = vpop.eup %7647 }
0x2da0   :  { %v6412_v59 = vmul.f32 %v7648_v6, %v7644_v61  ;;  %v6900_v61 = vld [vmem:[#allocation2] ss:$0 sm:$0xff] }
0x2da1   :  { %v6578_v35 = vpop.permute.xlu1 %6577 }
0x2da2   :  { %7475 = vmatmul.mubr.msk.f32.vlgmr.msra.gmra.mxu0 %vm143_vm0, %v6412_v59  ;;  %v6593_v24 = vsel %vm339_vm6, %v6591_v30, %v6578_v35  ;;  %vm6758_vm6 = vcmask 1024  }
0x2da3   :  { %v7650_v5 = vpop.eup %7649  ;;  %7483 = vmatpush3.msra.mxu0 %v6605_v20 }
0x2da4   :  { %v6414_v7 = vmul.f32 %v7650_v5, %v7646_v62  ;;  %7484 = vmatprep.subr.mxu0 %v6604_v8 }
0x2da5   :  { %7485 = vmatpush3.msra.mxu0 %v6604_v8 }
0x2da6   :  { %7480 = vmatmul.mubr.msk.f32.vlgmr.msra.gmra.mxu1 %vm143_vm0, %v6414_v7  ;;  %7486 = vmatprep.subr.mxu0 %v6603_v9 }
0x2da7   :  { %7487 = vmatpush3.msra.mxu0 %v6603_v9 }
0x2da8   :  { %7488 = vmatprep.subr.mxu0 %v6602_v10 }
0x2da9   :  { %7489 = vmatpush3.msra.mxu0 %v6602_v10 }
0x2daa   :  { %7490 = vmatprep.subr.mxu0 %v6601_v53 }
0x2dab   :  { %7491 = vmatpush3.msra.mxu0 %v6601_v53 }
0x2dac   :  { %7492 = vmatprep.subr.mxu0 %v6600_v14 }
0x2dad   :  { %7493 = vmatpush3.msra.mxu0 %v6600_v14 }
0x2dae   :  { %7494 = vmatprep.subr.mxu0 %v6599_v4 }
0x2daf   :  { %7495 = vmatpush3.msra.mxu0 %v6599_v4 }
0x2db0   :  { %7496 = vmatprep.subr.mxu0 %v6598_v15 }
0x2db1   :  { %7497 = vmatpush3.msra.mxu0 %v6598_v15 }
0x2e62   :  { %v6487_v57 = vpop.f32.mrf.mxu0 }
0x2e63   :  { %6585 = vrot.lane.b32.xlu1 %v6487_v57, %s7817_s19 }
0x2e64   :  { %v7476_v17 = vpop.f32.mrf.mxu0 }
0x2e66   :  { %v6563_v19 = vpop.f32.mrf.mxu1 }
0x2e67   :  { %6587 = vrot.lane.b32.xlu0 %v6563_v19, %s7817_s19 }
0x2e68   :  { %v7481_v21 = vpop.f32.mrf.mxu1 }
0x2ed5   :  { %v6586_v25 = vpop.permute.xlu1 %6585 }
0x2ed6   :  { %v6595_v27 = vsel %vm1889_vm11, %v6593_v24, %v6586_v25 }
0x2ed7   :  { %7498 = vmatprep.mubr.msk.f32.mxu0 %vm455_vm8, %v6595_v27 }
0x2ed9   :  { %v6588_v32 = vpop.permute.xlu0 %6587 }
0x2eda   :  { %v6596_v34 = vsel %vm1889_vm11, %v6594_v29, %v6588_v32 }
0x2edb   :  { %7499 = vmatmul.mubr.msk.f32.vlgmr.msra.gmra.mxu0 %vm455_vm8, %v6596_v34 }
0x2f9b   :  { %v7500_v60 = vpop.f32.mrf.mxu0 }
0x2f9c   :  { %v6692_v12 = vadd.f32 %v7500_v60, %v6896_v26 }
0x2f9d   :  { %v6686_v22 = vpop.f32.mrf.mxu0 }
0x2f9e   :  { %v6698_v58 = vmul.f32 0.2, %v6692_v12  ;;  %v6687_v49 = vadd.f32 %v6896_v26, %v6686_v22  ;;  %vm6696_vm0 = vcmp.gt.f32.partialorder %v6692_v12, 0.0 }
0x2fa0   :  { %v6697_v18 = vmul.f32 0.2, %v6687_v49  ;;  %v6700_v37 = vsel %vm6696_vm0, %v6692_v12, %v6698_v58  ;;  %vm6695_vm3 = vcmp.gt.f32.partialorder %v6687_v49, 0.0 }
0x2fa1   :  { %v6704_v28 = vsel %vm455_vm8, %v6700_v37, -inf }
0x2fa2   :  { %6705 = vmax.xlane.f32.xlu0 %v6704_v28  ;;  %v6699_v33 = vsel %vm6695_vm3, %v6687_v49, %v6697_v18 }
0x2fa3   :  { %v6701_v38 = vsel %vm455_vm8, %v6699_v33, -inf }
0x2fa4   :  { %6702 = vmax.xlane.f32.xlu1 %v6701_v38 }
0x2fb8   :  { %6714 = vbcast.lane.b32.xlu0 %v6899_v41, 256 }
0x302b   :  { %v6706_v63 = vpop.xlane.xlu0 %6705 }
0x302d   :  { %v6703_v43 = vpop.xlane.xlu1 %6702 }
0x302f   :  { %v6715_v45 = vpop.permute.xlu0 %6714 }
0x3030   :  { %v6717_v46 = vmul.f32 %v6715_v45, %v6703_v43  ;;  %v6718_v48 = vmul.f32 %v6715_v45, %v6706_v63 }
0x3032   :  { %6722 = vperm.xlu1 %7521, %v6717_v46  }
0x3036   :  { %6725 = vperm.xlu1 %7521, %v6718_v48  }
0x30ad   :  { %v6723_v52 = vpop.permute.xlu1 %6722 }
0x30ae   :  { %v6732_v36 = vrot.slane %v6723_v52, %v6731_v42 }
0x30b1   :  { %v6726_v39 = vpop.permute.xlu1 %6725 }
0x30b2   :  { %v6736_v44 = vrot.slane %v6726_v39, %v6731_v42 }
0x30b4   :  { %v6738_v56 = vsel %vm6737_vm4, %v6736_v44, %v6732_v36 }
0x30b5   :  { %v6741_v0 = vsel %vm6740_vm5, %v6738_v56, 0.0 }
0x30b6   :  { %6742 = vadd.xlane.f32.xlu0 %v6741_v0 }
0x313f   :  { %v6743_v47 = vpop.xlane.xlu0 %6742 }
0x3140   :  { %v6751_v62 = vadd.f32 %v6900_v61, %v6743_v47 }
0x3142   :  { %v6752_v1 = vsub.f32 0.0, %v6751_v62 }
0x3144   :  { %v6753_v2 = vmul.f32 1.442695, %v6752_v1 }
0x3146   :  { %7651 = vpow2.f32 %v6753_v2 }
0x3153   :  { %v7652_v3 = vpop.eup %7651 }
0x3154   :  { %v6755_v16 = vadd.f32 1.0, %v7652_v3 }
0x3156   :  { %7653 = vrcp.f32 %v6755_v16 }
0x3163   :  { %v7654_v54 = vpop.eup %7653 }
0x3164   :  { %6759 = vst.msk [vmem:[%s8686_s13] sm:$0x3] %vm6758_vm6, %v7654_v54 }
0x3165   :  { %6764 = vsyncpa [#allocation4], 1 }
0x3166   :  { %6765 = vsyncpa [#allocation6], 1 }
0x3167   :  { %6766 = vsyncpa [#allocation9], 1 }
0x3168   :  { %6767 = vsyncpa [#allocation12], 1 }

</bundles_post_ra>
